<compile_context>
chip_gen: v6e
topology: v6e:2x2x1
jax: 0.10.0
libtpu: 0.0.40
codegen_flags: <defaults>
</compile_context>

<pallas_src>
import jax
import jax.numpy as jnp
from jax.experimental import pallas as pl
from jax.experimental.pallas import tpu as pltpu

EPS = 1e-5  # nn.BatchNorm2d default eps


# --------------------------------------------------------------------------------------
# Kernel 1: Conv1 (3x3, pad=1) on the pooled input + BN1 partial stats.  Grid over batch.
# --------------------------------------------------------------------------------------
def _conv1_kernel(xpad_ref, w_ref, y_ref, sum_ref, ssq_ref, im_ref):
    # xpad_ref : (1, Cin, Hp+2, Wp+2) bf16  zero-padded pooled input (one image)
    # w_ref    : (Cout, 9*Cin)        bf16  conv1 weights, im2col row order t*Cin + c
    # y_ref    : (1, Cout, M)         bf16  raw conv1 output (pre-BN), lane-dense store
    # sum/ssq  : (1, Cout, 1)         f32   per-image BN1 partial statistics
    # im_ref   : (9*Cin, M)           bf16  im2col scratch
    _, Cin, Hpad, Wpad = xpad_ref.shape
    Hp, Wp = Hpad - 2, Wpad - 2
    M = Hp * Wp

    # im2col: 9 shifted windows of the (already padded) input, stacked on the K axis.
    for t in range(9):
        dy, dx = t // 3, t % 3
        win = xpad_ref[0, :, dy:dy + Hp, dx:dx + Wp]          # (Cin, Hp, Wp)
        im_ref[t * Cin:(t + 1) * Cin, :] = win.reshape(Cin, M)

    # Single MXU matmul (K = 9*Cin), f32 accumulation in registers, single lane-dense store.
    acc = jnp.dot(w_ref[...], im_ref[...], preferred_element_type=jnp.float32)  # (Cout, M)
    y_ref[0] = acc.astype(y_ref.dtype)

    # Exact per-image BN1 partial statistics from the f32 accumulator.
    sum_ref[0] = jnp.sum(acc, axis=1, keepdims=True)
    ssq_ref[0] = jnp.sum(acc * acc, axis=1, keepdims=True)


# --------------------------------------------------------------------------------------
# Kernel 2: BN1 + ReLU (fused) + Conv2 (3x3, pad=1) + BN2 partial stats.  Grid over batch.
# --------------------------------------------------------------------------------------
def _conv2_kernel(y_ref, sc_ref, sh_ref, w_ref, z_ref, sum_ref, ssq_ref, pad_ref, im_ref):
    # y_ref   : (1, Cmid, M)          bf16  raw conv1 output
    # sc/sh   : (Cmid, 1)             f32   folded BN1 scale / shift
    # w_ref   : (Cout, 9*Cmid)        bf16  conv2 weights
    # z_ref   : (1, Cout, M)          f32   raw conv2 output (pre-BN2), lane-dense store
    # sum/ssq : (1, Cout, 1)          f32   per-image BN2 partial statistics
    # pad_ref : (Cmid, Hp+2, Wp+2)    bf16  zero-padded conv2 input scratch
    # im_ref  : (9*Cmid, M)           bf16  im2col scratch
    _, Cmid, M = y_ref.shape
    Hp = pad_ref.shape[1] - 2
    Wp = pad_ref.shape[2] - 2

    # Fused BN1 (exact batch stats) + ReLU, cast once to bf16 for the MXU.
    a = jnp.maximum(sc_ref[...] * y_ref[0] + sh_ref[...], 0.0).astype(jnp.bfloat16)  # (Cmid, M)

    # Rewrite the padded scratch every step (keeps the batch axis fully parallel).
    pad_ref[...] = jnp.zeros_like(pad_ref)
    pad_ref[:, 1:Hp + 1, 1:Wp + 1] = a.reshape(Cmid, Hp, Wp)

    for t in range(9):
        dy, dx = t // 3, t % 3
        win = pad_ref[:, dy:dy + Hp, dx:dx + Wp]              # (Cmid, Hp, Wp)
        im_ref[t * Cmid:(t + 1) * Cmid, :] = win.reshape(Cmid, M)

    acc = jnp.dot(w_ref[...], im_ref[...], preferred_element_type=jnp.float32)  # (Cout, M)
    z_ref[0] = acc
    sum_ref[0] = jnp.sum(acc, axis=1, keepdims=True)
    ssq_ref[0] = jnp.sum(acc * acc, axis=1, keepdims=True)


# --------------------------------------------------------------------------------------
# Wrapper
# --------------------------------------------------------------------------------------
def down_forward(x_nchw, params):
    """x_nchw: (N, Cin, H, W) float32, H and W even. Returns (N, Cout, H//2, W//2) f32."""
    # Conv biases are exactly cancelled by training-mode BN mean subtraction -> folded out.
    w1, _b1, g1, be1, w2, _b2, g2, be2 = params
    N, Cin, H, W = x_nchw.shape
    assert H % 2 == 0 and W % 2 == 0, "MaxPool2d(2) path assumes even spatial dims"
    Hp, Wp = H // 2, W // 2
    M = Hp * Wp
    Cout = w1.shape[-1]
    Mtot = float(N * M)

    # ---- MaxPool2d(2) + zero halo in XLA, on bf16 (max commutes with the monotone cast).
    xb = x_nchw.astype(jnp.bfloat16)
    xp = jnp.max(xb.reshape(N, Cin, Hp, 2, Wp, 2), axis=(3, 5))       # (N, Cin, Hp, Wp)
    xpad = jnp.pad(xp, ((0, 0), (0, 0), (1, 1), (1, 1)))              # (N, Cin, Hp+2, Wp+2)

    # Conv weights as (Cout, 9*Cin) bf16 matrices, rows ordered (dy*3+dx)*Cin + c.
    w1m = jnp.transpose(w1, (3, 0, 1, 2)).reshape(Cout, 9 * Cin).astype(jnp.bfloat16)
    w2m = jnp.transpose(w2, (3, 0, 1, 2)).reshape(Cout, 9 * Cout).astype(jnp.bfloat16)

    stat_spec = pl.BlockSpec((1, Cout, 1), lambda n: (n, 0, 0))
    stat_shape = jax.ShapeDtypeStruct((N, Cout, 1), jnp.float32)
    img_spec = pl.BlockSpec((1, Cout, M), lambda n: (n, 0, 0))

    # ---------------- Kernel 1: conv1 (im2col + one MXU matmul) + BN1 partial stats ----
    y1, s1, ss1 = pl.pallas_call(
        _conv1_kernel,
        grid=(N,),
        in_specs=[
            pl.BlockSpec((1, Cin, Hp + 2, Wp + 2), lambda n: (n, 0, 0, 0)),
            pl.BlockSpec((Cout, 9 * Cin), lambda n: (0, 0)),
        ],
        out_specs=(img_spec, stat_spec, stat_spec),
        out_shape=(
            jax.ShapeDtypeStruct((N, Cout, M), jnp.bfloat16),
            stat_shape, stat_shape,
        ),
        scratch_shapes=[pltpu.VMEM((9 * Cin, M), jnp.bfloat16)],
        compiler_params=pltpu.CompilerParams(dimension_semantics=("parallel",)),
    )(xpad, w1m)

    # BN1 fold (exact batch stats over N*Hp*Wp, biased variance, per-channel glue).
    mean1 = jnp.sum(s1, axis=0)[:, 0] / Mtot
    var1 = jnp.maximum(jnp.sum(ss1, axis=0)[:, 0] / Mtot - mean1 * mean1, 0.0)
    scale1 = (g1 * jax.lax.rsqrt(var1 + EPS)).reshape(Cout, 1)
    shift1 = (be1 - scale1[:, 0] * mean1).reshape(Cout, 1)

    # ---------------- Kernel 2: BN1 + ReLU + conv2 + BN2 partial stats ------------------
    z, s2, ss2 = pl.pallas_call(
        _conv2_kernel,
        grid=(N,),
        in_specs=[
            img_spec,
            pl.BlockSpec((Cout, 1), lambda n: (0, 0)),
            pl.BlockSpec((Cout, 1), lambda n: (0, 0)),
            pl.BlockSpec((Cout, 9 * Cout), lambda n: (0, 0)),
        ],
        out_specs=(img_spec, stat_spec, stat_spec),
        out_shape=(
            jax.ShapeDtypeStruct((N, Cout, M), jnp.float32),
            stat_shape, stat_shape,
        ),
        scratch_shapes=[
            pltpu.VMEM((Cout, Hp + 2, Wp + 2), jnp.bfloat16),   # padded conv2 input
            pltpu.VMEM((9 * Cout, M), jnp.bfloat16),            # im2col
        ],
        compiler_params=pltpu.CompilerParams(dimension_semantics=("parallel",)),
    )(y1, scale1.astype(jnp.float32), shift1.astype(jnp.float32), w2m)

    mean2 = jnp.sum(s2, axis=0)[:, 0] / Mtot
    var2 = jnp.maximum(jnp.sum(ss2, axis=0)[:, 0] / Mtot - mean2 * mean2, 0.0)
    scale2 = g2 * jax.lax.rsqrt(var2 + EPS)
    shift2 = be2 - scale2 * mean2

    # ---------------- BN2 + ReLU + free NCHW reshape: plain XLA (single fused pass) -----
    out = jnp.maximum(z * scale2[None, :, None] + shift2[None, :, None], 0.0)
    return out.reshape(N, Cout, Hp, Wp)


def init_params(key, cin, cout):
    k1, k2, k3, k4 = jax.random.split(key, 4)
    # deterministic synthetic init (Conv2d-ish scaling); BN gamma=1, beta=0 as in __init__
    w1 = jax.random.normal(k1, (3, 3, cin, cout), jnp.float32) / jnp.sqrt(9.0 * cin)
    b1 = jax.random.normal(k2, (cout,), jnp.float32) * 0.05
    g1 = jnp.ones((cout,), jnp.float32)
    be1 = jnp.zeros((cout,), jnp.float32)
    w2 = jax.random.normal(k3, (3, 3, cout, cout), jnp.float32) / jnp.sqrt(9.0 * cout)
    b2 = jax.random.normal(k4, (cout,), jnp.float32) * 0.05
    g2 = jnp.ones((cout,), jnp.float32)
    be2 = jnp.zeros((cout,), jnp.float32)
    return (w1, b1, g1, be1, w2, b2, g2, be2)


if __name__ == "__main__":
    key = jax.random.PRNGKey(0)
    kx, kp = jax.random.split(key)
    N, Cin, H, W = 2, 4, 16, 16
    Cout = 8
    x = jax.random.normal(kx, (N, Cin, H, W), jnp.float32)
    params = init_params(kp, Cin, Cout)

    out = jax.jit(down_forward)(x, params)
    out = jax.block_until_ready(out)
    assert out.shape == (N, Cout, H // 2, W // 2), out.shape
    assert bool(jnp.all(jnp.isfinite(out)))
    assert bool(jnp.all(out >= 0.0))  # post-ReLU
    print("KERNEL_OK")
</pallas_src>

<mosaic_0001>
module attributes {stable_mosaic.version = 11 : i64} {
  func.func @_conv1_kernel(%arg0: i32, %arg1: memref<1x4x10x10xbf16, #tpu.memory_space<vmem>>, %arg2: memref<8x36xbf16, #tpu.memory_space<vmem>>, %arg3: memref<1x8x64xbf16, #tpu.memory_space<vmem>>, %arg4: memref<1x8x1xf32, #tpu.memory_space<vmem>>, %arg5: memref<1x8x1xf32, #tpu.memory_space<vmem>>, %arg6: memref<36x64xbf16, #tpu.memory_space<vmem>>) attributes {dimension_semantics = [#tpu.dimension_semantics<parallel>], iteration_bounds = array<i64: 2>, scalar_prefetch = 0 : i64, scratch_operands = 1 : i64, tpu.core_type = #tpu.core_type<tc>, window_params = [{transform_indices = @transform_0, window_bounds = array<i64: 1, 4, 10, 10>}, {pipeline_mode = #tpu.pipeline_mode<synchronous>, transform_indices = @transform_1, window_bounds = array<i64: 8, 36>}, {transform_indices = @transform_2, window_bounds = array<i64: 1, 8, 64>}, {transform_indices = @transform_3, window_bounds = array<i64: 1, 8, 1>}, {transform_indices = @transform_4, window_bounds = array<i64: 1, 8, 1>}]} {
    %c0 = arith.constant 0 : index
    %c0_0 = arith.constant 0 : index
    %c0_1 = arith.constant 0 : index
    %c0_2 = arith.constant 0 : index
    %0 = vector.load %arg1[%c0, %c0_0, %c0_1, %c0_2] : memref<1x4x10x10xbf16, #tpu.memory_space<vmem>>, vector<1x4x8x8xbf16>
    %1 = vector.shape_cast %0 : vector<1x4x8x8xbf16> to vector<4x8x8xbf16>
    %2 = vector.shape_cast %1 : vector<4x8x8xbf16> to vector<4x64xbf16>
    %c0_3 = arith.constant 0 : index
    %c0_4 = arith.constant 0 : index
    %3 = vector.load %arg6[%c0_3, %c0_4] : memref<36x64xbf16, #tpu.memory_space<vmem>>, vector<4x64xbf16>
    tpu.vector_store %arg6[%c0_3, %c0_4], %2 {strides = array<i32>} : memref<36x64xbf16, #tpu.memory_space<vmem>>, vector<4x64xbf16>,
    %c0_5 = arith.constant 0 : index
    %c0_6 = arith.constant 0 : index
    %c0_7 = arith.constant 0 : index
    %c1 = arith.constant 1 : index
    %4 = vector.load %arg1[%c0_5, %c0_6, %c0_7, %c1] : memref<1x4x10x10xbf16, #tpu.memory_space<vmem>>, vector<1x4x8x8xbf16>
    %5 = vector.shape_cast %4 : vector<1x4x8x8xbf16> to vector<4x8x8xbf16>
    %6 = vector.shape_cast %5 : vector<4x8x8xbf16> to vector<4x64xbf16>
    %c4 = arith.constant 4 : index
    %c0_8 = arith.constant 0 : index
    %7 = vector.load %arg6[%c4, %c0_8] : memref<36x64xbf16, #tpu.memory_space<vmem>>, vector<4x64xbf16>
    tpu.vector_store %arg6[%c4, %c0_8], %6 {strides = array<i32>} : memref<36x64xbf16, #tpu.memory_space<vmem>>, vector<4x64xbf16>,
    %c0_9 = arith.constant 0 : index
    %c0_10 = arith.constant 0 : index
    %c0_11 = arith.constant 0 : index
    %c2 = arith.constant 2 : index
    %8 = vector.load %arg1[%c0_9, %c0_10, %c0_11, %c2] : memref<1x4x10x10xbf16, #tpu.memory_space<vmem>>, vector<1x4x8x8xbf16>
    %9 = vector.shape_cast %8 : vector<1x4x8x8xbf16> to vector<4x8x8xbf16>
    %10 = vector.shape_cast %9 : vector<4x8x8xbf16> to vector<4x64xbf16>
    %c8 = arith.constant 8 : index
    %c0_12 = arith.constant 0 : index
    %11 = vector.load %arg6[%c8, %c0_12] : memref<36x64xbf16, #tpu.memory_space<vmem>>, vector<4x64xbf16>
    tpu.vector_store %arg6[%c8, %c0_12], %10 {strides = array<i32>} : memref<36x64xbf16, #tpu.memory_space<vmem>>, vector<4x64xbf16>,
    %c0_13 = arith.constant 0 : index
    %c0_14 = arith.constant 0 : index
    %c1_15 = arith.constant 1 : index
    %c0_16 = arith.constant 0 : index
    %12 = vector.load %arg1[%c0_13, %c0_14, %c1_15, %c0_16] : memref<1x4x10x10xbf16, #tpu.memory_space<vmem>>, vector<1x4x8x8xbf16>
    %13 = vector.shape_cast %12 : vector<1x4x8x8xbf16> to vector<4x8x8xbf16>
    %14 = vector.shape_cast %13 : vector<4x8x8xbf16> to vector<4x64xbf16>
    %c12 = arith.constant 12 : index
    %c0_17 = arith.constant 0 : index
    %15 = vector.load %arg6[%c12, %c0_17] : memref<36x64xbf16, #tpu.memory_space<vmem>>, vector<4x64xbf16>
    tpu.vector_store %arg6[%c12, %c0_17], %14 {strides = array<i32>} : memref<36x64xbf16, #tpu.memory_space<vmem>>, vector<4x64xbf16>,
    %c0_18 = arith.constant 0 : index
    %c0_19 = arith.constant 0 : index
    %c1_20 = arith.constant 1 : index
    %c1_21 = arith.constant 1 : index
    %16 = vector.load %arg1[%c0_18, %c0_19, %c1_20, %c1_21] : memref<1x4x10x10xbf16, #tpu.memory_space<vmem>>, vector<1x4x8x8xbf16>
    %17 = vector.shape_cast %16 : vector<1x4x8x8xbf16> to vector<4x8x8xbf16>
    %18 = vector.shape_cast %17 : vector<4x8x8xbf16> to vector<4x64xbf16>
    %c16 = arith.constant 16 : index
    %c0_22 = arith.constant 0 : index
    %19 = vector.load %arg6[%c16, %c0_22] : memref<36x64xbf16, #tpu.memory_space<vmem>>, vector<4x64xbf16>
    tpu.vector_store %arg6[%c16, %c0_22], %18 {strides = array<i32>} : memref<36x64xbf16, #tpu.memory_space<vmem>>, vector<4x64xbf16>,
    %c0_23 = arith.constant 0 : index
    %c0_24 = arith.constant 0 : index
    %c1_25 = arith.constant 1 : index
    %c2_26 = arith.constant 2 : index
    %20 = vector.load %arg1[%c0_23, %c0_24, %c1_25, %c2_26] : memref<1x4x10x10xbf16, #tpu.memory_space<vmem>>, vector<1x4x8x8xbf16>
    %21 = vector.shape_cast %20 : vector<1x4x8x8xbf16> to vector<4x8x8xbf16>
    %22 = vector.shape_cast %21 : vector<4x8x8xbf16> to vector<4x64xbf16>
    %c20 = arith.constant 20 : index
    %c0_27 = arith.constant 0 : index
    %23 = vector.load %arg6[%c20, %c0_27] : memref<36x64xbf16, #tpu.memory_space<vmem>>, vector<4x64xbf16>
    tpu.vector_store %arg6[%c20, %c0_27], %22 {strides = array<i32>} : memref<36x64xbf16, #tpu.memory_space<vmem>>, vector<4x64xbf16>,
    %c0_28 = arith.constant 0 : index
    %c0_29 = arith.constant 0 : index
    %c2_30 = arith.constant 2 : index
    %c0_31 = arith.constant 0 : index
    %24 = vector.load %arg1[%c0_28, %c0_29, %c2_30, %c0_31] : memref<1x4x10x10xbf16, #tpu.memory_space<vmem>>, vector<1x4x8x8xbf16>
    %25 = vector.shape_cast %24 : vector<1x4x8x8xbf16> to vector<4x8x8xbf16>
    %26 = vector.shape_cast %25 : vector<4x8x8xbf16> to vector<4x64xbf16>
    %c24 = arith.constant 24 : index
    %c0_32 = arith.constant 0 : index
    %27 = vector.load %arg6[%c24, %c0_32] : memref<36x64xbf16, #tpu.memory_space<vmem>>, vector<4x64xbf16>
    tpu.vector_store %arg6[%c24, %c0_32], %26 {strides = array<i32>} : memref<36x64xbf16, #tpu.memory_space<vmem>>, vector<4x64xbf16>,
    %c0_33 = arith.constant 0 : index
    %c0_34 = arith.constant 0 : index
    %c2_35 = arith.constant 2 : index
    %c1_36 = arith.constant 1 : index
    %28 = vector.load %arg1[%c0_33, %c0_34, %c2_35, %c1_36] : memref<1x4x10x10xbf16, #tpu.memory_space<vmem>>, vector<1x4x8x8xbf16>
    %29 = vector.shape_cast %28 : vector<1x4x8x8xbf16> to vector<4x8x8xbf16>
    %30 = vector.shape_cast %29 : vector<4x8x8xbf16> to vector<4x64xbf16>
    %c28 = arith.constant 28 : index
    %c0_37 = arith.constant 0 : index
    %31 = vector.load %arg6[%c28, %c0_37] : memref<36x64xbf16, #tpu.memory_space<vmem>>, vector<4x64xbf16>
    tpu.vector_store %arg6[%c28, %c0_37], %30 {strides = array<i32>} : memref<36x64xbf16, #tpu.memory_space<vmem>>, vector<4x64xbf16>,
    %c0_38 = arith.constant 0 : index
    %c0_39 = arith.constant 0 : index
    %c2_40 = arith.constant 2 : index
    %c2_41 = arith.constant 2 : index
    %32 = vector.load %arg1[%c0_38, %c0_39, %c2_40, %c2_41] : memref<1x4x10x10xbf16, #tpu.memory_space<vmem>>, vector<1x4x8x8xbf16>
    %33 = vector.shape_cast %32 : vector<1x4x8x8xbf16> to vector<4x8x8xbf16>
    %34 = vector.shape_cast %33 : vector<4x8x8xbf16> to vector<4x64xbf16>
    %c32 = arith.constant 32 : index
    %c0_42 = arith.constant 0 : index
    %35 = vector.load %arg6[%c32, %c0_42] : memref<36x64xbf16, #tpu.memory_space<vmem>>, vector<4x64xbf16>
    tpu.vector_store %arg6[%c32, %c0_42], %34 {strides = array<i32>} : memref<36x64xbf16, #tpu.memory_space<vmem>>, vector<4x64xbf16>,
    %c0_43 = arith.constant 0 : index
    %c0_44 = arith.constant 0 : index
    %36 = vector.load %arg2[%c0_43, %c0_44] : memref<8x36xbf16, #tpu.memory_space<vmem>>, vector<8x36xbf16>
    %c0_45 = arith.constant 0 : index
    %c0_46 = arith.constant 0 : index
    %37 = vector.load %arg6[%c0_45, %c0_46] : memref<36x64xbf16, #tpu.memory_space<vmem>>, vector<36x64xbf16>
    %cst = arith.constant dense<0.000000e+00> : vector<8x64xf32>
    %38 = tpu.matmul %36, %37, %cst {dimension_numbers = #tpu.dot_dimension_numbers<[1], [0], [0], [1], [0, 0, 1, 1], [], []>} : vector<8x36xbf16>, vector<36x64xbf16>, vector<8x64xf32> -> vector<8x64xf32>
    %39 = arith.truncf %38 : vector<8x64xf32> to vector<8x64xbf16>
    %c0_47 = arith.constant 0 : index
    %c0_48 = arith.constant 0 : index
    %c0_49 = arith.constant 0 : index
    %40 = vector.load %arg3[%c0_47, %c0_48, %c0_49] : memref<1x8x64xbf16, #tpu.memory_space<vmem>>, vector<1x8x64xbf16>
    %41 = vector.shape_cast %40 : vector<1x8x64xbf16> to vector<8x64xbf16>
    %42 = vector.shape_cast %39 : vector<8x64xbf16> to vector<1x8x64xbf16>
    tpu.vector_store %arg3[%c0_47, %c0_48, %c0_49], %42 {strides = array<i32>} : memref<1x8x64xbf16, #tpu.memory_space<vmem>>, vector<1x8x64xbf16>,
    %cst_50 = arith.constant dense<0.000000e+00> : vector<8xf32>
    %43 = vector.multi_reduction <add>, %38, %cst_50 [1] : vector<8x64xf32> to vector<8xf32>
    %44 = vector.shape_cast %43 : vector<8xf32> to vector<8x1xf32>
    %c0_51 = arith.constant 0 : index
    %c0_52 = arith.constant 0 : index
    %c0_53 = arith.constant 0 : index
    %45 = vector.load %arg4[%c0_51, %c0_52, %c0_53] : memref<1x8x1xf32, #tpu.memory_space<vmem>>, vector<1x8x1xf32>
    %46 = vector.shape_cast %45 : vector<1x8x1xf32> to vector<8x1xf32>
    %47 = vector.shape_cast %44 : vector<8x1xf32> to vector<1x8x1xf32>
    tpu.vector_store %arg4[%c0_51, %c0_52, %c0_53], %47 {strides = array<i32>} : memref<1x8x1xf32, #tpu.memory_space<vmem>>, vector<1x8x1xf32>,
    %48 = arith.mulf %38, %38 : vector<8x64xf32>
    %cst_54 = arith.constant dense<0.000000e+00> : vector<8xf32>
    %49 = vector.multi_reduction <add>, %48, %cst_54 [1] : vector<8x64xf32> to vector<8xf32>
    %50 = vector.shape_cast %49 : vector<8xf32> to vector<8x1xf32>
    %c0_55 = arith.constant 0 : index
    %c0_56 = arith.constant 0 : index
    %c0_57 = arith.constant 0 : index
    %51 = vector.load %arg5[%c0_55, %c0_56, %c0_57] : memref<1x8x1xf32, #tpu.memory_space<vmem>>, vector<1x8x1xf32>
    %52 = vector.shape_cast %51 : vector<1x8x1xf32> to vector<8x1xf32>
    %53 = vector.shape_cast %50 : vector<8x1xf32> to vector<1x8x1xf32>
    tpu.vector_store %arg5[%c0_55, %c0_56, %c0_57], %53 {strides = array<i32>} : memref<1x8x1xf32, #tpu.memory_space<vmem>>, vector<1x8x1xf32>,
    return
  }
  func.func @transform_0(%arg0: i32) -> (i32, i32, i32, i32) {
    %c0_i32 = arith.constant 0 : i32
    %c0_i32_0 = arith.constant 0 : i32
    %c0_i32_1 = arith.constant 0 : i32
    %c0_i32_2 = arith.constant 0 : i32
    return %arg0, %c0_i32, %c0_i32_0, %c0_i32_1 : i32, i32, i32, i32
  }
  func.func @transform_1(%arg0: i32) -> (i32, i32) {
    %c0_i32 = arith.constant 0 : i32
    %c0_i32_0 = arith.constant 0 : i32
    %c0_i32_1 = arith.constant 0 : i32
    return %c0_i32, %c0_i32_0 : i32, i32
  }
  func.func @transform_2(%arg0: i32) -> (i32, i32, i32) {
    %c0_i32 = arith.constant 0 : i32
    %c0_i32_0 = arith.constant 0 : i32
    %c0_i32_1 = arith.constant 0 : i32
    return %arg0, %c0_i32, %c0_i32_0 : i32, i32, i32
  }
  func.func @transform_3(%arg0: i32) -> (i32, i32, i32) {
    %c0_i32 = arith.constant 0 : i32
    %c0_i32_0 = arith.constant 0 : i32
    %c0_i32_1 = arith.constant 0 : i32
    return %arg0, %c0_i32, %c0_i32_0 : i32, i32, i32
  }
  func.func @transform_4(%arg0: i32) -> (i32, i32, i32) {
    %c0_i32 = arith.constant 0 : i32
    %c0_i32_0 = arith.constant 0 : i32
    %c0_i32_1 = arith.constant 0 : i32
    return %arg0, %c0_i32, %c0_i32_0 : i32, i32, i32
  }
}

module attributes {stable_mosaic.version = 11 : i64} {
  func.func @_conv2_kernel(%arg0: i32, %arg1: memref<1x8x64xbf16, #tpu.memory_space<vmem>>, %arg2: memref<8x1xf32, #tpu.memory_space<vmem>>, %arg3: memref<8x1xf32, #tpu.memory_space<vmem>>, %arg4: memref<8x72xbf16, #tpu.memory_space<vmem>>, %arg5: memref<1x8x64xf32, #tpu.memory_space<vmem>>, %arg6: memref<1x8x1xf32, #tpu.memory_space<vmem>>, %arg7: memref<1x8x1xf32, #tpu.memory_space<vmem>>, %arg8: memref<8x10x10xbf16, #tpu.memory_space<vmem>>, %arg9: memref<72x64xbf16, #tpu.memory_space<vmem>>) attributes {dimension_semantics = [#tpu.dimension_semantics<parallel>], iteration_bounds = array<i64: 2>, scalar_prefetch = 0 : i64, scratch_operands = 2 : i64, tpu.core_type = #tpu.core_type<tc>, window_params = [{transform_indices = @transform_0, window_bounds = array<i64: 1, 8, 64>}, {pipeline_mode = #tpu.pipeline_mode<synchronous>, transform_indices = @transform_1, window_bounds = array<i64: 8, 1>}, {pipeline_mode = #tpu.pipeline_mode<synchronous>, transform_indices = @transform_2, window_bounds = array<i64: 8, 1>}, {pipeline_mode = #tpu.pipeline_mode<synchronous>, transform_indices = @transform_3, window_bounds = array<i64: 8, 72>}, {transform_indices = @transform_4, window_bounds = array<i64: 1, 8, 64>}, {transform_indices = @transform_5, window_bounds = array<i64: 1, 8, 1>}, {transform_indices = @transform_6, window_bounds = array<i64: 1, 8, 1>}]} {
    %c0 = arith.constant 0 : index
    %c0_0 = arith.constant 0 : index
    %0 = vector.load %arg2[%c0, %c0_0] : memref<8x1xf32, #tpu.memory_space<vmem>>, vector<8x1xf32>
    %c0_1 = arith.constant 0 : index
    %c0_2 = arith.constant 0 : index
    %c0_3 = arith.constant 0 : index
    %1 = vector.load %arg1[%c0_1, %c0_2, %c0_3] : memref<1x8x64xbf16, #tpu.memory_space<vmem>>, vector<1x8x64xbf16>
    %2 = vector.shape_cast %1 : vector<1x8x64xbf16> to vector<8x64xbf16>
    %3 = arith.extf %2 : vector<8x64xbf16> to vector<8x64xf32>
    %4 = vector.broadcast %0 : vector<8x1xf32> to vector<8x64xf32>
    %5 = arith.mulf %4, %3 : vector<8x64xf32>
    %c0_4 = arith.constant 0 : index
    %c0_5 = arith.constant 0 : index
    %6 = vector.load %arg3[%c0_4, %c0_5] : memref<8x1xf32, #tpu.memory_space<vmem>>, vector<8x1xf32>
    %7 = vector.broadcast %6 : vector<8x1xf32> to vector<8x64xf32>
    %8 = arith.addf %5, %7 : vector<8x64xf32>
    %cst = arith.constant 0.000000e+00 : f32
    %9 = vector.broadcast %cst : f32 to vector<8x64xf32>
    %10 = arith.maximumf %8, %9 : vector<8x64xf32>
    %11 = arith.truncf %10 : vector<8x64xf32> to vector<8x64xbf16>
    %cst_6 = arith.constant 0.000000e+00 : bf16
    %12 = vector.broadcast %cst_6 : bf16 to vector<8x10x10xbf16>
    %c0_7 = arith.constant 0 : index
    %c0_8 = arith.constant 0 : index
    %c0_9 = arith.constant 0 : index
    %13 = vector.load %arg8[%c0_7, %c0_8, %c0_9] : memref<8x10x10xbf16, #tpu.memory_space<vmem>>, vector<8x10x10xbf16>
    tpu.vector_store %arg8[%c0_7, %c0_8, %c0_9], %12 {strides = array<i32>} : memref<8x10x10xbf16, #tpu.memory_space<vmem>>, vector<8x10x10xbf16>,
    %14 = vector.shape_cast %11 : vector<8x64xbf16> to vector<8x8x8xbf16>
    %c0_10 = arith.constant 0 : index
    %c1 = arith.constant 1 : index
    %c1_11 = arith.constant 1 : index
    %15 = vector.load %arg8[%c0_10, %c1, %c1_11] : memref<8x10x10xbf16, #tpu.memory_space<vmem>>, vector<8x8x8xbf16>
    tpu.vector_store %arg8[%c0_10, %c1, %c1_11], %14 {strides = array<i32>} : memref<8x10x10xbf16, #tpu.memory_space<vmem>>, vector<8x8x8xbf16>,
    %c0_12 = arith.constant 0 : index
    %c0_13 = arith.constant 0 : index
    %c0_14 = arith.constant 0 : index
    %16 = vector.load %arg8[%c0_12, %c0_13, %c0_14] : memref<8x10x10xbf16, #tpu.memory_space<vmem>>, vector<8x8x8xbf16>
    %17 = vector.shape_cast %16 : vector<8x8x8xbf16> to vector<8x64xbf16>
    %c0_15 = arith.constant 0 : index
    %c0_16 = arith.constant 0 : index
    %18 = vector.load %arg9[%c0_15, %c0_16] : memref<72x64xbf16, #tpu.memory_space<vmem>>, vector<8x64xbf16>
    tpu.vector_store %arg9[%c0_15, %c0_16], %17 {strides = array<i32>} : memref<72x64xbf16, #tpu.memory_space<vmem>>, vector<8x64xbf16>,
    %c0_17 = arith.constant 0 : index
    %c0_18 = arith.constant 0 : index
    %c1_19 = arith.constant 1 : index
    %19 = vector.load %arg8[%c0_17, %c0_18, %c1_19] : memref<8x10x10xbf16, #tpu.memory_space<vmem>>, vector<8x8x8xbf16>
    %20 = vector.shape_cast %19 : vector<8x8x8xbf16> to vector<8x64xbf16>
    %c8 = arith.constant 8 : index
    %c0_20 = arith.constant 0 : index
    %21 = vector.load %arg9[%c8, %c0_20] : memref<72x64xbf16, #tpu.memory_space<vmem>>, vector<8x64xbf16>
    tpu.vector_store %arg9[%c8, %c0_20], %20 {strides = array<i32>} : memref<72x64xbf16, #tpu.memory_space<vmem>>, vector<8x64xbf16>,
    %c0_21 = arith.constant 0 : index
    %c0_22 = arith.constant 0 : index
    %c2 = arith.constant 2 : index
    %22 = vector.load %arg8[%c0_21, %c0_22, %c2] : memref<8x10x10xbf16, #tpu.memory_space<vmem>>, vector<8x8x8xbf16>
    %23 = vector.shape_cast %22 : vector<8x8x8xbf16> to vector<8x64xbf16>
    %c16 = arith.constant 16 : index
    %c0_23 = arith.constant 0 : index
    %24 = vector.load %arg9[%c16, %c0_23] : memref<72x64xbf16, #tpu.memory_space<vmem>>, vector<8x64xbf16>
    tpu.vector_store %arg9[%c16, %c0_23], %23 {strides = array<i32>} : memref<72x64xbf16, #tpu.memory_space<vmem>>, vector<8x64xbf16>,
    %c0_24 = arith.constant 0 : index
    %c1_25 = arith.constant 1 : index
    %c0_26 = arith.constant 0 : index
    %25 = vector.load %arg8[%c0_24, %c1_25, %c0_26] : memref<8x10x10xbf16, #tpu.memory_space<vmem>>, vector<8x8x8xbf16>
    %26 = vector.shape_cast %25 : vector<8x8x8xbf16> to vector<8x64xbf16>
    %c24 = arith.constant 24 : index
    %c0_27 = arith.constant 0 : index
    %27 = vector.load %arg9[%c24, %c0_27] : memref<72x64xbf16, #tpu.memory_space<vmem>>, vector<8x64xbf16>
    tpu.vector_store %arg9[%c24, %c0_27], %26 {strides = array<i32>} : memref<72x64xbf16, #tpu.memory_space<vmem>>, vector<8x64xbf16>,
    %c0_28 = arith.constant 0 : index
    %c1_29 = arith.constant 1 : index
    %c1_30 = arith.constant 1 : index
    %28 = vector.load %arg8[%c0_28, %c1_29, %c1_30] : memref<8x10x10xbf16, #tpu.memory_space<vmem>>, vector<8x8x8xbf16>
    %29 = vector.shape_cast %28 : vector<8x8x8xbf16> to vector<8x64xbf16>
    %c32 = arith.constant 32 : index
    %c0_31 = arith.constant 0 : index
    %30 = vector.load %arg9[%c32, %c0_31] : memref<72x64xbf16, #tpu.memory_space<vmem>>, vector<8x64xbf16>
    tpu.vector_store %arg9[%c32, %c0_31], %29 {strides = array<i32>} : memref<72x64xbf16, #tpu.memory_space<vmem>>, vector<8x64xbf16>,
    %c0_32 = arith.constant 0 : index
    %c1_33 = arith.constant 1 : index
    %c2_34 = arith.constant 2 : index
    %31 = vector.load %arg8[%c0_32, %c1_33, %c2_34] : memref<8x10x10xbf16, #tpu.memory_space<vmem>>, vector<8x8x8xbf16>
    %32 = vector.shape_cast %31 : vector<8x8x8xbf16> to vector<8x64xbf16>
    %c40 = arith.constant 40 : index
    %c0_35 = arith.constant 0 : index
    %33 = vector.load %arg9[%c40, %c0_35] : memref<72x64xbf16, #tpu.memory_space<vmem>>, vector<8x64xbf16>
    tpu.vector_store %arg9[%c40, %c0_35], %32 {strides = array<i32>} : memref<72x64xbf16, #tpu.memory_space<vmem>>, vector<8x64xbf16>,
    %c0_36 = arith.constant 0 : index
    %c2_37 = arith.constant 2 : index
    %c0_38 = arith.constant 0 : index
    %34 = vector.load %arg8[%c0_36, %c2_37, %c0_38] : memref<8x10x10xbf16, #tpu.memory_space<vmem>>, vector<8x8x8xbf16>
    %35 = vector.shape_cast %34 : vector<8x8x8xbf16> to vector<8x64xbf16>
    %c48 = arith.constant 48 : index
    %c0_39 = arith.constant 0 : index
    %36 = vector.load %arg9[%c48, %c0_39] : memref<72x64xbf16, #tpu.memory_space<vmem>>, vector<8x64xbf16>
    tpu.vector_store %arg9[%c48, %c0_39], %35 {strides = array<i32>} : memref<72x64xbf16, #tpu.memory_space<vmem>>, vector<8x64xbf16>,
    %c0_40 = arith.constant 0 : index
    %c2_41 = arith.constant 2 : index
    %c1_42 = arith.constant 1 : index
    %37 = vector.load %arg8[%c0_40, %c2_41, %c1_42] : memref<8x10x10xbf16, #tpu.memory_space<vmem>>, vector<8x8x8xbf16>
    %38 = vector.shape_cast %37 : vector<8x8x8xbf16> to vector<8x64xbf16>
    %c56 = arith.constant 56 : index
    %c0_43 = arith.constant 0 : index
    %39 = vector.load %arg9[%c56, %c0_43] : memref<72x64xbf16, #tpu.memory_space<vmem>>, vector<8x64xbf16>
    tpu.vector_store %arg9[%c56, %c0_43], %38 {strides = array<i32>} : memref<72x64xbf16, #tpu.memory_space<vmem>>, vector<8x64xbf16>,
    %c0_44 = arith.constant 0 : index
    %c2_45 = arith.constant 2 : index
    %c2_46 = arith.constant 2 : index
    %40 = vector.load %arg8[%c0_44, %c2_45, %c2_46] : memref<8x10x10xbf16, #tpu.memory_space<vmem>>, vector<8x8x8xbf16>
    %41 = vector.shape_cast %40 : vector<8x8x8xbf16> to vector<8x64xbf16>
    %c64 = arith.constant 64 : index
    %c0_47 = arith.constant 0 : index
    %42 = vector.load %arg9[%c64, %c0_47] : memref<72x64xbf16, #tpu.memory_space<vmem>>, vector<8x64xbf16>
    tpu.vector_store %arg9[%c64, %c0_47], %41 {strides = array<i32>} : memref<72x64xbf16, #tpu.memory_space<vmem>>, vector<8x64xbf16>,
    %c0_48 = arith.constant 0 : index
    %c0_49 = arith.constant 0 : index
    %43 = vector.load %arg4[%c0_48, %c0_49] : memref<8x72xbf16, #tpu.memory_space<vmem>>, vector<8x72xbf16>
    %c0_50 = arith.constant 0 : index
    %c0_51 = arith.constant 0 : index
    %44 = vector.load %arg9[%c0_50, %c0_51] : memref<72x64xbf16, #tpu.memory_space<vmem>>, vector<72x64xbf16>
    %cst_52 = arith.constant dense<0.000000e+00> : vector<8x64xf32>
    %45 = tpu.matmul %43, %44, %cst_52 {dimension_numbers = #tpu.dot_dimension_numbers<[1], [0], [0], [1], [0, 0, 1, 1], [], []>} : vector<8x72xbf16>, vector<72x64xbf16>, vector<8x64xf32> -> vector<8x64xf32>
    %c0_53 = arith.constant 0 : index
    %c0_54 = arith.constant 0 : index
    %c0_55 = arith.constant 0 : index
    %46 = vector.load %arg5[%c0_53, %c0_54, %c0_55] : memref<1x8x64xf32, #tpu.memory_space<vmem>>, vector<1x8x64xf32>
    %47 = vector.shape_cast %46 : vector<1x8x64xf32> to vector<8x64xf32>
    %48 = vector.shape_cast %45 : vector<8x64xf32> to vector<1x8x64xf32>
    tpu.vector_store %arg5[%c0_53, %c0_54, %c0_55], %48 {strides = array<i32>} : memref<1x8x64xf32, #tpu.memory_space<vmem>>, vector<1x8x64xf32>,
    %cst_56 = arith.constant dense<0.000000e+00> : vector<8xf32>
    %49 = vector.multi_reduction <add>, %45, %cst_56 [1] : vector<8x64xf32> to vector<8xf32>
    %50 = vector.shape_cast %49 : vector<8xf32> to vector<8x1xf32>
    %c0_57 = arith.constant 0 : index
    %c0_58 = arith.constant 0 : index
    %c0_59 = arith.constant 0 : index
    %51 = vector.load %arg6[%c0_57, %c0_58, %c0_59] : memref<1x8x1xf32, #tpu.memory_space<vmem>>, vector<1x8x1xf32>
    %52 = vector.shape_cast %51 : vector<1x8x1xf32> to vector<8x1xf32>
    %53 = vector.shape_cast %50 : vector<8x1xf32> to vector<1x8x1xf32>
    tpu.vector_store %arg6[%c0_57, %c0_58, %c0_59], %53 {strides = array<i32>} : memref<1x8x1xf32, #tpu.memory_space<vmem>>, vector<1x8x1xf32>,
    %54 = arith.mulf %45, %45 : vector<8x64xf32>
    %cst_60 = arith.constant dense<0.000000e+00> : vector<8xf32>
    %55 = vector.multi_reduction <add>, %54, %cst_60 [1] : vector<8x64xf32> to vector<8xf32>
    %56 = vector.shape_cast %55 : vector<8xf32> to vector<8x1xf32>
    %c0_61 = arith.constant 0 : index
    %c0_62 = arith.constant 0 : index
    %c0_63 = arith.constant 0 : index
    %57 = vector.load %arg7[%c0_61, %c0_62, %c0_63] : memref<1x8x1xf32, #tpu.memory_space<vmem>>, vector<1x8x1xf32>
    %58 = vector.shape_cast %57 : vector<1x8x1xf32> to vector<8x1xf32>
    %59 = vector.shape_cast %56 : vector<8x1xf32> to vector<1x8x1xf32>
    tpu.vector_store %arg7[%c0_61, %c0_62, %c0_63], %59 {strides = array<i32>} : memref<1x8x1xf32, #tpu.memory_space<vmem>>, vector<1x8x1xf32>,
    return
  }
  func.func @transform_0(%arg0: i32) -> (i32, i32, i32) {
    %c0_i32 = arith.constant 0 : i32
    %c0_i32_0 = arith.constant 0 : i32
    %c0_i32_1 = arith.constant 0 : i32
    return %arg0, %c0_i32, %c0_i32_0 : i32, i32, i32
  }
  func.func @transform_1(%arg0: i32) -> (i32, i32) {
    %c0_i32 = arith.constant 0 : i32
    %c0_i32_0 = arith.constant 0 : i32
    %c0_i32_1 = arith.constant 0 : i32
    return %c0_i32, %c0_i32_0 : i32, i32
  }
  func.func @transform_2(%arg0: i32) -> (i32, i32) {
    %c0_i32 = arith.constant 0 : i32
    %c0_i32_0 = arith.constant 0 : i32
    %c0_i32_1 = arith.constant 0 : i32
    return %c0_i32, %c0_i32_0 : i32, i32
  }
  func.func @transform_3(%arg0: i32) -> (i32, i32) {
    %c0_i32 = arith.constant 0 : i32
    %c0_i32_0 = arith.constant 0 : i32
    %c0_i32_1 = arith.constant 0 : i32
    return %c0_i32, %c0_i32_0 : i32, i32
  }
  func.func @transform_4(%arg0: i32) -> (i32, i32, i32) {
    %c0_i32 = arith.constant 0 : i32
    %c0_i32_0 = arith.constant 0 : i32
    %c0_i32_1 = arith.constant 0 : i32
    return %arg0, %c0_i32, %c0_i32_0 : i32, i32, i32
  }
  func.func @transform_5(%arg0: i32) -> (i32, i32, i32) {
    %c0_i32 = arith.constant 0 : i32
    %c0_i32_0 = arith.constant 0 : i32
    %c0_i32_1 = arith.constant 0 : i32
    return %arg0, %c0_i32, %c0_i32_0 : i32, i32, i32
  }
  func.func @transform_6(%arg0: i32) -> (i32, i32, i32) {
    %c0_i32 = arith.constant 0 : i32
    %c0_i32_0 = arith.constant 0 : i32
    %c0_i32_1 = arith.constant 0 : i32
    return %arg0, %c0_i32, %c0_i32_0 : i32, i32, i32
  }
}

</mosaic_0001>

<bundles_post_ra>
// kernel: down_forward.2
= control target key start
LH: loop header
LB: loop body
LE: loop exit
PB: predicated region body
PF: predicated region fallthrough
CT: control target
= control target key end

     0   :  { %s2207_s15 = smov 0   ;;  %s2883_s0 = inlined_call_operand.vmem [shape: bf16[2,4,10,10], index: 0, kind: input, shape index: {}]   ;;  %s2884_s1 = inlined_call_operand.vmem [shape: bf16[8,36], index: 1, kind: input, shape index: {}]   ;;  %s2885_s2 = inlined_call_operand.vmem [shape: bf16[2,8,64], index: 2, kind: output, shape index: {0}]   ;;  %s2886_s3 = inlined_call_operand.vmem [shape: f32[2,8,1], index: 3, kind: output, shape index: {1}]   ;;  %s2887_s4 = inlined_call_operand.vmem [shape: f32[2,8,1], index: 4, kind: output, shape index: {2}]  }
   0x1 LB: > { %s1991_s16 = sadd.s32 4294967295, %s2167_s15   ;;  %p1995_p0 = scmp.ge.s32.totalorder %s2167_s15, 1  ;;  %s2167_s15 = sphi %s2207_s15, %s15_s15  }
   0x2   : > { %p167_p1 = scmp.lt.s32.totalorder %s2167_s15, 3 }
   0x4   : > { %p168_p2 = pnand %p1995_p0, %p167_p1 }
   0x5   : > { %p200_p3 = scmp.lt.s32.totalorder (!%p168_p2), %s1991_s16, 1  ;;  %s2169_s21 = smov (!%p168_p2), 126  }
   0x6   : > { %171 = sbr.rel (%p168_p2) target bundleno = 746 (0x2ea), region = 28  ;;  %s2170_s22 = smov (!%p168_p2), 127  }
   0x7   : > { %s2173_s23 = smov (!%p168_p2), 8   ;;  %s2174_s24 = smov (!%p168_p2), 16  }
   0x8   : > { %s2175_s25 = smov (!%p168_p2), 24   ;;  %s2176_s26 = smov (!%p168_p2), 32  }
   0x9   : > { %s2177_s27 = smov (!%p168_p2), 40   ;;  %s2178_s28 = smov (!%p168_p2), 48  }
   0xa   : > { %s2179_s29 = smov (!%p168_p2), 56  }
   0xb   : > { %s2893_s16 = smov (!%p200_p3, %s1991_s16), 1  ;;  %vm1294_vm0 = vcmask 1042432   ;;  %vm1295_vm1 = vcmask 1046532   ;;  %vm671_vm3 = vsmask.f32 3328  ;;  %v238_v35 = vlaneseq }
   0xc   : > { %s2086_s17 = sshll.u32 %s2893_s16, 5  ;;  %vm2223_vm2 = vmor %vm1294_vm0, %vm1295_vm1  ;;  %vm672_vm4 = vsmask.f32 7440  ;;  %vm337_vm6 = vcmask 64512   ;;  %vm341_vm7 = vcmask 130048   ;;  %vm344_vm8 = vcmask 195584  }
   0xd   : > { %s2221_s20 = scalar_lea.vmem %s2883_s0, %s2086_s17  ;;  %vm2266_vm5 = vmor %vm671_vm3, %vm672_vm4  ;;  %vm347_vm9 = vcmask 261120   ;;  %vm350_vm10 = vcmask 326656   ;;  %vm2181_vm11 = vmmov 0   ;;  %vm356_vm12 = vcmask 457728   ;;  %s1998_s6 = sshll.u32 %s2893_s16, 2 }
   0xe   : > { %v1625_v1 = vld [vmem:[%s2221_s20 + $0x10] sm:$0xe]  ;;  %v1626_v2 = vld [vmem:[%s2221_s20 + $0x14] sm:$0x1]  ;;  %v1621_v3 = vld [vmem:[%s2221_s20] sm:$0xe]  ;;  %s208_s9 = scalar_lea.vmem %s2885_s2, %s1998_s6 }
   0xf   : > { %v2071_v4 = vrot.slane %v1625_v1, 9  ;;  %v1647_v5 = vrot.slane %v1626_v2, 5  ;;  %v1622_v6 = vld [vmem:[%s2221_s20 + $0x4] sm:$0x1]  ;;  %v2069_v7 = vrot.slane %v1621_v3, 9  ;;  %vm353_vm13 = vcmask 392192  }
  0x10   : > { %v1639_v8 = vrot.slane %v1622_v6, 5  ;;  %v1627_v9 = vld [vmem:[%s2221_s20 + $0x18] sm:$0xe]  ;;  %v1628_v10 = vld [vmem:[%s2221_s20 + $0x1c] sm:$0x1]  ;;  %vm360_vm14 = vcmask 517120  }
  0x11   : > { %v1648_v11 = vsel %vm2223_vm2, %v2071_v4, %v1647_v5  ;;  %v2072_v12 = vrot.slane %v1627_v9, 9  ;;  %v1651_v13 = vrot.slane %v1628_v10, 5  ;;  %v1623_v14 = vld [vmem:[%s2221_s20 + $0x8] sm:$0xe]  ;;  %v1624_v15 = vld [vmem:[%s2221_s20 + $0xc] sm:$0x1] }
  0x12   : > { %1657 = vrot.lane.b32.xlu1 %v1648_v11, %s2169_s21  ;;  %v1640_v16 = vsel %vm2223_vm2, %v2069_v7, %v1639_v8  ;;  %v2070_v17 = vrot.slane %v1623_v14, 9  ;;  %v1643_v18 = vrot.slane %v1624_v15, 5  ;;  %v1447_v19 = vld [vmem:[%s2221_s20 + $0x8] sm:$0xe]  ;;  %v1448_v20 = vld [vmem:[%s2221_s20 + $0xc] sm:$0x1] }
  0x13   : > { %1653 = vrot.lane.b32.xlu0 %v1640_v16, %s2169_s21  ;;  %v1652_v21 = vsel %vm2223_vm2, %v2072_v12, %v1651_v13  ;;  %v2058_v22 = vrot.slane %v1447_v19, 9  ;;  %v1467_v23 = vrot.slane %v1448_v20, 5  ;;  %v1445_v24 = vld [vmem:[%s2221_s20] sm:$0xe]  ;;  %v1446_v25 = vld [vmem:[%s2221_s20 + $0x4] sm:$0x1] }
  0x14   : > { %v1644_v26 = vsel %vm2223_vm2, %v2070_v17, %v1643_v18  ;;  %v2057_v27 = vrot.slane %v1445_v24, 9  ;;  %v1463_v28 = vrot.slane %v1446_v25, 5  ;;  %v1072_v29 = vld [vmem:[%s2221_s20 + $0x8] sm:$0xf]  ;;  %v1073_v30 = vld [vmem:[%s2221_s20 + $0xc] sm:$0x1] }
  0x15   : > { %v1093_v31 = vshrl.u32 %v1072_v29, 16  ;;  %v1096_v32 = vshll.u32 %v1072_v29, 16  ;;  %v1102_v33 = vshll.u32 %v1073_v30, 16  ;;  %v1070_v34 = vld [vmem:[%s2221_s20] sm:$0xf]  ;;  %v1468_v36 = vsel %vm2223_vm2, %v2058_v22, %v1467_v23  ;;  %s1999_s10 = sshll.u32 %s2893_s16, 3 }
  0x16   : > { %1659 = vrot.lane.b32.xlu1 %v1652_v21, %s2169_s21  ;;  %v1464_v37 = vsel %vm2223_vm2, %v2057_v27, %v1463_v28  ;;  %v1071_v38 = vld [vmem:[%s2221_s20 + $0x4] sm:$0x1]  ;;  %v1079_v39 = vshrl.u32 %v1070_v34, 16  ;;  %v1082_v40 = vshll.u32 %v1070_v34, 16  ;;  %v1076_v41 = vld [vmem:[%s2221_s20 + $0x18] sm:$0xf]  ;;  %s212_s13 = scalar_lea.vmem %s2886_s3, %s1999_s10  ;;  %s216_s18 = scalar_lea.vmem %s2887_s4, %s1999_s10 }
  0x17   : > { %1655 = vrot.lane.b32.xlu0 %v1644_v26, %s2169_s21  ;;  %v1095_v42 = vrot.slane %v1093_v31, 4  ;;  %v1098_v43 = vrot.slane %v1096_v32, 5  ;;  %v1104_v44 = vrot.slane %v1102_v33, 5  ;;  %v1088_v45 = vshll.u32 %v1071_v38, 16  ;;  %v1077_v46 = vld [vmem:[%s2221_s20 + $0x1c] sm:$0x1] }
  0x18   : > { %v1081_v47 = vrot.slane %v1079_v39, 4  ;;  %v1084_v48 = vrot.slane %v1082_v40, 5  ;;  %v1121_v49 = vshrl.u32 %v1076_v41, 16  ;;  %v1124_v50 = vshll.u32 %v1076_v41, 16  ;;  %v1074_v51 = vld [vmem:[%s2221_s20 + $0x10] sm:$0xf] }
  0x19   : > { %v1099_v52 = vor.u32 %v1098_v43, %v1095_v42  ;;  %v1090_v53 = vrot.slane %v1088_v45, 5  ;;  %v1130_v54 = vshll.u32 %v1077_v46, 16  ;;  %v1075_v55 = vld [vmem:[%s2221_s20 + $0x14] sm:$0x1]  ;;  %v1107_v56 = vshrl.u32 %v1074_v51, 16 }
  0x1a   : > { %1479 = vrot.lane.b32.xlu1 %v1468_v36, %s2170_s22  ;;  %v1085_v58 = vor.u32 %v1084_v48, %v1081_v47  ;;  %v1123_v59 = vrot.slane %v1121_v49, 4  ;;  %v1126_v60 = vrot.slane %v1124_v50, 5  ;;  %v1110_v61 = vshll.u32 %v1074_v51, 16  ;;  %v1451_v62 = vld [vmem:[%s2221_s20 + $0x18] sm:$0xe] }
  0x1b   : > { %1477 = vrot.lane.b32.xlu0 %v1464_v37, %s2170_s22  ;;  %v1100_v63 = vrot.slane %v1099_v52, 4  ;;  %v1109_v1 = vrot.slane %v1107_v56, 4  ;;  %v1116_v2 = vshll.u32 %v1075_v55, 16  ;;  %v1452_v3 = vld [vmem:[%s2221_s20 + $0x1c] sm:$0x1]  ;;  %v1132_v8 = vrot.slane %v1130_v54, 5 }
  0x1c   : > { %v2171_v4 = vmov 1983009808   ;;  %v1086_v6 = vrot.slane %v1085_v58, 4  ;;  %v1127_v7 = vor.u32 %v1126_v60, %v1123_v59  ;;  %v1112_v9 = vrot.slane %v1110_v61, 5  ;;  %v1449_v10 = vld [vmem:[%s2221_s20 + $0x10] sm:$0xe] }
  0x1d   : > { %v2273_v5 = vunpack.c.l.s4 %v2171_v4  ;;  %v1105_v11 = vsel %vm2266_vm5, %v1100_v63, %v1104_v44  ;;  %v1118_v12 = vrot.slane %v1116_v2, 5  ;;  %v2060_v13 = vrot.slane %v1451_v62, 9  ;;  %v1450_v14 = vld [vmem:[%s2221_s20 + $0x14] sm:$0x1]  ;;  %v868_v21 = vld [vmem:[%s2221_s20 + $0x8] sm:$0xf] }
  0x1e   : > { %1136 = vrot.lane.b32.xlu1 %v1105_v11, %s2169_s21  ;;  %v1091_v15 = vsel %vm2266_vm5, %v1086_v6, %v1090_v53  ;;  %v1128_v16 = vrot.slane %v1127_v7, 4  ;;  %v1113_v17 = vor.u32 %v1112_v9, %v1109_v1  ;;  %v1475_v18 = vrot.slane %v1452_v3, 5  ;;  %v869_v27 = vld [vmem:[%s2221_s20 + $0xc] sm:$0x1]  ;;  %v866_v29 = vld [vmem:[%s2221_s20] sm:$0xf] }
  0x1f   : > { %1134 = vrot.lane.b32.xlu0 %v1091_v15, %s2169_s21  ;;  %v2059_v19 = vrot.slane %v1449_v10, 9  ;;  %v1471_v20 = vrot.slane %v1450_v14, 5  ;;  %v2284_v22 = vshrl.u32 %v238_v35, 7  ;;  %v2172_v23 = vmov 1934713408  }
  0x20   : > { %v2286_v24 = vunpack.c.l.s4 %v2172_v23  ;;  %v1133_v25 = vsel %vm2266_vm5, %v1128_v16, %v1132_v8  ;;  %v1114_v26 = vrot.slane %v1113_v17, 4  ;;  %v889_v28 = vshrl.u32 %v868_v21, 16  ;;  %v867_v33 = vld [vmem:[%s2221_s20 + $0x4] sm:$0x1]  ;;  %v872_v40 = vld [vmem:[%s2221_s20 + $0x18] sm:$0xf] }
  0x21   : > { %v237_v30 = vunpack.c.0.s8 %v2273_v5  ;;  %v892_v31 = vshll.u32 %v868_v21, 16  ;;  %v898_v32 = vshll.u32 %v869_v27, 16  ;;  %v875_v34 = vshrl.u32 %v866_v29, 16  ;;  %v873_v41 = vld [vmem:[%s2221_s20 + $0x1c] sm:$0x1] }
  0x22   : > { %v878_v35 = vshll.u32 %v866_v29, 16  ;;  %1140 = vrot.lane.b32.xlu1 %v1133_v25, %s2169_s21  ;;  %v1119_v36 = vsel %vm2266_vm5, %v1114_v26, %v1118_v12  ;;  %v1476_v37 = vsel %vm2223_vm2, %v2060_v13, %v1475_v18  ;;  %v891_v38 = vrot.slane %v889_v28, 4  ;;  %v870_v46 = vld [vmem:[%s2221_s20 + $0x10] sm:$0xf]  ;;  %v871_v51 = vld [vmem:[%s2221_s20 + $0x14] sm:$0x1] }
  0x23   : > { %v884_v39 = vshll.u32 %v867_v33, 16  ;;  %1138 = vrot.lane.b32.xlu0 %v1119_v36, %s2169_s21  ;;  %v1472_v42 = vsel %vm2223_vm2, %v2059_v19, %v1471_v20  ;;  %v894_v43 = vrot.slane %v892_v31, 5  ;;  %v877_v44 = vrot.slane %v875_v34, 4  ;;  %v363_v61 = vld [vmem:[%s2221_s20 + $0x8] sm:$0xf] }
  0x24   : > { %v880_v45 = vrot.slane %v878_v35, 5  ;;  %v2305_v47 = vrot.slane %v898_v32, 5  ;;  %v917_v48 = vshrl.u32 %v872_v40, 16  ;;  %v920_v49 = vshll.u32 %v872_v40, 16  ;;  %v362_v3 = vld [vmem:[%s2221_s20] sm:$0xf] }
  0x25   : > { %v926_v50 = vshll.u32 %v873_v41, 16  ;;  %v895_v52 = vor.u32 %v894_v43, %v891_v38  ;;  %v903_v54 = vshrl.u32 %v870_v46, 16  ;;  %v906_v55 = vshll.u32 %v870_v46, 16  ;;  %v663_v5 = vld [vmem:[%s2221_s20] sm:$0xf] }
  0x26   : > { %v881_v53 = vor.u32 %v880_v45, %v877_v44  ;;  %1483 = vrot.lane.b32.xlu1 %v1476_v37, %s2170_s22  ;;  %v2309_v56 = vrot.slane %v884_v39, 5  ;;  %v919_v58 = vrot.slane %v917_v48, 4  ;;  %v922_v59 = vrot.slane %v920_v49, 5  ;;  %v664_v6 = vld [vmem:[%s2221_s20 + $0x4] sm:$0x1] }
  0x27   : > { %v912_v60 = vshll.u32 %v871_v51, 16  ;;  %1481 = vrot.lane.b32.xlu0 %v1472_v42, %s2170_s22  ;;  %v896_v62 = vrot.slane %v895_v52, 4  ;;  %v905_v1 = vrot.slane %v903_v54, 4  ;;  %v908_v2 = vrot.slane %v906_v55, 5  ;;  %v365_v7 = vld [vmem:[%s2221_s20 + $0x18] sm:$0xf] }
  0x28   : > { %v2313_v63 = vrot.slane %v881_v53, 4  ;;  %v923_v4 = vor.u32 %v922_v59, %v919_v58  ;;  %v2319_v8 = vrot.slane %v926_v50, 5  ;;  %v2322_v10 = vsub.s32 %v237_v30, %v2284_v22  ;;  %v665_v12 = vld [vmem:[%s2221_s20 + $0x8] sm:$0xf]  ;;  %v666_v13 = vld [vmem:[%s2221_s20 + $0xc] sm:$0x1] }
  0x29   : > { %v909_v9 = vor.u32 %v908_v2, %v905_v1  ;;  %v254_v11 = vunpack.c.0.s8 %v2286_v24  ;;  %v364_v14 = vld [vmem:[%s2221_s20 + $0x10] sm:$0xf]  ;;  %v901_v15 = vsel %vm2266_vm5, %v896_v62, %v2305_v47  ;;  %v2334_v17 = vrot.slane %v912_v60, 5  ;;  %v668_v21 = vld [vmem:[%s2221_s20 + $0x14] sm:$0x1] }
  0x2a   : > { %372 = vrot.lane.b32.xlu1 %v363_v61, %s2170_s22  ;;  %v2332_v16 = vrot.slane %v923_v4, 4  ;;  %v667_v18 = vld [vmem:[%s2221_s20 + $0x10] sm:$0xf]  ;;  %v675_v19 = vshrl.u32 %v663_v5, 16  ;;  %v887_v20 = vsel %vm2266_vm5, %v2313_v63, %v2309_v56  ;;  %v678_v23 = vshll.u32 %v663_v5, 16 }
  0x2b   : > { %370 = vrot.lane.b32.xlu0 %v362_v3, %s2170_s22  ;;  %v684_v25 = vshll.u32 %v664_v6, 16  ;;  %v689_v26 = vshrl.u32 %v665_v12, 16  ;;  %v910_v27 = vrot.slane %v909_v9, 4  ;;  %v669_v28 = vld [vmem:[%s2221_s20 + $0x18] sm:$0xf]  ;;  %v692_v30 = vshll.u32 %v665_v12, 16 }
  0x2c   : > { %v677_v29 = vrot.slane %v675_v19, 4  ;;  %v698_v31 = vshll.u32 %v666_v13, 16  ;;  %v929_v32 = vsel %vm2266_vm5, %v2332_v16, %v2319_v8  ;;  %v670_v33 = vld [vmem:[%s2221_s20 + $0x1c] sm:$0x1]  ;;  %v680_v34 = vrot.slane %v678_v23, 5 }
  0x2d   : > { %v686_v35 = vrot.slane %v684_v25, 5  ;;  %v691_v36 = vrot.slane %v689_v26, 4  ;;  %v694_v37 = vrot.slane %v692_v30, 5  ;;  %v703_v39 = vshrl.u32 %v667_v18, 16  ;;  %v1278_v41 = vld [vmem:[%s2221_s20] sm:$0xe] }
  0x2e   : > { %376 = vrot.lane.b32.xlu1 %v365_v7, %s2170_s22  ;;  %v700_v38 = vrot.slane %v698_v31, 5  ;;  %v706_v40 = vshll.u32 %v667_v18, 16  ;;  %v681_v42 = vor.u32 %v680_v34, %v677_v29  ;;  %v712_v43 = vshll.u32 %v668_v21, 16  ;;  %v1279_v46 = vld [vmem:[%s2221_s20 + $0x4] sm:$0x1] }
  0x2f   : > { %374 = vrot.lane.b32.xlu0 %v364_v14, %s2170_s22  ;;  %v717_v44 = vshrl.u32 %v669_v28, 16  ;;  %v720_v45 = vshll.u32 %v669_v28, 16  ;;  %v695_v47 = vor.u32 %v694_v37, %v691_v36  ;;  %v705_v48 = vrot.slane %v703_v39, 4  ;;  %v1280_v51 = vld [vmem:[%s2221_s20 + $0x8] sm:$0xe] }
  0x30   : > { %v708_v49 = vrot.slane %v706_v40, 5  ;;  %v726_v50 = vshll.u32 %v670_v33, 16  ;;  %v915_v52 = vsel %vm2266_vm5, %v910_v27, %v2334_v17  ;;  %v682_v53 = vrot.slane %v681_v42, 4  ;;  %v1281_v56 = vld [vmem:[%s2221_s20 + $0xc] sm:$0x1] }
  0x31   : > { %v719_v54 = vrot.slane %v717_v44, 4  ;;  %v722_v55 = vrot.slane %v720_v45, 5  ;;  %v696_v58 = vrot.slane %v695_v47, 4  ;;  %v714_v60 = vrot.slane %v712_v43, 5  ;;  %v1282_v62 = vld [vmem:[%s2221_s20 + $0x10] sm:$0xe] }
  0x32   : > { %932 = vrot.lane.b32.xlu1 %v901_v15, %s2170_s22  ;;  %v709_v59 = vor.u32 %v708_v49, %v705_v48  ;;  %v728_v61 = vrot.slane %v726_v50, 5  ;;  %v687_v63 = vsel %vm2266_vm5, %v682_v53, %v686_v35  ;;  %v1283_v2 = vld [vmem:[%s2221_s20 + $0x14] sm:$0x1]  ;;  %v1284_v3 = vld [vmem:[%s2221_s20 + $0x18] sm:$0xe]  ;;  %v2046_v4 = vrot.slane %v1278_v41, 9 }
  0x33   : > { %930 = vrot.lane.b32.xlu0 %v887_v20, %s2170_s22  ;;  %v723_v1 = vor.u32 %v722_v55, %v719_v54  ;;  %v1299_v5 = vrot.slane %v1279_v46, 5  ;;  %v701_v6 = vsel %vm2266_vm5, %v696_v58, %v700_v38  ;;  %v733_v8 = vshrl.u32 %v687_v63, 16  ;;  %v1285_v14 = vld [vmem:[%s2221_s20 + $0x1c] sm:$0x1]  ;;  %v516_v21 = vld [vmem:[%s2221_s20 + $0x8] sm:$0xf] }
  0x34   : > { %v710_v7 = vrot.slane %v709_v59, 4  ;;  %v2047_v9 = vrot.slane %v1280_v51, 9  ;;  %v734_v13 = vshrl.u32 %v701_v6, 16  ;;  %v1303_v16 = vrot.slane %v1281_v56, 5  ;;  %v515_v28 = vld [vmem:[%s2221_s20] sm:$0xf] }
  0x35   : > { %v724_v12 = vrot.slane %v723_v1, 4  ;;  %v1300_v15 = vsel %vm2223_vm2, %v2046_v4, %v1299_v5  ;;  %v2048_v18 = vrot.slane %v1282_v62, 9  ;;  %v1307_v19 = vrot.slane %v1283_v2, 5  ;;  %v218_v39 = vld [vmem:[%s2221_s20] sm:$0xf] }
  0x36   : > { %936 = vrot.lane.b32.xlu1 %v929_v32, %s2170_s22  ;;  %v715_v17 = vsel %vm2266_vm5, %v710_v7, %v714_v60  ;;  %v2049_v20 = vrot.slane %v1284_v3, 9  ;;  %v735_v25 = vpack.i.b16 %v734_v13, %v733_v8  ;;  %v1304_v27 = vsel %vm2223_vm2, %v2047_v9, %v1303_v16  ;;  %v518_v40 = vld [vmem:[%s2221_s20 + $0x18] sm:$0xf]  ;;  %v219_v44 = vld [vmem:[%s2221_s20 + $0x8] sm:$0xf] }
  0x37   : > { %934 = vrot.lane.b32.xlu0 %v915_v52, %s2170_s22  ;;  %v729_v23 = vsel %vm2266_vm5, %v724_v12, %v728_v61  ;;  %v739_v26 = vshrl.u32 %v715_v17, 16  ;;  %v1308_v30 = vsel %vm2223_vm2, %v2048_v18, %v1307_v19  ;;  %v1311_v31 = vrot.slane %v1285_v14, 5  ;;  %v517_v45 = vld [vmem:[%s2221_s20 + $0x10] sm:$0xf]  ;;  %v221_v61 = vld [vmem:[%s2221_s20 + $0x18] sm:$0xf] }
  0x38   : > { %v740_v29 = vshrl.u32 %v729_v23, 16  ;;  %v1315_v32 = vpack.i.b16 %v1304_v27, %v1300_v15  ;;  %v732_v33 = vpack.i.b16 %v701_v6, %v687_v63  ;;  %v738_v34 = vpack.i.b16 %v729_v23, %v715_v17  ;;  %v220_v59 = vld [vmem:[%s2221_s20 + $0x10] sm:$0xf] }
  0x39   : > { %v1316_v57 = vshrl.u32 %v1300_v15, 16  ;;  %v2384_v36 = vrot.slane %v735_v25, %v2322_v10  ;;  %v1312_v37 = vsel %vm2223_vm2, %v2049_v20, %v1311_v31  ;;  %v1317_v38 = vshrl.u32 %v1304_v27, 16 }
  0x3a   : > { %525 = vrot.lane.b32.xlu1 %v516_v21, %s2169_s21  ;;  %v741_v35 = vpack.i.b16 %v740_v29, %v739_v26  ;;  %v1321_v41 = vpack.i.b16 %v1312_v37, %v1308_v30  ;;  %v1332_v42 = vrot.slane %v1315_v32, %v2322_v10  ;;  %v1322_v43 = vshrl.u32 %v1308_v30, 16 }
  0x3b   : > { %523 = vrot.lane.b32.xlu0 %v515_v28, %s2169_s21  ;;  %v2397_v46 = vsub.s32 %v254_v11, %v2284_v22  ;;  %v1318_v0 = vpack.i.b16 %v1317_v38, %v1316_v57  ;;  %v1323_v48 = vshrl.u32 %v1312_v37, 16  ;;  %v749_v50 = vrot.slane %v732_v33, %v2322_v10 }
  0x3c   : > { %v791_v47 = vrot.slane %v741_v35, %v2322_v10  ;;  %v1340_v49 = vrot.slane %v1321_v41, %v2322_v10  ;;  %v757_v51 = vrot.slane %v738_v34, %v2322_v10  ;;  %v225_v52 = vshrl.u32 %v218_v39, 16 }
  0x3d   : > { %v1324_v24 = vpack.i.b16 %v1323_v48, %v1322_v43  ;;  %v1366_v22 = vrot.slane %v1318_v0, %v2322_v10  ;;  %v226_v11 = vshrl.u32 %v219_v44, 16  ;;  %v231_v4 = vshrl.u32 %v220_v59, 16 }
  0x3e   : > { %529 = vrot.lane.b32.xlu1 %v518_v40, %s2169_s21  ;;  %v792_v53 = vcombine.low %v2384_v36, %v791_v47  ;;  %v1341_v54 = vcombine.low %v1332_v42, %v1340_v49  ;;  %v758_v55 = vcombine.low %v749_v50, %v757_v51  ;;  %v759_v2 = vcombine.high %v749_v50, %v757_v51 }
  0x3f   : > { %527 = vrot.lane.b32.xlu0 %v517_v45, %s2169_s21  ;;  %v1374_v58 = vrot.slane %v1324_v24, %v2322_v10  ;;  %v227_v1 = vpack.i.b16 %v226_v11, %v225_v52  ;;  %v232_v7 = vshrl.u32 %v221_v61, 16  ;;  %v224_v8 = vpack.i.b16 %v219_v44, %v218_v39 }
  0x40   : > { %v800_v56 = vrot.slane %v792_v53, %v2397_v46  ;;  %v2411_v60 = vrot.slane %v1341_v54, %v2397_v46  ;;  %v2415_v3 = vrot.slane %v758_v55, %v2397_v46  ;;  %v230_v9 = vpack.i.b16 %v221_v61, %v220_v59 }
  0x41   : > { %v1375_v63 = vcombine.low %v1366_v22, %v1374_v58  ;;  %v233_v13 = vpack.i.b16 %v232_v7, %v231_v4  ;;  %v2422_v14 = vrot.slane %v227_v1, %v2322_v10  ;;  %v773_v16 = vrot.slane %v759_v2, %v2397_v46 }
  0x42   : > { %v2023_v62 = vcombine.low %v800_v56, %v800_v56  ;;  %v2111_v5 = vcombine.high %v2411_v60, %v2411_v60  ;;  %v2100_v15 = vcombine.high %v800_v56, %v800_v56  ;;  %v1342_v17 = vcombine.high %v1332_v42, %v1340_v49 }
  0x43   : > { %v1383_v6 = vrot.slane %v1375_v63, %v2397_v46  ;;  %v2099_v18 = vcombine.high %v2415_v3, %v2415_v3  ;;  %v2430_v19 = vrot.slane %v233_v13, %v2322_v10  ;;  %v2433_v20 = vrot.slane %v224_v8, %v2322_v10 }
  0x44   : > { %813 = vrot.lane.b32.xlu0 %v2023_v62, %s2173_s23  ;;  %v2436_v21 = vrot.slane %v230_v9, %v2322_v10  ;;  %v2026_v25 = vcombine.low %v773_v16, %v773_v16  ;;  %v2441_v26 = vrot.slane %v1342_v17, %v2397_v46  ;;  %v793_v27 = vcombine.high %v2384_v36, %v791_v47 }
  0x45   : > { %v2050_v12 = vcombine.low %v1383_v6, %v1383_v6  ;;  %v284_v23 = vcombine.low %v2422_v14, %v2430_v19  ;;  %v2112_v28 = vcombine.high %v1383_v6, %v1383_v6  ;;  %v1376_v33 = vcombine.high %v1366_v22, %v1374_v58 }
  0x46   : > { %v250_v30 = vcombine.low %v2433_v20, %v2436_v21  ;;  %v2053_v31 = vcombine.low %v2441_v26, %v2441_v26  ;;  %v2454_v32 = vrot.slane %v793_v27, %v2397_v46  ;;  %v2101_v39 = vcombine.high %v773_v16, %v773_v16 }
  0x47   : > { %1396 = vrot.lane.b32.xlu1 %v2050_v12, %s2173_s23  ;;  %v2447_v29 = vrot.slane %v284_v23, %v2397_v46  ;;  %v2467_v36 = vrot.slane %v1376_v33, %v2397_v46  ;;  %vm513_vm15 = vcmask 519170   ;;  %vm1818_vm0 = vcmask 1041408  }
  0x48   : > { %1401 = vrot.lane.b32.xlu0 %v2111_v5, %s2174_s24  ;;  %v2461_v57 = vrot.slane %v250_v30, %v2397_v46  ;;  %v2027_v35 = vcombine.low %v2454_v32, %v2454_v32  ;;  %vm1814_vm1 = vcmask 293888   ;;  %vm1865_vm2 = vcmask 523264  }
  0x49   : > { %v2001_v34 = vcombine.low %v2447_v29, %v2447_v29  ;;  %v2054_v38 = vcombine.low %v2467_v36, %v2467_v36  ;;  %vm1863_vm3 = vcmask 519168   ;;  %vm1869_vm4 = vcmask 7168  }
  0x4a   : > { %v2087_v37 = vcombine.high %v2461_v57, %v2461_v57 }
  0x4b   : > { %818 = vrot.lane.b32.xlu1 %v2099_v18, %s2174_s24 }
  0x4c   : > { %823 = vrot.lane.b32.xlu0 %v2100_v15, %s2175_s25 }
  0x4f   : > { %1406 = vrot.lane.b32.xlu1 %v2112_v28, %s2175_s25 }
  0x50   : > { %828 = vrot.lane.b32.xlu0 %v2026_v25, %s2176_s26 }
  0x53   : > { %305 = vrot.lane.b32.xlu1 %v2001_v34, %s2173_s23 }
  0x54   : > { %1411 = vrot.lane.b32.xlu0 %v2053_v31, %s2176_s26 }
  0x57   : > { %310 = vrot.lane.b32.xlu1 %v2087_v37, %s2174_s24 }
  0x58   : > { %833 = vrot.lane.b32.xlu0 %v2027_v35, %s2177_s27 }
  0x5c   : > { %1416 = vrot.lane.b32.xlu0 %v2054_v38, %s2177_s27 }
  0x60   : > { %838 = vrot.lane.b32.xlu0 %v2101_v39, %s2178_s28 }
  0x84   : > { %v2478_v40 = vpop.permute.xlu1 %1657 }
  0x85   : > { %v2480_v41 = vpop.permute.xlu0 %1653  ;;  %v1670_v7 = vshrl.u32 %v2478_v40, 16 }
  0x86   : > { %v1664_v8 = vshrl.u32 %v2480_v41, 16 }
  0x88   : > { %v2482_v42 = vpop.permute.xlu1 %1659 }
  0x89   : > { %v2484_v43 = vpop.permute.xlu0 %1655  ;;  %v1671_v63 = vshrl.u32 %v2482_v42, 16 }
  0x8a   : > { %v1665_v1 = vshrl.u32 %v2484_v43, 16 }
  0x8b   : > { %v1672_v16 = vpack.i.b16 %v1671_v63, %v1670_v7 }
  0x8c   : > { %v2486_v44 = vpop.permute.xlu1 %1479  ;;  %v1666_v17 = vpack.i.b16 %v1665_v1, %v1664_v8 }
  0x8d   : > { %v2488_v45 = vpop.permute.xlu0 %1477  ;;  %v1489_v39 = vshrl.u32 %v2486_v44, 16 }
  0x90   : > { %v2490_v47 = vpop.permute.xlu1 %1136 }
  0x91   : > { %v1146_v0 = vshrl.u32 %v2490_v47, 16  ;;  %v2493_v48 = vpop.permute.xlu0 %1134 }
  0x92   : > { %v1145_v49 = vshrl.u32 %v2493_v48, 16 }
  0x94   : > { %v1147_v50 = vpack.i.b16 %v1146_v0, %v1145_v49  ;;  %v2496_v51 = vpop.permute.xlu1 %1140  ;;  %v1488_v0 = vshrl.u32 %v2488_v45, 16 }
  0x95   : > { %v1152_v52 = vshrl.u32 %v2496_v51, 16  ;;  %v2499_v53 = vpop.permute.xlu0 %1138 }
  0x96   : > { %v1151_v24 = vshrl.u32 %v2499_v53, 16  ;;  %v2507_v55 = vrot.slane %v1147_v50, %v2322_v10  ;;  %v2536_v50 = vrot.slane %v1672_v16, %v2322_v10  ;;  %v1490_v8 = vpack.i.b16 %v1489_v39, %v1488_v0 }
  0x98   : > { %v1153_v22 = vpack.i.b16 %v1152_v52, %v1151_v24  ;;  %v2502_v11 = vpop.permute.xlu1 %1483  ;;  %v2539_v52 = vrot.slane %v1666_v17, %v2322_v10 }
  0x99   : > { %v2504_v54 = vpop.permute.xlu0 %1481  ;;  %v1495_v30 = vshrl.u32 %v2502_v11, 16 }
  0x9a   : > { %v2510_v56 = vrot.slane %v1153_v22, %v2322_v10  ;;  %v1494_v31 = vshrl.u32 %v2504_v54, 16 }
  0x9c   : > { %v1204_v58 = vcombine.low %v2507_v55, %v2510_v56  ;;  %v1205_v59 = vcombine.high %v2507_v55, %v2510_v56  ;;  %v373_v61 = vpop.permute.xlu1 %372  ;;  %v2114_v56 = vcombine.high %v2467_v36, %v2467_v36 }
  0x9d   : > { %v371_v62 = vpop.permute.xlu0 %370  ;;  %v382_v2 = vshrl.u32 %v373_v61, 16 }
  0x9e   : > { %v380_v4 = vpack.i.b16 %v373_v61, %v371_v62  ;;  %v381_v5 = vshrl.u32 %v371_v62, 16  ;;  %v1496_v62 = vpack.i.b16 %v1495_v30, %v1494_v31  ;;  %v2572_v30 = vrot.slane %v1490_v8, %v2322_v10 }
  0xa0   : > { %v377_v6 = vpop.permute.xlu1 %376  ;;  %v383_v18 = vpack.i.b16 %v382_v2, %v381_v5  ;;  %v397_v23 = vrot.slane %v380_v4, %v2322_v10  ;;  %v2559_v16 = vrot.slane %v1496_v62, %v2322_v10 }
  0xa1   : > { %v388_v9 = vshrl.u32 %v377_v6, 16  ;;  %v375_v12 = vpop.permute.xlu0 %374 }
  0xa2   : > { %v386_v13 = vpack.i.b16 %v377_v6, %v375_v12  ;;  %v387_v15 = vshrl.u32 %v375_v12, 16  ;;  %v431_v24 = vrot.slane %v383_v18, %v2322_v10  ;;  %v1547_v39 = vcombine.low %v2572_v30, %v2559_v16 }
  0xa4   : > { %v389_v25 = vpack.i.b16 %v388_v9, %v387_v15  ;;  %v405_v27 = vrot.slane %v386_v13, %v2322_v10  ;;  %v2522_v28 = vpop.permute.xlu1 %932  ;;  %v1723_v15 = vcombine.low %v2539_v52, %v2536_v50 }
  0xa5   : > { %v942_v33 = vshrl.u32 %v2522_v28, 16  ;;  %v2527_v34 = vpop.permute.xlu0 %930 }
  0xa6   : > { %v406_v35 = vcombine.low %v397_v23, %v405_v27  ;;  %v407_v37 = vcombine.high %v397_v23, %v405_v27  ;;  %v2530_v38 = vrot.slane %v389_v25, %v2322_v10  ;;  %v941_v49 = vshrl.u32 %v2527_v34, 16 }
  0xa8   : > { %v2542_v22 = vpop.permute.xlu1 %936  ;;  %v2545_v61 = vrot.slane %v406_v35, %v2397_v46  ;;  %v943_v63 = vpack.i.b16 %v942_v33, %v941_v49  ;;  %v421_v4 = vrot.slane %v407_v37, %v2397_v46  ;;  %v441_v5 = vcombine.high %v431_v24, %v2530_v38 }
  0xa9   : > { %v948_v1 = vshrl.u32 %v2542_v22, 16  ;;  %v2548_v2 = vpop.permute.xlu0 %934  ;;  %v1731_v49 = vrot.slane %v1723_v15, %v2397_v46  ;;  %v440_v15 = vcombine.low %v431_v24, %v2530_v38 }
  0xaa   : > { %v947_v6 = vshrl.u32 %v2548_v2, 16  ;;  %v2091_v7 = vcombine.high %v2545_v61, %v2545_v61  ;;  %v2011_v9 = vcombine.low %v421_v4, %v421_v4  ;;  %v2563_v18 = vrot.slane %v943_v63, %v2322_v10 }
  0xab   : > { %v2093_v25 = vcombine.high %v421_v4, %v421_v4  ;;  %v2569_v27 = vrot.slane %v441_v5, %v2397_v46 }
  0xac   : > { %v949_v12 = vpack.i.b16 %v948_v1, %v947_v6  ;;  %466 = vrot.lane.b32.xlu0 %v2091_v7, %s2174_s24  ;;  %v526_v13 = vpop.permute.xlu1 %525  ;;  %476 = vrot.lane.b32.xlu1 %v2011_v9, %s2176_s26  ;;  %v2073_v9 = vcombine.low %v1731_v49, %v1731_v49 }
  0xad   : > { %v524_v17 = vpop.permute.xlu0 %523  ;;  %v2012_v4 = vcombine.low %v2569_v27, %v2569_v27  ;;  %v535_v5 = vshrl.u32 %v526_v13, 16 }
  0xae   : > { %v2566_v23 = vrot.slane %v949_v12, %v2322_v10  ;;  %v533_v35 = vpack.i.b16 %v526_v13, %v524_v17  ;;  %v534_v6 = vshrl.u32 %v524_v17, 16  ;;  %v1555_v12 = vrot.slane %v1547_v39, %v2397_v46 }
  0xb0   : > { %v1000_v31 = vcombine.low %v2563_v18, %v2566_v23  ;;  %v1001_v33 = vcombine.high %v2563_v18, %v2566_v23  ;;  %486 = vrot.lane.b32.xlu0 %v2093_v25, %s2178_s28  ;;  %v530_v37 = vpop.permute.xlu1 %529  ;;  %v2585_v7 = vrot.slane %v533_v35, %v2322_v10  ;;  %v1669_v35 = vpack.i.b16 %v2482_v42, %v2478_v40 }
  0xb1   : > { %v528_v0 = vpop.permute.xlu0 %527  ;;  %v541_v62 = vshrl.u32 %v530_v37, 16  ;;  %v2061_v24 = vcombine.low %v1555_v12, %v1555_v12  ;;  %v251_v18 = vcombine.high %v2433_v20, %v2436_v21 }
  0xb2   : > { %v539_v63 = vpack.i.b16 %v530_v37, %v528_v0  ;;  %v540_v1 = vshrl.u32 %v528_v0, 16  ;;  %v1663_v0 = vpack.i.b16 %v2484_v43, %v2480_v41  ;;  %v1688_v41 = vrot.slane %v1669_v35, %v2322_v10 }
  0xb3   : > { %v1008_v55 = vrot.slane %v1000_v31, %v2397_v46  ;;  %v1015_v36 = vrot.slane %v1001_v33, %v2397_v46 }
  0xb4   : > { %v2588_v8 = vrot.slane %v539_v63, %v2322_v10  ;;  %481 = vrot.lane.b32.xlu0 %v2012_v4, %s2177_s27  ;;  %v542_v25 = vpack.i.b16 %v541_v62, %v540_v1  ;;  %v536_v63 = vpack.i.b16 %v535_v5, %v534_v6  ;;  %v448_v1 = vrot.slane %v440_v15, %v2397_v46 }
  0xb5   : > { %v1680_v4 = vrot.slane %v1663_v0, %v2322_v10  ;;  %v1493_v15 = vpack.i.b16 %v2502_v11, %v2504_v54 }
  0xb6   : > { %v559_v37 = vcombine.low %v2585_v7, %v2588_v8  ;;  %v560_v13 = vcombine.high %v2585_v7, %v2588_v8  ;;  %v814_v17 = vpop.permute.xlu0 %813  ;;  %v2606_v38 = vrot.slane %v542_v25, %v2322_v10  ;;  %v2616_v5 = vrot.slane %v536_v63, %v2322_v10 }
  0xb7   : > { %v847_v6 = vsel %vm337_vm6, %v2415_v3, %v814_v17  ;;  %v2008_v35 = vcombine.low %v448_v1, %v448_v1  ;;  %v1487_v3 = vpack.i.b16 %v2486_v44, %v2488_v45  ;;  %v1689_v54 = vcombine.low %v1680_v4, %v1688_v41 }
  0xb8   : > { %1744 = vrot.lane.b32.xlu0 %v2073_v9, %s2173_s23  ;;  %v2603_v39 = vrot.slane %v559_v37, %v2397_v46  ;;  %v1724_v9 = vcombine.high %v2539_v52, %v2536_v50  ;;  %v593_v25 = vcombine.low %v2616_v5, %v2606_v38  ;;  %v2120_v37 = vcombine.high %v1731_v49, %v1731_v49 }
  0xb9   : > { %v1397_v42 = vpop.permute.xlu1 %1396  ;;  %v1512_v50 = vrot.slane %v1493_v15, %v2322_v10  ;;  %v1548_v49 = vcombine.high %v2572_v30, %v2559_v16  ;;  %v2116_v17 = vcombine.high %v1555_v12, %v1555_v12  ;;  %v2648_v16 = vrot.slane %v1689_v54, %v2397_v46 }
  0xba   : > { %v2095_v62 = vcombine.high %v2603_v39, %v2603_v39  ;;  %v1402_v40 = vpop.permute.xlu0 %1401  ;;  %v1430_v43 = vsel %vm337_vm6, %v2411_v60, %v1397_v42  ;;  %v1738_v52 = vrot.slane %v1724_v9, %v2397_v46  ;;  %v1150_v30 = vpack.i.b16 %v2496_v51, %v2499_v53 }
  0xbb   : > { %v1432_v60 = vsel %vm341_vm7, %v1430_v43, %v1402_v40  ;;  %v2640_v40 = vrot.slane %v593_v25, %v2397_v46  ;;  %v1562_v15 = vrot.slane %v1548_v49, %v2397_v46  ;;  %v946_v54 = vpack.i.b16 %v2542_v22, %v2548_v2 }
  0xbc   : > { %1568 = vrot.lane.b32.xlu0 %v2061_v24, %s2173_s23  ;;  %619 = vrot.lane.b32.xlu1 %v2095_v62, %s2174_s24  ;;  %v2092_v62 = vcombine.high %v448_v1, %v448_v1  ;;  %v2077_v9 = vcombine.low %v1738_v52, %v1738_v52  ;;  %v1169_v51 = vrot.slane %v1150_v30, %v2322_v10 }
  0xbd   : > { %v819_v63 = vpop.permute.xlu1 %818  ;;  %v2016_v1 = vcombine.low %v2640_v40, %v2640_v40  ;;  %v2065_v53 = vcombine.low %v1562_v15, %v1562_v15  ;;  %v2118_v22 = vcombine.high %v1562_v15, %v1562_v15  ;;  %v2035_v7 = vcombine.low %v1015_v36, %v1015_v36 }
  0xbe   : > { %v824_v0 = vpop.permute.xlu0 %823  ;;  %v849_v24 = vsel %vm341_vm7, %v847_v6, %v819_v63  ;;  %v1504_v6 = vrot.slane %v1487_v3, %v2322_v10  ;;  %v2088_v8 = vcombine.high %v2447_v29, %v2447_v29  ;;  %v2096_v33 = vcombine.high %v2640_v40, %v2640_v40 }
  0xbf   : > { %v851_v11 = vsel %vm344_vm8, %v849_v24, %v824_v0  ;;  %v2119_v0 = vcombine.high %v2648_v16, %v2648_v16  ;;  %v285_v29 = vcombine.high %v2422_v14, %v2430_v19 }
  0xc0   : > { %1754 = vrot.lane.b32.xlu0 %v2120_v37, %s2175_s25  ;;  %461 = vrot.lane.b32.xlu1 %v2008_v35, %s2173_s23  ;;  %v1513_v12 = vcombine.low %v1504_v6, %v1512_v50  ;;  %v1144_v37 = vpack.i.b16 %v2490_v47, %v2493_v48  ;;  %v1690_v35 = vcombine.high %v1680_v4, %v1688_v41 }
  0xc1   : > { %v1407_v45 = vpop.permute.xlu1 %1406  ;;  %v2122_v48 = vcombine.high %v1738_v52, %v1738_v52 }
  0xc2   : > { %v829_v44 = vpop.permute.xlu0 %828  ;;  %v1434_v43 = vsel %vm344_vm8, %v1432_v60, %v1407_v45  ;;  %v2664_v63 = vrot.slane %v1513_v12, %v2397_v46  ;;  %v1161_v47 = vrot.slane %v1144_v37, %v2322_v10  ;;  %v1704_v41 = vrot.slane %v1690_v35, %v2397_v46 }
  0xc3   : > { %v853_v42 = vsel %vm347_vm9, %v851_v11, %v829_v44  ;;  %v1514_v11 = vcombine.high %v1504_v6, %v1512_v50  ;;  %v940_v44 = vpack.i.b16 %v2522_v28, %v2527_v34  ;;  %v965_v45 = vrot.slane %v946_v54, %v2322_v10 }
  0xc4   : > { %1578 = vrot.lane.b32.xlu0 %v2116_v17, %s2175_s25  ;;  %471 = vrot.lane.b32.xlu1 %v2092_v62, %s2175_s25  ;;  %v1170_v4 = vcombine.low %v1161_v47, %v1169_v51  ;;  %v2115_v49 = vcombine.high %v2664_v63, %v2664_v63  ;;  %v1171_v52 = vcombine.high %v1161_v47, %v1169_v51 }
  0xc5   : > { %v2076_v50 = vcombine.low %v1704_v41, %v1704_v41  ;;  %v2121_v12 = vcombine.high %v1704_v41, %v1704_v41  ;;  %v1219_v37 = vrot.slane %v1205_v59, %v2397_v46  ;;  %v2113_v59 = vcombine.high %v2441_v26, %v2441_v26  ;;  %v2777_v14 = vpop.permute.xlu1 %305 }
  0xc6   : > { %v1412_v60 = vpop.permute.xlu0 %1411  ;;  %v2686_v2 = vrot.slane %v1170_v4, %v2397_v46  ;;  %v2094_v41 = vcombine.high %v2569_v27, %v2569_v27  ;;  %v2102_v26 = vcombine.high %v2454_v32, %v2454_v32  ;;  %v2031_v27 = vcombine.low %v1008_v55, %v1008_v55 }
  0xc7   : > { %v1436_v25 = vsel %vm347_vm9, %v1434_v43, %v1412_v60  ;;  %v957_v43 = vrot.slane %v940_v44, %v2322_v10  ;;  %v2180_v10 = vmov 0.0   ;;  %v2042_v35 = vcombine.low %v1219_v37, %v1219_v37 }
  0xc8   : > { %1764 = vrot.lane.b32.xlu0 %v2077_v9, %s2177_s27  ;;  %614 = vrot.lane.b32.xlu1 %v2016_v1, %s2173_s23  ;;  %v2107_v34 = vcombine.high %v2686_v2, %v2686_v2  ;;  %v1185_v9 = vrot.slane %v1171_v52, %v2397_v46  ;;  %v574_v32 = vrot.slane %v560_v13, %v2397_v46 }
  0xc9   : > { %v966_v28 = vcombine.low %v957_v43, %v965_v45  ;;  %2127 = vmatprep.subr.bf16.mxu0 %v2180_v10  ;;  %v967_v15 = vcombine.high %v957_v43, %v965_v45  ;;  %v2104_v54 = vcombine.high %v1008_v55, %v1008_v55  ;;  %v299_v52 = vrot.slane %v285_v29, %v2397_v46  ;;  %v2781_v45 = vpop.permute.xlu1 %310 }
  0xca   : > { %v834_v24 = vpop.permute.xlu0 %833  ;;  %v2041_v30 = vcombine.low %v1185_v9, %v1185_v9  ;;  %v2109_v51 = vcombine.high %v1185_v9, %v1185_v9  ;;  %v2019_v31 = vcombine.low %v574_v32, %v574_v32  ;;  %v2097_v13 = vcombine.high %v574_v32, %v574_v32  ;;  %2133 = vmatprep.mubr.msk.bf16.mxu0 %vm2181_vm11, %v2180_v10 }
  0xcb   : > { %v2667_v3 = vsel %vm350_vm10, %v853_v42, %v834_v24  ;;  %v1528_v42 = vrot.slane %v1514_v11, %v2397_v46  ;;  %v2698_v1 = vrot.slane %v966_v28, %v2397_v46  ;;  %v2005_v20 = vcombine.low %v299_v52, %v299_v52 }
  0xcc   : > { %1588 = vrot.lane.b32.xlu0 %v2065_v53, %s2177_s27  ;;  %1749 = vrot.lane.b32.xlu1 %v2119_v0, %s2174_s24  ;;  %v981_v53 = vrot.slane %v967_v15, %v2397_v46  ;;  %v2110_v0 = vcombine.high %v1219_v37, %v1219_v37  ;;  %v2090_v40 = vcombine.high %v299_v52, %v299_v52 }
  0xcd   : > { %v2064_v6 = vcombine.low %v1528_v42, %v1528_v42  ;;  %v2103_v60 = vcombine.high %v2698_v1, %v2698_v1 }
  0xce   : > { %v1417_v17 = vpop.permute.xlu0 %1416  ;;  %v2034_v24 = vcombine.low %v981_v53, %v981_v53  ;;  %v2105_v47 = vcombine.high %v981_v53, %v981_v53 }
  0xcf   : > { %v2678_v62 = vsel %vm350_vm10, %v1436_v25, %v1417_v17  ;;  %v2117_v25 = vcombine.high %v1528_v42, %v1528_v42  ;;  %v2106_v17 = vcombine.high %v1015_v36, %v1015_v36 }
  0xd0   : > { %1774 = vrot.lane.b32.xlu0 %v2122_v48, %s2179_s29  ;;  %1573 = vrot.lane.b32.xlu1 %v2115_v49, %s2174_s24  ;;  %v1212_v48 = vrot.slane %v1204_v58, %v2397_v46  ;;  %v594_v58 = vcombine.high %v2616_v5, %v2606_v38  ;;  %v265_v5 = vrot.slane %v251_v18, %v2397_v46 }
  0xd2   : > { %v2038_v4 = vcombine.low %v1212_v48, %v1212_v48  ;;  %v2108_v11 = vcombine.high %v1212_v48, %v1212_v48  ;;  %v608_v49 = vrot.slane %v594_v58, %v2397_v46  ;;  %v2004_v44 = vcombine.low %v265_v5, %v265_v5 }
  0xd3   : > { %v2089_v21 = vcombine.high %v265_v5, %v265_v5 }
  0xd4   : > { %1598 = vrot.lane.b32.xlu0 %v2118_v22, %s2179_s29  ;;  %1759 = vrot.lane.b32.xlu1 %v2076_v50, %s2176_s26  ;;  %v2020_v38 = vcombine.low %v608_v49, %v608_v49  ;;  %v2098_v23 = vcombine.high %v608_v49, %v608_v49  ;;  %v2773_v50 = vpop.permute.xlu0 %838 }
  0xd8   : > { %1230 = vrot.lane.b32.xlu0 %v2107_v34, %s2174_s24  ;;  %1583 = vrot.lane.b32.xlu1 %v2064_v6, %s2176_s26 }
  0xdc   : > { %1240 = vrot.lane.b32.xlu0 %v2041_v30, %s2176_s26  ;;  %1769 = vrot.lane.b32.xlu1 %v2121_v12, %s2178_s28 }
  0xe0   : > { %1026 = vrot.lane.b32.xlu0 %v2103_v60, %s2174_s24  ;;  %1593 = vrot.lane.b32.xlu1 %v2117_v25, %s2178_s28 }
  0xe4   : > { %1245 = vrot.lane.b32.xlu0 %v2042_v35, %s2177_s27  ;;  %1250 = vrot.lane.b32.xlu1 %v2109_v51, %s2178_s28 }
  0xe8   : > { %1255 = vrot.lane.b32.xlu0 %v2110_v0, %s2179_s29  ;;  %1036 = vrot.lane.b32.xlu1 %v2034_v24, %s2176_s26 }
  0xec   : > { %1421 = vrot.lane.b32.xlu0 %v2113_v59, %s2178_s28  ;;  %1046 = vrot.lane.b32.xlu1 %v2105_v47, %s2178_s28 }
  0xf0   : > { %491 = vrot.lane.b32.xlu0 %v2094_v41, %s2179_s29  ;;  %1225 = vrot.lane.b32.xlu1 %v2038_v4, %s2173_s23 }
  0xf4   : > { %843 = vrot.lane.b32.xlu0 %v2102_v26, %s2179_s29  ;;  %1235 = vrot.lane.b32.xlu1 %v2108_v11, %s2175_s25 }
  0xf8   : > { %1426 = vrot.lane.b32.xlu0 %v2114_v56, %s2179_s29  ;;  %1021 = vrot.lane.b32.xlu1 %v2031_v27, %s2173_s23 }
  0xfc   : > { %629 = vrot.lane.b32.xlu0 %v2019_v31, %s2176_s26  ;;  %1031 = vrot.lane.b32.xlu1 %v2104_v54, %s2175_s25 }
 0x100   : > { %634 = vrot.lane.b32.xlu0 %v2020_v38, %s2177_s27  ;;  %1041 = vrot.lane.b32.xlu1 %v2035_v7, %s2177_s27 }
 0x104   : > { %639 = vrot.lane.b32.xlu0 %v2097_v13, %s2178_s28  ;;  %315 = vrot.lane.b32.xlu1 %v2088_v8, %s2175_s25 }
 0x108   : > { %644 = vrot.lane.b32.xlu0 %v2098_v23, %s2179_s29  ;;  %624 = vrot.lane.b32.xlu1 %v2096_v33, %s2175_s25 }
 0x10c   : > { %1051 = vrot.lane.b32.xlu1 %v2106_v17, %s2179_s29 }
 0x110   : > { %320 = vrot.lane.b32.xlu1 %v2004_v44, %s2176_s26 }
 0x114   : > { %325 = vrot.lane.b32.xlu1 %v2005_v20, %s2177_s27 }
 0x118   : > { %330 = vrot.lane.b32.xlu1 %v2089_v21, %s2178_s28 }
 0x11c   : > { %335 = vrot.lane.b32.xlu1 %v2090_v40, %s2179_s29 }
 0x11e   : > { %v467_v19 = vpop.permute.xlu0 %466  ;;  %v477_v42 = vpop.permute.xlu1 %476 }
 0x122   : > { %v2779_v46 = vpop.permute.xlu0 %486 }
 0x126   : > { %v482_v22 = vpop.permute.xlu0 %481 }
 0x12a   : > { %v1745_v43 = vpop.permute.xlu0 %1744 }
 0x12b   : > { %v1778_v53 = vsel %vm337_vm6, %v2648_v16, %v1745_v43 }
 0x12e   : > { %v1569_v28 = vpop.permute.xlu0 %1568  ;;  %v2783_v34 = vpop.permute.xlu1 %619 }
 0x12f   : > { %v1602_v47 = vsel %vm337_vm6, %v2664_v63, %v1569_v28 }
 0x132   : > { %v1755_v6 = vpop.permute.xlu0 %1754  ;;  %v462_v9 = vpop.permute.xlu1 %461 }
 0x133   : > { %v495_v7 = vsel %vm337_vm6, %v2545_v61, %v462_v9 }
 0x134   : > { %v497_v33 = vsel %vm341_vm7, %v495_v7, %v467_v19 }
 0x136   : > { %v1579_v30 = vpop.permute.xlu0 %1578  ;;  %v472_v12 = vpop.permute.xlu1 %471 }
 0x137   : > { %v499_v29 = vsel %vm344_vm8, %v497_v33, %v472_v12  ;;  %v340_v33 = vsel %vm337_vm6, %v2461_v57, %v2777_v14 }
 0x138   : > { %v501_v20 = vsel %vm347_vm9, %v499_v29, %v477_v42  ;;  %v857_v42 = vsel %vm353_vm13, %v2667_v3, %v2773_v50  ;;  %v343_v29 = vsel %vm341_vm7, %v340_v33, %v2781_v45  ;;  %v1793_v45 = vld [vmem:[%s2884_s1] sm:$0xf] }
 0x139   : > { %v503_v40 = vsel %vm350_vm10, %v501_v20, %v482_v22 }
 0x13a   : > { %v1765_v15 = vpop.permute.xlu0 %1764  ;;  %v2785_v60 = vpop.permute.xlu1 %614  ;;  %v505_v19 = vsel %vm353_vm13, %v503_v40, %v2779_v46 }
 0x13e   : > { %v1589_v25 = vpop.permute.xlu0 %1588  ;;  %v1750_v37 = vpop.permute.xlu1 %1749 }
 0x13f   : > { %v1780_v59 = vsel %vm341_vm7, %v1778_v53, %v1750_v37 }
 0x140   : > { %v1782_v48 = vsel %vm344_vm8, %v1780_v59, %v1755_v6 }
 0x142   : > { %v1775_v35 = vpop.permute.xlu0 %1774  ;;  %v1574_v51 = vpop.permute.xlu1 %1573 }
 0x143   : > { %v1604_v26 = vsel %vm341_vm7, %v1602_v47, %v1574_v51 }
 0x144   : > { %v1606_v55 = vsel %vm344_vm8, %v1604_v26, %v1579_v30 }
 0x146   : > { %v1599_v0 = vpop.permute.xlu0 %1598  ;;  %v1760_v24 = vpop.permute.xlu1 %1759 }
 0x147   : > { %v1784_v11 = vsel %vm347_vm9, %v1782_v48, %v1760_v24 }
 0x148   : > { %v1786_v56 = vsel %vm350_vm10, %v1784_v11, %v1765_v15 }
 0x14a   : > { %v1231_v41 = vpop.permute.xlu0 %1230  ;;  %v1584_v4 = vpop.permute.xlu1 %1583 }
 0x14b   : > { %v1608_v27 = vsel %vm347_vm9, %v1606_v55, %v1584_v4 }
 0x14c   : > { %v1610_v54 = vsel %vm350_vm10, %v1608_v27, %v1589_v25 }
 0x14e   : > { %v1241_v16 = vpop.permute.xlu0 %1240  ;;  %v1770_v58 = vpop.permute.xlu1 %1769 }
 0x14f   : > { %v1788_v63 = vsel %vm353_vm13, %v1786_v56, %v1770_v58  ;;  %v648_v58 = vsel %vm337_vm6, %v2603_v39, %v2785_v60 }
 0x150   : > { %v1790_v32 = vsel %vm356_vm12, %v1788_v63, %v1775_v35 }
 0x151   : > { %1792 = vst.msk [vmem:[#allocation2 + $0x10] sm:$0x3] %vm360_vm14, %v1790_v32 }
 0x152   : > { %v1027_v31 = vpop.permute.xlu0 %1026  ;;  %v1594_v49 = vpop.permute.xlu1 %1593 }
 0x153   : > { %v1612_v36 = vsel %vm353_vm13, %v1610_v54, %v1594_v49  ;;  %v650_v54 = vsel %vm341_vm7, %v648_v58, %v2783_v34 }
 0x154   : > { %v1614_v38 = vsel %vm356_vm12, %v1612_v36, %v1599_v0 }
 0x155   : > { %v2068_v8 = vcombine.low %v1614_v38, %v1614_v38 }
 0x156   : > { %v1246_v13 = vpop.permute.xlu0 %1245  ;;  %v1251_v18 = vpop.permute.xlu1 %1250 }
 0x157   : > { %v1618_v23 = vrot.slane %v2068_v8, 6 }
 0x158   : > { %v2158_v5 = vld [vmem:[#allocation2 + $0x10] ss:$0 sps:$4 sm:$0x33]  }
 0x159   : > { %1620 = vst.msk [vmem:[#allocation2 + $0xc] sm:$0xc] %vm513_vm15, %v1618_v23  ;;  %v1820_v52 = vsel %vm1818_vm0, %v2158_v5, 0 }
 0x15a   : > { %v1256_v17 = vpop.permute.xlu0 %1255  ;;  %v1037_v44 = vpop.permute.xlu1 %1036  ;;  %2128 = vmatpush3.bf16.msra.mxu0 %v1820_v52 }
 0x15b   : > { %2129 = vmatprep.subr.bf16.mxu0 %v2180_v10 }
 0x15e   : > { %v1422_v61 = vpop.permute.xlu0 %1421  ;;  %v1047_v21 = vpop.permute.xlu1 %1046 }
 0x15f   : > { %v1440_v53 = vsel %vm353_vm13, %v2678_v62, %v1422_v61 }
 0x162   : > { %v492_v43 = vpop.permute.xlu0 %491  ;;  %v1226_v28 = vpop.permute.xlu1 %1225 }
 0x163   : > { %v507_v6 = vsel %vm356_vm12, %v505_v19, %v492_v43  ;;  %v1259_v9 = vsel %vm337_vm6, %v2686_v2, %v1226_v28 }
 0x164   : > { %v2015_v30 = vcombine.low %v507_v6, %v507_v6  ;;  %v1261_v25 = vsel %vm341_vm7, %v1259_v9, %v1231_v41 }
 0x166   : > { %v511_v12 = vrot.slane %v2015_v30, 6  ;;  %v844_v15 = vpop.permute.xlu0 %843  ;;  %v1236_v22 = vpop.permute.xlu1 %1235 }
 0x167   : > { %v859_v37 = vsel %vm356_vm12, %v857_v42, %v844_v15  ;;  %v1263_v46 = vsel %vm344_vm8, %v1261_v25, %v1236_v22 }
 0x168   : > { %514 = vst.msk [vmem:[#allocation2] sm:$0xc] %vm513_vm15, %v511_v12  ;;  %v2030_v35 = vcombine.low %v859_v37, %v859_v37  ;;  %v1265_v51 = vsel %vm347_vm9, %v1263_v46, %v1241_v16 }
 0x169   : > { %v1267_v2 = vsel %vm350_vm10, %v1265_v51, %v1246_v13 }
 0x16a   : > { %v863_v3 = vrot.slane %v2030_v35, 6  ;;  %v1269_v50 = vsel %vm353_vm13, %v1267_v2, %v1251_v18  ;;  %v1427_v0 = vpop.permute.xlu0 %1426  ;;  %v1022_v24 = vpop.permute.xlu1 %1021 }
 0x16b   : > { %v1271_v59 = vsel %vm356_vm12, %v1269_v50, %v1256_v17  ;;  %v1442_v47 = vsel %vm356_vm12, %v1440_v53, %v1427_v0  ;;  %v1055_v55 = vsel %vm337_vm6, %v2698_v1, %v1022_v24 }
 0x16c   : > { %865 = vst.msk [vmem:[#allocation2 + $0x4] sm:$0xc] %vm513_vm15, %v863_v3  ;;  %v2045_v48 = vcombine.low %v1271_v59, %v1271_v59  ;;  %v1057_v16 = vsel %vm341_vm7, %v1055_v55, %v1027_v31 }
 0x16d   : > { %1444 = vst.msk [vmem:[#allocation2 + $0xc] sm:$0x3] %vm360_vm14, %v1442_v47 }
 0x16e   : > { %v1275_v41 = vrot.slane %v2045_v48, 6  ;;  %v630_v4 = vpop.permute.xlu0 %629  ;;  %v1032_v26 = vpop.permute.xlu1 %1031 }
 0x16f   : > { %v1059_v27 = vsel %vm344_vm8, %v1057_v16, %v1032_v26 }
 0x170   : > { %1277 = vst.msk [vmem:[#allocation2 + $0x8] sm:$0xc] %vm513_vm15, %v1275_v41  ;;  %v1061_v32 = vsel %vm347_vm9, %v1059_v27, %v1037_v44 }
 0x172   : > { %v635_v62 = vpop.permute.xlu0 %634  ;;  %v1042_v11 = vpop.permute.xlu1 %1041 }
 0x173   : > { %v1063_v36 = vsel %vm350_vm10, %v1061_v32, %v1042_v11 }
 0x174   : > { %v1065_v60 = vsel %vm353_vm13, %v1063_v36, %v1047_v21 }
 0x176   : > { %v316_v56 = vpop.permute.xlu1 %315  ;;  %v640_v63 = vpop.permute.xlu0 %639 }
 0x177   : > { %v346_v44 = vsel %vm344_vm8, %v343_v29, %v316_v56 }
 0x17a   : > { %v625_v49 = vpop.permute.xlu1 %624  ;;  %v645_v7 = vpop.permute.xlu0 %644 }
 0x17b   : > { %v652_v1 = vsel %vm344_vm8, %v650_v54, %v625_v49 }
 0x17c   : > { %v654_v31 = vsel %vm347_vm9, %v652_v1, %v630_v4 }
 0x17d   : > { %v656_v38 = vsel %vm350_vm10, %v654_v31, %v635_v62 }
 0x17e   : > { %v658_v39 = vsel %vm353_vm13, %v656_v38, %v640_v63  ;;  %v1052_v8 = vpop.permute.xlu1 %1051 }
 0x17f   : > { %v660_v13 = vsel %vm356_vm12, %v658_v39, %v645_v7  ;;  %v1067_v18 = vsel %vm356_vm12, %v1065_v60, %v1052_v8 }
 0x180   : > { %662 = vst.msk [vmem:[#allocation2 + $0x4] sm:$0x3] %vm360_vm14, %v660_v13  ;;  %1069 = vst.msk [vmem:[#allocation2 + $0x8] sm:$0x3] %vm360_vm14, %v1067_v18 }
 0x182   : > { %v321_v34 = vpop.permute.xlu1 %320 }
 0x183   : > { %v349_v52 = vsel %vm347_vm9, %v346_v44, %v321_v34 }
 0x186   : > { %v326_v23 = vpop.permute.xlu1 %325 }
 0x187   : > { %v2159_v5 = vld [vmem:[#allocation2 + $0x8] sm:$0xff]   ;;  %v352_v20 = vsel %vm350_vm10, %v349_v52, %v326_v23 }
 0x188   : > { %2130 = vmatpush3.bf16.msra.mxu0 %v2159_v5 }
 0x189   : > { %2131 = vmatprep.subr.bf16.mxu0 %v2180_v10 }
 0x18a   : > { %v331_v17 = vpop.permute.xlu1 %330 }
 0x18b   : > { %v355_v61 = vsel %vm353_vm13, %v352_v20, %v331_v17 }
 0x18e   : > { %v336_v21 = vpop.permute.xlu1 %335 }
 0x18f   : > { %v358_v57 = vsel %vm356_vm12, %v355_v61, %v336_v21 }
 0x190   : > { %361 = vst.msk [vmem:[#allocation2] sm:$0x3] %vm360_vm14, %v358_v57 }
 0x197   : > { %v2160_v14 = vld [vmem:[#allocation2] sm:$0xff]  }
 0x198   : > { %2132 = vmatpush3.bf16.msra.mxu0 %v2160_v14 }
 0x19b   : > { %2134 = vmatmul.mubr.msk.bf16.vlgmr.msra.gmra.mxu0 %vm1814_vm1, %v1793_v45 }
 0x25b   : > { %v1856_v10 = vpop.f32.mrf.mxu0 }
 0x25c   : > { %v1862_v40 = vpack.c.bf16 %v1856_v10, %v1856_v10  ;;  %v1866_v43 = vsel %vm1865_vm2, %v1856_v10, 0.0  ;;  %v1871_v19 = vmul.f32 %v1856_v10, %v1856_v10 }
 0x25d   : > { %1867 = vadd.xlane.f32.xlu1 %v1866_v43  ;;  %v2135_v28 = vpop.f32.mrf.mxu0 }
 0x25e   : > { %1864 = vst.msk [vmem:[%s208_s9] sm:$0xf] %vm1863_vm3, %v1862_v40  ;;  %v1872_v6 = vsel %vm1865_vm2, %v1871_v19, 0.0 }
 0x25f   : > { %1873 = vadd.xlane.f32.xlu0 %v1872_v6  ;;  %v1859_v9 = vpop.f32.mrf.mxu0 }
 0x261   : > { %v2136_v30 = vpop.f32.mrf.mxu0 }
 0x2e6   : > { %v1868_v42 = vpop.xlane.xlu1 %1867 }
 0x2e7   : > { %1870 = vst.msk [vmem:[%s212_s13] sm:$0xff] %vm1869_vm4, %v1868_v42 }
 0x2e8   : > { %v1874_v12 = vpop.xlane.xlu0 %1873 }
 0x2e9   : > { %1875 = vst.msk [vmem:[%s216_s18] sm:$0xff] %vm1869_vm4, %v1874_v12 }
 0x2ea PF: > { %s15_s15 = sadd.s32 1, %s2167_s15  }
 0x2eb   : > { %p12_p4 = scmp.ge.s32.totalorder %s15_s15, 4  }
 0x2ed   :  { %14 = sbr.rel (!%p12_p4) target bundleno = 1 (0x1), region = 82 }

// kernel: down_forward.3
= control target key start
LH: loop header
LB: loop body
LE: loop exit
PB: predicated region body
PF: predicated region fallthrough
CT: control target
= control target key end

     0   :  { %s3069_s21 = smov 0   ;;  %s4294_s0 = inlined_call_operand.vmem [shape: bf16[2,8,64], index: 0, kind: input, shape index: {}]   ;;  %s4295_s1 = inlined_call_operand.vmem [shape: f32[8,1], index: 1, kind: input, shape index: {}]   ;;  %s4296_s2 = inlined_call_operand.vmem [shape: f32[8,1], index: 2, kind: input, shape index: {}]   ;;  %s4297_s3 = inlined_call_operand.vmem [shape: bf16[8,72], index: 3, kind: input, shape index: {}]   ;;  %s4298_s4 = inlined_call_operand.vmem [shape: f32[2,8,64], index: 4, kind: output, shape index: {0}]   ;;  %s4299_s5 = inlined_call_operand.vmem [shape: f32[2,8,1], index: 5, kind: output, shape index: {1}]   ;;  %s4300_s6 = inlined_call_operand.vmem [shape: f32[2,8,1], index: 6, kind: output, shape index: {2}]  }
   0x1 LB: > { %s2836_s22 = sadd.s32 4294967295, %s3010_s21   ;;  %p2840_p0 = scmp.ge.s32.totalorder %s3010_s21, 1  ;;  %s3010_s21 = sphi %s3069_s21, %s17_s21  }
   0x2   : > { %p216_p1 = scmp.lt.s32.totalorder %s3010_s21, 3 }
   0x4   : > { %p217_p2 = pnand %p2840_p0, %p216_p1 }
   0x6   : > { %220 = sbr.rel (%p217_p2) target bundleno = 1154 (0x482), region = 36 }
   0xb   : > { %v269_v0 = vld [vmem:[%s4295_s1] sm:$0xff]  ;;  %v4301_v1 = vmov 0   ;;  %p252_p3 = scmp.lt.s32.totalorder %s2836_s22, 1  ;;  %s3013_s7 = smov 104   ;;  %vm289_vm0 = vcmask 73728   ;;  %v331_v13 = vlaneseq  ;;  %vm287_vm1 = vcmask 76800  }
   0xc   : > { %2998 = vset.pattern.permute.xlu0 %v4301_v1  ;;  %v278_v2 = vld [vmem:[%s4296_s2] sm:$0xff]  ;;  %s3014_s8 = smov 120   ;;  %s3015_s9 = smov 88   ;;  %290 = vst.msk [vmem:[#allocation2 + $0x4] sm:$0x1] %vm289_vm0, %v4301_v1  ;;  %vm553_vm2 = vcmask 65544  }
   0xd   : > { %274 = vperm.xlu0 %2998, %v269_v0   ;;  %s4360_s22 = smov (!%p252_p3, %s2836_s22), 1  ;;  %s3016_s10 = smov 112   ;;  %292 = vst.msk [vmem:[#allocation2 + $0xc] sm:$0x1] %vm289_vm0, %v4301_v1  ;;  %294 = vst.msk [vmem:[#allocation2 + $0x14] sm:$0x1] %vm289_vm0, %v4301_v1 }
   0xe   : > { %s2841_s27 = sshll.u32 %s4360_s22, 2  ;;  %s3017_s11 = smov 72   ;;  %296 = vst.msk [vmem:[#allocation2 + $0x1c] sm:$0x1] %vm289_vm0, %v4301_v1  ;;  %298 = vst.msk [vmem:[#allocation2 + $0x24] sm:$0x1] %vm289_vm0, %v4301_v1 }
   0xf   : > { %s255_s30 = scalar_lea.vmem %s4294_s0, %s2841_s27  ;;  %s3018_s12 = smov 96   ;;  %300 = vst.msk [vmem:[#allocation2 + $0x2c] sm:$0x1] %vm289_vm0, %v4301_v1  ;;  %302 = vst.msk [vmem:[#allocation2 + $0x34] sm:$0x1] %vm289_vm0, %v4301_v1  ;;  %v332_v17 = vshrl.u32 %v331_v13, 7 }
  0x10   : > { %v270_v3 = vld [vmem:[%s255_s30] sm:$0xf]  ;;  %s3019_s13 = smov 80   ;;  %304 = vst.msk [vmem:[#allocation2 + $0x3c] sm:$0x1] %vm289_vm0, %v4301_v1  ;;  %s3022_s14 = smov 1  }
  0x11   : > { %281 = vperm.xlu0 %2998, %v278_v2   ;;  %v271_v4 = vunpack.c.l.bf16 %v270_v3  ;;  %v3020_v11 = vmov 1983009808   ;;  %v3021_v20 = vmov 1934713408   ;;  %288 = vst.msk [vmem:[#allocation2] sm:$0xf] %vm287_vm1, %v4301_v1 }
  0x12   : > { %v329_v12 = vunpack.c.l.s4 %v3020_v11  ;;  %v346_v21 = vunpack.c.l.s4 %v3021_v20  ;;  %291 = vst.msk [vmem:[#allocation2 + $0x8] sm:$0xf] %vm287_vm1, %v4301_v1  ;;  %293 = vst.msk [vmem:[#allocation2 + $0x10] sm:$0xf] %vm287_vm1, %v4301_v1  ;;  %vm554_vm3 = vsmask.f32 256 }
  0x13   : > { %295 = vst.msk [vmem:[#allocation2 + $0x18] sm:$0xf] %vm287_vm1, %v4301_v1  ;;  %297 = vst.msk [vmem:[#allocation2 + $0x20] sm:$0xf] %vm287_vm1, %v4301_v1  ;;  %vm547_vm4 = vcmask 68616   ;;  %s3023_s15 = smov 126  }
  0x14   : > { %v330_v16 = vunpack.c.0.s8 %v329_v12  ;;  %v347_v24 = vunpack.c.0.s8 %v346_v21  ;;  %299 = vst.msk [vmem:[#allocation2 + $0x28] sm:$0xf] %vm287_vm1, %v4301_v1  ;;  %301 = vst.msk [vmem:[#allocation2 + $0x30] sm:$0xf] %vm287_vm1, %v4301_v1  ;;  %vm548_vm5 = vsmask.f32 7938 }
  0x15   : > { %303 = vst.msk [vmem:[#allocation2 + $0x38] sm:$0xf] %vm287_vm1, %v4301_v1  ;;  %vm3138_vm6 = vmand %vm553_vm2, %vm554_vm3  ;;  %s3024_s16 = smov 127   ;;  %vm1994_vm8 = vcmask 1042432   ;;  %vm1995_vm9 = vcmask 1046532   ;;  %s3025_s17 = smov 16  }
  0x16   : > { %v3098_v22 = vsub.s32 %v330_v16, %v332_v17  ;;  %v3102_v31 = vsub.s32 %v347_v24, %v332_v17  ;;  %vm3142_vm7 = vmand %vm547_vm4, %vm548_vm5  ;;  %vm1124_vm10 = vsmask.f32 3328  ;;  %vm1125_vm11 = vsmask.f32 7440  ;;  %s3026_s18 = smov 32   ;;  %s3027_s19 = smov 8  }
  0x17   : > { %vm3256_vm12 = vmor %vm1994_vm8, %vm1995_vm9  ;;  %s3028_s20 = smov 40   ;;  %s3029_s23 = smov 48   ;;  %vm729_vm14 = vcmask 64512   ;;  %vm733_vm15 = vcmask 130048   ;;  %vm736_vm0 = vcmask 195584   ;;  %vm739_vm1 = vcmask 261120  }
  0x18   : > { %vm3299_vm13 = vmor %vm1124_vm10, %vm1125_vm11  ;;  %s3030_s24 = smov 24   ;;  %s3031_s25 = smov 56   ;;  %vm742_vm2 = vcmask 326656   ;;  %vm745_vm3 = vcmask 392192   ;;  %vm748_vm4 = vcmask 457728   ;;  %vm752_vm5 = vcmask 519168  }
  0x19   : > { %vm2661_vm8 = vcmask 588800   ;;  %s2842_s28 = sshll.u32 %s4360_s22, 3  ;;  %vm2709_vm9 = vcmask 523264   ;;  %vm2714_vm10 = vcmask 7168  }
  0x88   : > { %v275_v5 = vpop.permute.xlu0 %274 }
  0x89   : > { %v277_v6 = vmul.f32 %v275_v5, %v271_v4 }
  0x8c   : > { %v282_v7 = vpop.permute.xlu0 %281 }
  0x8d   : > { %v284_v8 = vadd.f32 %v282_v7, %v277_v6 }
  0x8f   : > { %v285_v9 = vmax.f32 %v284_v8, 0.0 }
  0x91   : > { %v286_v10 = vpack.c.bf16 %v285_v9, %v285_v9 }
  0x93   : > { %312 = vrot.lane.b32.xlu0 %v286_v10, %s3013_s7  ;;  %306 = vrot.lane.b32.xlu1 %v286_v10, %s3014_s8  ;;  %s259_s7 = scalar_lea.vmem %s4298_s4, %s2842_s28 }
  0x97   : > { %318 = vrot.lane.b32.xlu0 %v286_v10, %s3015_s9  ;;  %309 = vrot.lane.b32.xlu1 %v286_v10, %s3016_s10  ;;  %s263_s10 = scalar_lea.vmem %s4299_s5, %s2842_s28 }
  0x9b   : > { %324 = vrot.lane.b32.xlu0 %v286_v10, %s3017_s11  ;;  %315 = vrot.lane.b32.xlu1 %v286_v10, %s3018_s12  ;;  %s267_s12 = scalar_lea.vmem %s4300_s6, %s2842_s28 }
  0x9f   : > { %321 = vrot.lane.b32.xlu1 %v286_v10, %s3019_s13 }
 0x105   : > { %v313_v14 = vpop.permute.xlu0 %312  ;;  %v307_v15 = vpop.permute.xlu1 %306 }
 0x109   : > { %v319_v18 = vpop.permute.xlu0 %318  ;;  %v310_v19 = vpop.permute.xlu1 %309 }
 0x10a   : > { %v361_v23 = vcombine.low %v307_v15, %v319_v18 }
 0x10c   : > { %v368_v28 = vrot.slane %v361_v23, %v3098_v22 }
 0x10d   : > { %v325_v25 = vpop.permute.xlu0 %324  ;;  %v316_v26 = vpop.permute.xlu1 %315 }
 0x10e   : > { %v369_v27 = vcombine.low %v313_v14, %v325_v25  ;;  %v327_v30 = vcombine.low %v286_v10, %v316_v26 }
 0x110   : > { %v376_v29 = vrot.slane %v369_v27, %v3098_v22  ;;  %v334_v36 = vrot.slane %v327_v30, %v3098_v22 }
 0x111   : > { %v322_v32 = vpop.permute.xlu1 %321 }
 0x112   : > { %v377_v33 = vcombine.low %v368_v28, %v376_v29  ;;  %v335_v34 = vcombine.low %v310_v19, %v322_v32  ;;  %v378_v35 = vcombine.high %v368_v28, %v376_v29 }
 0x114   : > { %v342_v37 = vrot.slane %v335_v34, %v3098_v22  ;;  %v385_v38 = vrot.slane %v377_v33, %v3102_v31  ;;  %v392_v41 = vrot.slane %v378_v35, %v3102_v31 }
 0x116   : > { %v343_v39 = vcombine.low %v334_v36, %v342_v37  ;;  %v344_v40 = vcombine.high %v334_v36, %v342_v37  ;;  %v399_v44 = vshrl.u32 %v385_v38, 16  ;;  %v393_v49 = vcombine.high %v385_v38, %v4301_v1 }
 0x117   : > { %v411_v58 = vshrl.u32 %v392_v41, 16  ;;  %v394_v5 = vcombine.high %v392_v41, %v4301_v1 }
 0x118   : > { %v351_v42 = vrot.slane %v343_v39, %v3102_v31  ;;  %v358_v43 = vrot.slane %v344_v40, %v3102_v31  ;;  %v405_v14 = vshrl.u32 %v393_v49, 16 }
 0x119   : > { %v417_v24 = vshrl.u32 %v394_v5, 16 }
 0x11a   : > { %v397_v45 = vpack.i.b16 %v385_v38, %v351_v42  ;;  %v409_v46 = vpack.i.b16 %v392_v41, %v358_v43  ;;  %v398_v47 = vshrl.u32 %v351_v42, 16  ;;  %v359_v48 = vcombine.high %v351_v42, %v4301_v1 }
 0x11b   : > { %v410_v54 = vshrl.u32 %v358_v43, 16  ;;  %v360_v63 = vcombine.high %v358_v43, %v4301_v1 }
 0x11c   : > { %v2845_v50 = vcombine.low %v397_v45, %v397_v45  ;;  %v2849_v51 = vcombine.low %v409_v46, %v409_v46  ;;  %v400_v52 = vpack.i.b16 %v399_v44, %v398_v47  ;;  %v403_v53 = vpack.i.b16 %v393_v49, %v359_v48 }
 0x11d   : > { %v412_v62 = vpack.i.b16 %v411_v58, %v410_v54  ;;  %v415_v8 = vpack.i.b16 %v394_v5, %v360_v63  ;;  %v404_v9 = vshrl.u32 %v359_v48, 16  ;;  %v416_v18 = vshrl.u32 %v360_v63, 16  ;;  %v550_v54 = vld [vmem:[#allocation2] sm:$0xf] }
 0x11e   : > { %v436_v55 = vshrl.u32 %v2845_v50, 16  ;;  %v468_v56 = vshrl.u32 %v2849_v51, 16  ;;  %v2846_v57 = vcombine.low %v400_v52, %v400_v52  ;;  %v439_v60 = vshll.u32 %v2845_v50, 16  ;;  %v556_v52 = vld [vmem:[#allocation2 + $0x4] sm:$0x1] }
 0x11f   : > { %v2847_v61 = vcombine.low %v403_v53, %v403_v53  ;;  %v471_v6 = vshll.u32 %v2849_v51, 16  ;;  %v2850_v7 = vcombine.low %v412_v62, %v412_v62  ;;  %v2851_v16 = vcombine.low %v415_v8, %v415_v8 }
 0x120   : > { %v438_v59 = vrot.slane %v436_v55, 7  ;;  %v470_v3 = vrot.slane %v468_v56, 7  ;;  %v444_v4 = vshrl.u32 %v2846_v57, 16  ;;  %v447_v15 = vshll.u32 %v2846_v57, 16 }
 0x121   : > { %v452_v13 = vshrl.u32 %v2847_v61, 16  ;;  %v406_v17 = vpack.i.b16 %v405_v14, %v404_v9  ;;  %v476_v23 = vshrl.u32 %v2850_v7, 16  ;;  %v455_v25 = vshll.u32 %v2847_v61, 16  ;;  %v568_v9 = vld [vmem:[#allocation2 + $0x14] sm:$0x1] }
 0x122   : > { %v442_v0 = vrot.slane %v438_v59, 4  ;;  %v441_v2 = vor.u32 %v439_v60, %v438_v59  ;;  %v474_v10 = vrot.slane %v470_v3, 4  ;;  %v473_v11 = vor.u32 %v471_v6, %v470_v3  ;;  %v580_v59 = vld [vmem:[#allocation2 + $0x24] sm:$0x1]  ;;  %v577_v60 = vld [vmem:[#allocation2 + $0x20] sm:$0xf] }
 0x123   : > { %v446_v12 = vrot.slane %v444_v4, 7  ;;  %v454_v21 = vrot.slane %v452_v13, 7  ;;  %v484_v26 = vshrl.u32 %v2851_v16, 16  ;;  %v418_v27 = vpack.i.b16 %v417_v24, %v416_v18  ;;  %v559_v3 = vld [vmem:[#allocation2 + $0x8] sm:$0xf] }
 0x124   : > { %501 = vrot.lane.b32.xlu0 %v442_v0, %s3022_s14  ;;  %499 = vrot.lane.b32.xlu1 %v441_v2, %s3022_s14  ;;  %v478_v30 = vrot.slane %v476_v23, 7  ;;  %v2848_v32 = vcombine.low %v406_v17, %v406_v17  ;;  %v479_v33 = vshll.u32 %v2850_v7, 16  ;;  %v487_v39 = vshll.u32 %v2851_v16, 16  ;;  %v562_v2 = vld [vmem:[#allocation2 + $0xc] sm:$0x1] }
 0x125   : > { %v450_v19 = vrot.slane %v446_v12, 4  ;;  %v449_v20 = vor.u32 %v447_v15, %v446_v12  ;;  %v458_v28 = vrot.slane %v454_v21, 4  ;;  %v457_v29 = vor.u32 %v455_v25, %v454_v21 }
 0x126   : > { %v2852_v34 = vcombine.low %v418_v27, %v418_v27  ;;  %v482_v35 = vrot.slane %v478_v30, 4  ;;  %v481_v36 = vor.u32 %v479_v33, %v478_v30  ;;  %v486_v37 = vrot.slane %v484_v26, 7  ;;  %v592_v27 = vld [vmem:[#allocation2 + $0x34] sm:$0x1] }
 0x127   : > { %v460_v38 = vshrl.u32 %v2848_v32, 16  ;;  %v463_v44 = vshll.u32 %v2848_v32, 16 }
 0x128   : > { %517 = vrot.lane.b32.xlu0 %v474_v10, %s3022_s14  ;;  %515 = vrot.lane.b32.xlu1 %v473_v11, %s3022_s14  ;;  %v490_v40 = vrot.slane %v486_v37, 4  ;;  %v489_v41 = vor.u32 %v487_v39, %v486_v37  ;;  %v492_v43 = vshrl.u32 %v2852_v34, 16  ;;  %v495_v48 = vshll.u32 %v2852_v34, 16  ;;  %v565_v10 = vld [vmem:[#allocation2 + $0x10] sm:$0xf] }
 0x129   : > { %v462_v42 = vrot.slane %v460_v38, 7 }
 0x12a   : > { %v494_v47 = vrot.slane %v492_v43, 7 }
 0x12b   : > { %v466_v45 = vrot.slane %v462_v42, 4  ;;  %v465_v46 = vor.u32 %v463_v44, %v462_v42 }
 0x12c   : > { %505 = vrot.lane.b32.xlu0 %v450_v19, %s3022_s14  ;;  %503 = vrot.lane.b32.xlu1 %v449_v20, %s3022_s14  ;;  %v498_v49 = vrot.slane %v494_v47, 4  ;;  %v497_v50 = vor.u32 %v495_v48, %v494_v47  ;;  %v586_v19 = vld [vmem:[#allocation2 + $0x2c] sm:$0x1]  ;;  %v583_v20 = vld [vmem:[#allocation2 + $0x28] sm:$0xf] }
 0x12d   : > { %v574_v47 = vld [vmem:[#allocation2 + $0x1c] sm:$0x1]  ;;  %v571_v48 = vld [vmem:[#allocation2 + $0x18] sm:$0xf] }
 0x130   : > { %509 = vrot.lane.b32.xlu0 %v458_v28, %s3022_s14  ;;  %507 = vrot.lane.b32.xlu1 %v457_v29, %s3022_s14  ;;  %v589_v28 = vld [vmem:[#allocation2 + $0x30] sm:$0xf] }
 0x134   : > { %521 = vrot.lane.b32.xlu0 %v482_v35, %s3022_s14  ;;  %519 = vrot.lane.b32.xlu1 %v481_v36, %s3022_s14 }
 0x138   : > { %525 = vrot.lane.b32.xlu0 %v490_v40, %s3022_s14  ;;  %523 = vrot.lane.b32.xlu1 %v489_v41, %s3022_s14 }
 0x13c   : > { %513 = vrot.lane.b32.xlu0 %v466_v45, %s3022_s14  ;;  %511 = vrot.lane.b32.xlu1 %v465_v46, %s3022_s14 }
 0x140   : > { %529 = vrot.lane.b32.xlu0 %v498_v49, %s3022_s14  ;;  %527 = vrot.lane.b32.xlu1 %v497_v50, %s3022_s14 }
 0x196   : > { %v502_v55 = vpop.permute.xlu0 %501  ;;  %v500_v56 = vpop.permute.xlu1 %499 }
 0x197   : > { %v557_v57 = vsel %vm3138_vm6, %v502_v55, %v556_v52  ;;  %v551_v58 = vsel %vm3142_vm7, %v500_v56, %v550_v54 }
 0x198   : > { %558 = vst [vmem:[#allocation2 + $0x4] sm:$0x1] %v557_v57  ;;  %552 = vst [vmem:[#allocation2] sm:$0xf] %v551_v58 }
 0x19a   : > { %v518_v61 = vpop.permute.xlu0 %517  ;;  %v516_v62 = vpop.permute.xlu1 %515 }
 0x19b   : > { %v581_v63 = vsel %vm3138_vm6, %v518_v61, %v580_v59  ;;  %v578_v0 = vsel %vm3142_vm7, %v516_v62, %v577_v60 }
 0x19c   : > { %582 = vst [vmem:[#allocation2 + $0x24] sm:$0x1] %v581_v63  ;;  %579 = vst [vmem:[#allocation2 + $0x20] sm:$0xf] %v578_v0 }
 0x19e   : > { %v506_v4 = vpop.permute.xlu0 %505  ;;  %v504_v5 = vpop.permute.xlu1 %503 }
 0x19f   : > { %v563_v6 = vsel %vm3138_vm6, %v506_v4, %v562_v2  ;;  %v560_v7 = vsel %vm3142_vm7, %v504_v5, %v559_v3  ;;  %v931_v8 = vld [vmem:[#allocation2] sm:$0xf]  ;;  %v3166_v23 = vld [vmem:[#allocation2 + $0x4] sm:$0x1] }
 0x1a0   : > { %564 = vst [vmem:[#allocation2 + $0xc] sm:$0x1] %v563_v6  ;;  %561 = vst [vmem:[#allocation2 + $0x8] sm:$0xf] %v560_v7  ;;  %947 = vrot.lane.b32.xlu1 %v931_v8, %s3023_s15  ;;  %v1384_v11 = vld [vmem:[#allocation2] sm:$0xf] }
 0x1a1   : > { %v1401_v14 = vshrl.u32 %v1384_v11, 16  ;;  %v1404_v15 = vshll.u32 %v1384_v11, 16  ;;  %v3164_v21 = vld [vmem:[#allocation2] sm:$0xe]  ;;  %v1385_v36 = vld [vmem:[#allocation2 + $0x4] sm:$0x1] }
 0x1a2   : > { %v510_v12 = vpop.permute.xlu0 %509  ;;  %v508_v13 = vpop.permute.xlu1 %507  ;;  %v754_v26 = vld [vmem:[#allocation2] sm:$0xf]  ;;  %v2925_v37 = vrot.slane %v3164_v21, 9  ;;  %v2433_v38 = vrot.slane %v3166_v23, 5  ;;  %v3180_v40 = vld [vmem:[#allocation2 + $0x4] sm:$0x1] }
 0x1a3   : > { %v569_v16 = vsel %vm3138_vm6, %v510_v12, %v568_v9  ;;  %v566_v17 = vsel %vm3142_vm7, %v508_v13, %v565_v10  ;;  %v935_v18 = vld [vmem:[#allocation2 + $0x20] sm:$0xf]  ;;  %v1403_v29 = vrot.slane %v1401_v14, 4  ;;  %v1406_v30 = vrot.slane %v1404_v15, 5  ;;  %v3182_v42 = vld [vmem:[#allocation2 + $0x24] sm:$0x1] }
 0x1a4   : > { %570 = vst [vmem:[#allocation2 + $0x14] sm:$0x1] %v569_v16  ;;  %567 = vst [vmem:[#allocation2 + $0x10] sm:$0xf] %v566_v17  ;;  %955 = vrot.lane.b32.xlu1 %v935_v18, %s3023_s15  ;;  %v3172_v35 = vld [vmem:[#allocation2] sm:$0xe] }
 0x1a5   : > { %v3178_v39 = vld [vmem:[#allocation2 + $0x20] sm:$0xe]  ;;  %v2910_v49 = vrot.slane %v3172_v35, 9  ;;  %v3187_v50 = vld [vmem:[#allocation2 + $0x24] sm:$0x1]  ;;  %v1407_v54 = vor.u32 %v1406_v30, %v1403_v29  ;;  %v1410_v55 = vshll.u32 %v1385_v36, 16 }
 0x1a6   : > { %v522_v24 = vpop.permute.xlu0 %521  ;;  %v520_v25 = vpop.permute.xlu1 %519  ;;  %v758_v41 = vld [vmem:[#allocation2 + $0x20] sm:$0xf]  ;;  %v2929_v58 = vrot.slane %v3178_v39, 9  ;;  %v2208_v59 = vrot.slane %v3180_v40, 5  ;;  %v2449_v62 = vrot.slane %v3182_v42, 5  ;;  %v2224_v4 = vrot.slane %v3187_v50, 5 }
 0x1a7   : > { %v587_v32 = vsel %vm3138_vm6, %v522_v24, %v586_v19  ;;  %v584_v33 = vsel %vm3142_vm7, %v520_v25, %v583_v20  ;;  %v932_v34 = vld [vmem:[#allocation2 + $0x8] sm:$0xf]  ;;  %v3184_v43 = vld [vmem:[#allocation2 + $0x20] sm:$0xe]  ;;  %v3197_v60 = vld [vmem:[#allocation2 + $0xc] sm:$0x1] }
 0x1a8   : > { %588 = vst [vmem:[#allocation2 + $0x2c] sm:$0x1] %v587_v32  ;;  %585 = vst [vmem:[#allocation2 + $0x28] sm:$0xf] %v584_v33  ;;  %949 = vrot.lane.b32.xlu0 %v932_v34, %s3023_s15  ;;  %770 = vrot.lane.b32.xlu1 %v754_v26, %s3024_s16  ;;  %v1392_v44 = vld [vmem:[#allocation2 + $0x20] sm:$0xf] }
 0x1a9   : > { %v3189_v52 = vld [vmem:[#allocation2 + $0x8] sm:$0xe]  ;;  %v2914_v63 = vrot.slane %v3184_v43, 9  ;;  %v1457_v0 = vshrl.u32 %v1392_v44, 16  ;;  %v1460_v2 = vshll.u32 %v1392_v44, 16  ;;  %v2437_v12 = vrot.slane %v3197_v60, 5 }
 0x1aa   : > { %v526_v45 = vpop.permute.xlu0 %525  ;;  %v524_v46 = vpop.permute.xlu1 %523  ;;  %v3199_v61 = vld [vmem:[#allocation2 + $0x8] sm:$0xe]  ;;  %v1673_v3 = vld [vmem:[#allocation2] sm:$0xf]  ;;  %v2926_v5 = vrot.slane %v3189_v52, 9  ;;  %v3210_v14 = vrot.slane %v1407_v54, 4 }
 0x1ab   : > { %v593_v56 = vsel %vm3138_vm6, %v526_v45, %v592_v27  ;;  %v590_v57 = vsel %vm3142_vm7, %v524_v46, %v589_v28  ;;  %v3206_v6 = vld [vmem:[#allocation2 + $0xc] sm:$0x1]  ;;  %v1393_v7 = vld [vmem:[#allocation2 + $0x24] sm:$0x1]  ;;  %v598_v10 = vld [vmem:[#allocation2 + $0x3c] sm:$0x1] }
 0x1ac   : > { %594 = vst [vmem:[#allocation2 + $0x34] sm:$0x1] %v593_v56  ;;  %591 = vst [vmem:[#allocation2 + $0x30] sm:$0xf] %v590_v57  ;;  %778 = vrot.lane.b32.xlu1 %v758_v41, %s3024_s16  ;;  %v595_v11 = vld [vmem:[#allocation2 + $0x38] sm:$0xf]  ;;  %v3332_v39 = vsel %vm3256_vm12, %v2926_v5, %v2437_v12 }
 0x1ad   : > { %v2911_v13 = vrot.slane %v3199_v61, 9  ;;  %v3212_v15 = vrot.slane %v1410_v55, 5  ;;  %v933_v18 = vld [vmem:[#allocation2 + $0x10] sm:$0xf]  ;;  %v1690_v20 = vshrl.u32 %v1673_v3, 16  ;;  %v1693_v24 = vshll.u32 %v1673_v3, 16 }
 0x1ae   : > { %v514_v8 = vpop.permute.xlu0 %513  ;;  %v512_v9 = vpop.permute.xlu1 %511  ;;  %v3220_v25 = vld [vmem:[#allocation2 + $0x10] sm:$0xe]  ;;  %v2212_v26 = vrot.slane %v3206_v6, 5  ;;  %v1459_v27 = vrot.slane %v1457_v0, 4  ;;  %v1462_v28 = vrot.slane %v1460_v2, 5  ;;  %v1466_v29 = vshll.u32 %v1393_v7, 16 }
 0x1af   : > { %v575_v16 = vsel %vm3138_vm6, %v514_v8, %v574_v47  ;;  %v572_v17 = vsel %vm3142_vm7, %v512_v9, %v571_v48  ;;  %v936_v19 = vld [vmem:[#allocation2 + $0x28] sm:$0xf]  ;;  %v3223_v32 = vld [vmem:[#allocation2 + $0x14] sm:$0x1]  ;;  %v3225_v33 = vld [vmem:[#allocation2 + $0x10] sm:$0xe] }
 0x1b0   : > { %576 = vst [vmem:[#allocation2 + $0x1c] sm:$0x1] %v575_v16  ;;  %573 = vst [vmem:[#allocation2 + $0x18] sm:$0xf] %v572_v17  ;;  %951 = vrot.lane.b32.xlu1 %v933_v18, %s3023_s15  ;;  %957 = vrot.lane.b32.xlu0 %v936_v19, %s3023_s15  ;;  %v755_v30 = vld [vmem:[#allocation2 + $0x8] sm:$0xf]  ;;  %v1463_v3 = vor.u32 %v1462_v28, %v1459_v27  ;;  %v3344_v43 = vsel %vm3256_vm12, %v2911_v13, %v2212_v26 }
 0x1b1   : > { %v3227_v34 = vld [vmem:[#allocation2 + $0x14] sm:$0x1]  ;;  %v3229_v44 = vld [vmem:[#allocation2 + $0x28] sm:$0xe]  ;;  %v3231_v45 = vld [vmem:[#allocation2 + $0x2c] sm:$0x1] }
 0x1b2   : > { %v530_v36 = vpop.permute.xlu0 %529  ;;  %v528_v41 = vpop.permute.xlu1 %527  ;;  %v1674_v46 = vld [vmem:[#allocation2 + $0x4] sm:$0x1]  ;;  %v3237_v55 = vld [vmem:[#allocation2 + $0x28] sm:$0xe]  ;;  %v1692_v56 = vrot.slane %v1690_v20, 4  ;;  %v1695_v57 = vrot.slane %v1693_v24, 5 }
 0x1b3   : > { %v599_v47 = vsel %vm3138_vm6, %v530_v36, %v598_v10  ;;  %v596_v48 = vsel %vm3142_vm7, %v528_v41, %v595_v11  ;;  %v937_v54 = vld [vmem:[#allocation2 + $0x30] sm:$0xf]  ;;  %v2927_v0 = vrot.slane %v3220_v25, 9  ;;  %v2441_v2 = vrot.slane %v3223_v32, 5  ;;  %v1681_v53 = vld [vmem:[#allocation2 + $0x20] sm:$0xf] }
 0x1b4   : > { %600 = vst [vmem:[#allocation2 + $0x3c] sm:$0x1] %v599_v47  ;;  %597 = vst [vmem:[#allocation2 + $0x38] sm:$0xf] %v596_v48  ;;  %772 = vrot.lane.b32.xlu0 %v755_v30, %s3024_s16  ;;  %959 = vrot.lane.b32.xlu1 %v937_v54, %s3023_s15  ;;  %v2912_v51 = vrot.slane %v3225_v33, 9  ;;  %v3246_v10 = vrot.slane %v1466_v29, 5  ;;  %v1696_v28 = vor.u32 %v1695_v57, %v1692_v56 }
 0x1b5   : > { %v759_v7 = vld [vmem:[#allocation2 + $0x28] sm:$0xf]  ;;  %v756_v8 = vld [vmem:[#allocation2 + $0x10] sm:$0xf]  ;;  %v3244_v9 = vld [vmem:[#allocation2 + $0x2c] sm:$0x1]  ;;  %v2434_v54 = vsel %vm3256_vm12, %v2925_v37, %v2433_v38  ;;  %v3288_v56 = vsel %vm3256_vm12, %v2910_v49, %v2208_v59  ;;  %v3336_v42 = vsel %vm3256_vm12, %v2927_v0, %v2441_v2 }
 0x1b6   : > { %v1699_v11 = vshll.u32 %v1674_v46, 16  ;;  %v2930_v16 = vrot.slane %v3229_v44, 9  ;;  %v2453_v17 = vrot.slane %v3231_v45, 5  ;;  %v3250_v18 = vld [vmem:[#allocation2 + $0x30] sm:$0xe]  ;;  %v2216_v19 = vrot.slane %v3227_v34, 5 }
 0x1b7   : > { %v2915_v20 = vrot.slane %v3237_v55, 9  ;;  %v3260_v25 = vld [vmem:[#allocation2 + $0x34] sm:$0x1]  ;;  %v3262_v27 = vld [vmem:[#allocation2 + $0x30] sm:$0xe]  ;;  %v1746_v29 = vshrl.u32 %v1681_v53, 16 }
 0x1b8   : > { %v1749_v30 = vshll.u32 %v1681_v53, 16  ;;  %780 = vrot.lane.b32.xlu0 %v759_v7, %s3024_s16  ;;  %774 = vrot.lane.b32.xlu1 %v756_v8, %s3024_s16  ;;  %v2228_v32 = vrot.slane %v3244_v9, 5  ;;  %v3267_v34 = vld [vmem:[#allocation2 + $0x34] sm:$0x1]  ;;  %v3269_v36 = vrot.slane %v1463_v3, 4  ;;  %v2931_v45 = vrot.slane %v3250_v18, 9 }
 0x1b9   : > { %v1682_v41 = vld [vmem:[#allocation2 + $0x24] sm:$0x1]  ;;  %v760_v44 = vld [vmem:[#allocation2 + $0x30] sm:$0xf]  ;;  %v3272_v46 = vld [vmem:[#allocation2 + $0x18] sm:$0xe]  ;;  %v3362_v61 = vsel %vm3256_vm12, %v2912_v51, %v2216_v19 }
 0x1ba   : > { %v3274_v47 = vrot.slane %v1699_v11, 5  ;;  %v1386_v48 = vld [vmem:[#allocation2 + $0x8] sm:$0xf]  ;;  %v2457_v57 = vrot.slane %v3260_v25, 5  ;;  %v3292_v53 = vld [vmem:[#allocation2 + $0x1c] sm:$0x1] }
 0x1bb   : > { %v3294_v23 = vld [vmem:[#allocation2 + $0x18] sm:$0xe]  ;;  %v3303_v35 = vrot.slane %v1696_v28, 4  ;;  %v1748_v38 = vrot.slane %v1746_v29, 4  ;;  %v1751_v40 = vrot.slane %v1749_v30, 5  ;;  %v1755_v59 = vshll.u32 %v1682_v41, 16 }
 0x1bc   : > { %v934_v21 = vld [vmem:[#allocation2 + $0x18] sm:$0xf]  ;;  %782 = vrot.lane.b32.xlu1 %v760_v44, %s3024_s16  ;;  %v1415_v8 = vshrl.u32 %v1386_v48, 16  ;;  %v1418_v11 = vshll.u32 %v1386_v48, 16  ;;  %v2450_v28 = vsel %vm3256_vm12, %v2929_v58, %v2449_v62  ;;  %v3320_v29 = vsel %vm3256_vm12, %v2914_v63, %v2224_v4  ;;  %v3323_v41 = vld [vmem:[#allocation2 + $0x1c] sm:$0x1] }
 0x1bd   : > { %953 = vrot.lane.b32.xlu0 %v934_v21, %s3023_s15  ;;  %v938_v1 = vld [vmem:[#allocation2 + $0x38] sm:$0xf]  ;;  %v3352_v58 = vld [vmem:[#allocation2 + $0x3c] sm:$0x1]  ;;  %v1387_v60 = vld [vmem:[#allocation2 + $0xc] sm:$0x1]  ;;  %v3356_v63 = vsel %vm3256_vm12, %v2930_v16, %v2453_v17  ;;  %v1752_v12 = vor.u32 %v1751_v40, %v1748_v38 }
 0x1be   : > { %v3350_v52 = vld [vmem:[#allocation2 + $0x38] sm:$0xe]  ;;  %v1388_v62 = vld [vmem:[#allocation2 + $0x10] sm:$0xf]  ;;  %v3370_v6 = vld [vmem:[#allocation2 + $0x3c] sm:$0x1] }
 0x1bf   : > { %v3368_v5 = vld [vmem:[#allocation2 + $0x38] sm:$0xe]  ;;  %v1394_v13 = vld [vmem:[#allocation2 + $0x28] sm:$0xf]  ;;  %v1417_v26 = vrot.slane %v1415_v8, 4  ;;  %v1420_v33 = vrot.slane %v1418_v11, 5 }
 0x1c0   : > { %2463 = vrot.lane.b32.xlu1 %v2434_v54, %s3023_s15  ;;  %v1429_v0 = vshrl.u32 %v1388_v62, 16  ;;  %v1432_v2 = vshll.u32 %v1388_v62, 16  ;;  %v1396_v51 = vld [vmem:[#allocation2 + $0x30] sm:$0xf]  ;;  %v3375_v17 = vrot.slane %v1755_v59, 5  ;;  %v1471_v48 = vshrl.u32 %v1394_v13, 16 }
 0x1c1   : > { %961 = vrot.lane.b32.xlu0 %v938_v1, %s3023_s15  ;;  %v1389_v19 = vld [vmem:[#allocation2 + $0x14] sm:$0x1]  ;;  %v1474_v21 = vshll.u32 %v1394_v13, 16  ;;  %v1485_v40 = vshrl.u32 %v1396_v51, 16  ;;  %v1675_v1 = vld [vmem:[#allocation2 + $0x8] sm:$0xf]  ;;  %v1421_v59 = vor.u32 %v1420_v33, %v1417_v26 }
 0x1c2   : > { %v757_v8 = vld [vmem:[#allocation2 + $0x18] sm:$0xf]  ;;  %v2236_v11 = vrot.slane %v3370_v6, 5  ;;  %v3381_v62 = vrot.slane %v1752_v12, 4  ;;  %v1424_v50 = vshll.u32 %v1387_v60, 16  ;;  %v1488_v44 = vshll.u32 %v1396_v51, 16 }
 0x1c3   : > { %v1431_v13 = vrot.slane %v1429_v0, 4  ;;  %v1434_v4 = vrot.slane %v1432_v2, 5  ;;  %v1438_v16 = vshll.u32 %v1389_v19, 16  ;;  %v1395_v38 = vld [vmem:[#allocation2 + $0x2c] sm:$0x1]  ;;  %v1473_v49 = vrot.slane %v1471_v48, 4 }
 0x1c4   : > { %2471 = vrot.lane.b32.xlu1 %v2450_v28, %s3023_s15  ;;  %v1476_v54 = vrot.slane %v1474_v21, 5  ;;  %v1397_v30 = vld [vmem:[#allocation2 + $0x34] sm:$0x1]  ;;  %v1704_v3 = vshrl.u32 %v1675_v1, 16  ;;  %v1707_v7 = vshll.u32 %v1675_v1, 16  ;;  %v3391_v60 = vsel %vm3256_vm12, %v2931_v45, %v2457_v57 }
 0x1c5   : > { %776 = vrot.lane.b32.xlu0 %v757_v8, %s3024_s16  ;;  %v3399_v28 = vsel %vm3256_vm12, %v2915_v20, %v2228_v32  ;;  %v1487_v12 = vrot.slane %v1485_v40, 4  ;;  %v1490_v26 = vrot.slane %v1488_v44, 5  ;;  %v1676_v33 = vld [vmem:[#allocation2 + $0xc] sm:$0x1]  ;;  %v1677_v0 = vld [vmem:[#allocation2 + $0x10] sm:$0xf]  ;;  %v1435_v45 = vor.u32 %v1434_v4, %v1431_v13 }
 0x1c6   : > { %v761_v2 = vld [vmem:[#allocation2 + $0x38] sm:$0xf]  ;;  %v3401_v25 = vrot.slane %v1424_v50, 5  ;;  %v1480_v18 = vshll.u32 %v1395_v38, 16  ;;  %v1706_v51 = vrot.slane %v1704_v3, 4  ;;  %v1709_v19 = vrot.slane %v1707_v7, 5 }
 0x1c7   : > { %v4319_v55 = vrot.slane %v3267_v34, 5  ;;  %v4320_v9 = vrot.slane %v3262_v27, 9  ;;  %v3414_v32 = vrot.slane %v1421_v59, 4  ;;  %v1494_v57 = vshll.u32 %v1397_v30, 16  ;;  %v1678_v44 = vld [vmem:[#allocation2 + $0x14] sm:$0x1] }
 0x1c8   : > { %2238 = vrot.lane.b32.xlu1 %v3288_v56, %s3024_s16  ;;  %v1683_v3 = vld [vmem:[#allocation2 + $0x28] sm:$0xf]  ;;  %v1477_v7 = vor.u32 %v1476_v54, %v1473_v49  ;;  %v1713_v50 = vshll.u32 %v1676_v33, 16  ;;  %v1718_v34 = vshrl.u32 %v1677_v0, 16  ;;  %v1684_v48 = vld [vmem:[#allocation2 + $0x2c] sm:$0x1]  ;;  %v1491_v38 = vor.u32 %v1490_v26, %v1487_v12 }
 0x1c9   : > { %784 = vrot.lane.b32.xlu0 %v761_v2, %s3024_s16  ;;  %v3412_v20 = vsel %vm3256_vm12, %v4320_v9, %v4319_v55  ;;  %v1685_v27 = vld [vmem:[#allocation2 + $0x30] sm:$0xf]  ;;  %v3420_v21 = vrot.slane %v1438_v16, 5  ;;  %v1710_v40 = vor.u32 %v1709_v19, %v1706_v51  ;;  %v1721_v1 = vshll.u32 %v1677_v0, 16  ;;  %v1390_v13 = vld [vmem:[#allocation2 + $0x18] sm:$0xf] }
 0x1ca   : > { %v3422_v8 = vrot.slane %v1480_v18, 5  ;;  %v1727_v30 = vshll.u32 %v1678_v44, 16  ;;  %v1760_v4 = vshrl.u32 %v1683_v3, 16  ;;  %v1763_v59 = vshll.u32 %v1683_v3, 16  ;;  %v3438_v2 = vld [vmem:[#allocation2 + $0x34] sm:$0x1] }
 0x1cb   : > { %v3428_v49 = vrot.slane %v1435_v45, 4  ;;  %v3430_v54 = vrot.slane %v1494_v57, 5  ;;  %v1769_v16 = vshll.u32 %v1684_v48, 16  ;;  %v1774_v12 = vshrl.u32 %v1685_v27, 16  ;;  %v1962_v55 = vld [vmem:[#allocation2] sm:$0xe] }
 0x1cc   : > { %2246 = vrot.lane.b32.xlu1 %v3320_v29, %s3024_s16  ;;  %v3432_v26 = vrot.slane %v1477_v7, 4  ;;  %v3434_v33 = vrot.slane %v1713_v50, 5  ;;  %v3436_v0 = vrot.slane %v1718_v34, 4  ;;  %v1777_v18 = vshll.u32 %v1685_v27, 16  ;;  %v1963_v3 = vld [vmem:[#allocation2 + $0x4] sm:$0x1] }
 0x1cd   : > { %2465 = vrot.lane.b32.xlu0 %v3332_v39, %s3023_s15  ;;  %4321 = vst [vmem:[#allocation4_spill] sm:$0xff] %v3430_v54  ;;  %v3440_v51 = vrot.slane %v1491_v38, 4  ;;  %v3442_v29 = vrot.slane %v1710_v40, 4  ;;  %v3444_v39 = vrot.slane %v1721_v1, 5  ;;  %v1443_v19 = vshrl.u32 %v1390_v13, 16 }
 0x1ce   : > { %4322 = vst [vmem:[#allocation5_spill] sm:$0xff] %v3434_v33  ;;  %v3446_v9 = vrot.slane %v1727_v30, 5  ;;  %v3448_v45 = vrot.slane %v1760_v4, 4  ;;  %v3450_v57 = vrot.slane %v1763_v59, 5  ;;  %v1446_v44 = vshll.u32 %v1390_v13, 16 }
 0x1cf   : > { %4323 = vst [vmem:[#allocation6_spill] sm:$0xff] %v3442_v29  ;;  %v4324_v7 = vrot.slane %v3292_v53, 5  ;;  %v4325_v50 = vrot.slane %v3272_v46, 9  ;;  %v4326_v48 = vrot.slane %v3323_v41, 5  ;;  %v4327_v27 = vrot.slane %v3294_v23, 9 }
 0x1d0   : > { %2467 = vrot.lane.b32.xlu1 %v3336_v42, %s3023_s15  ;;  %v3472_v42 = vrot.slane %v1769_v16, 5  ;;  %v3474_v40 = vrot.slane %v1774_v12, 4  ;;  %v1965_v53 = vld [vmem:[#allocation2 + $0xc] sm:$0x1]  ;;  %v3476_v1 = vrot.slane %v1777_v18, 5  ;;  %v3479_v30 = vrot.slane %v1443_v19, 4 }
 0x1d1   : > { %2473 = vrot.lane.b32.xlu0 %v3356_v63, %s3023_s15  ;;  %v3462_v34 = vsel %vm3256_vm12, %v4325_v50, %v4324_v7  ;;  %v3470_v38 = vsel %vm3256_vm12, %v4327_v27, %v4326_v48  ;;  %v1964_v63 = vld [vmem:[#allocation2 + $0x8] sm:$0xe]  ;;  %v1966_v4 = vld [vmem:[#allocation2 + $0x10] sm:$0xe]  ;;  %v2895_v41 = vrot.slane %v1962_v55, 9  ;;  %v4328_v23 = vrot.slane %v3352_v58, 5 }
 0x1d2   : > { %v4329_v59 = vrot.slane %v3350_v52, 9  ;;  %v4330_v16 = vrot.slane %v3368_v5, 9  ;;  %v1967_v58 = vld [vmem:[#allocation2 + $0x14] sm:$0x1]  ;;  %v1968_v19 = vld [vmem:[#allocation2 + $0x18] sm:$0xe] }
 0x1d3   : > { %v1969_v55 = vld [vmem:[#allocation2 + $0x1c] sm:$0x1]  ;;  %v1970_v7 = vld [vmem:[#allocation2 + $0x20] sm:$0xe]  ;;  %v1971_v50 = vld [vmem:[#allocation2 + $0x24] sm:$0x1] }
 0x1d4   : > { %v3487_v13 = vsel %vm3256_vm12, %v4329_v59, %v4328_v23  ;;  %v3495_v12 = vsel %vm3256_vm12, %v4330_v16, %v2236_v11  ;;  %v3513_v11 = vrot.slane %v1446_v44, 5  ;;  %v1999_v48 = vrot.slane %v1963_v3, 5  ;;  %2475 = vrot.lane.b32.xlu1 %v3391_v60, %s3023_s15  ;;  %v1972_v3 = vld [vmem:[#allocation2 + $0x28] sm:$0xe]  ;;  %v1973_v59 = vld [vmem:[#allocation2 + $0x2c] sm:$0x1] }
 0x1d5   : > { %2240 = vrot.lane.b32.xlu0 %v3344_v43, %s3024_s16  ;;  %v1724_v23 = vor.u32 %v3444_v39, %v3436_v0  ;;  %v1974_v16 = vld [vmem:[#allocation2 + $0x30] sm:$0xe]  ;;  %v1766_v60 = vor.u32 %v3450_v57, %v3448_v45  ;;  %v1780_v43 = vor.u32 %v3476_v1, %v3474_v40  ;;  %v1975_v6 = vld [vmem:[#allocation2 + $0x34] sm:$0x1]  ;;  %v1976_v5 = vld [vmem:[#allocation2 + $0x38] sm:$0xe] }
 0x1d6   : > { %v2896_v27 = vrot.slane %v1964_v63, 9  ;;  %v2003_v52 = vrot.slane %v1965_v53, 5  ;;  %v1977_v18 = vld [vmem:[#allocation2 + $0x3c] sm:$0x1]  ;;  %v2897_v56 = vrot.slane %v1966_v4, 9  ;;  %v2007_v46 = vrot.slane %v1967_v58, 5 }
 0x1d7   : > { %v2898_v44 = vrot.slane %v1968_v19, 9  ;;  %v2899_v33 = vrot.slane %v1970_v7, 9  ;;  %v2011_v29 = vrot.slane %v1969_v55, 5  ;;  %v2015_v0 = vrot.slane %v1971_v50, 5  ;;  %v1391_v53 = vld [vmem:[#allocation2 + $0x1c] sm:$0x1] }
 0x1d8   : > { %v2900_v39 = vrot.slane %v1972_v3, 9  ;;  %v2019_v54 = vrot.slane %v1973_v59, 5  ;;  %2242 = vrot.lane.b32.xlu1 %v3362_v61, %s3024_s16  ;;  %v2000_v45 = vsel %vm3256_vm12, %v2895_v41, %v1999_v48  ;;  %v2901_v57 = vrot.slane %v1974_v16, 9  ;;  %v1109_v16 = vld [vmem:[#allocation2 + $0x4] sm:$0x1] }
 0x1d9   : > { %2248 = vrot.lane.b32.xlu0 %v3399_v28, %s3024_s16  ;;  %v2023_v40 = vrot.slane %v1975_v6, 5  ;;  %v2902_v63 = vrot.slane %v1976_v5, 9  ;;  %v2004_v1 = vsel %vm3256_vm12, %v2896_v27, %v2003_v52  ;;  %v2016_v4 = vsel %vm3256_vm12, %v2899_v33, %v2015_v0  ;;  %v1108_v5 = vld [vmem:[#allocation2] sm:$0xf] }
 0x1da   : > { %v2020_v58 = vsel %vm3256_vm12, %v2900_v39, %v2019_v54  ;;  %v2027_v61 = vrot.slane %v1977_v18, 5  ;;  %v2008_v28 = vsel %vm3256_vm12, %v2897_v56, %v2007_v46  ;;  %v2037_v19 = vcombine.low %v2000_v45, %v2016_v4  ;;  %v1398_v18 = vld [vmem:[#allocation2 + $0x38] sm:$0xf]  ;;  %v1111_v45 = vld [vmem:[#allocation2 + $0xc] sm:$0x1] }
 0x1db   : > { %v2024_v41 = vsel %vm3256_vm12, %v2901_v57, %v2023_v40  ;;  %v2071_v55 = vcombine.low %v2004_v1, %v2020_v58  ;;  %v1449_v6 = vor.u32 %v3513_v11, %v3479_v30  ;;  %v2012_v52 = vsel %vm3256_vm12, %v2898_v44, %v2011_v29  ;;  %v1112_v57 = vld [vmem:[#allocation2 + $0x10] sm:$0xf]  ;;  %v1114_v58 = vld [vmem:[#allocation2 + $0x18] sm:$0xf] }
 0x1dc   : > { %v2028_v33 = vsel %vm3256_vm12, %v2902_v63, %v2027_v61  ;;  %v2045_v54 = vcombine.low %v2008_v28, %v2024_v41  ;;  %2250 = vrot.lane.b32.xlu1 %v3412_v20, %s3024_s16  ;;  %v3559_v56 = vrot.slane %v1724_v23, 4  ;;  %v4331_v46 = vshll.u32 %v3438_v2, 16  ;;  %v1110_v20 = vld [vmem:[#allocation2 + $0x8] sm:$0xf] }
 0x1dd   : > { %2469 = vrot.lane.b32.xlu0 %v3462_v34, %s3023_s15  ;;  %v1452_v30 = vshll.u32 %v1391_v53, 16  ;;  %v2079_v11 = vcombine.low %v2012_v52, %v2028_v33  ;;  %v3565_v29 = vrot.slane %v1766_v60, 4  ;;  %v3568_v24 = vrot.slane %v2037_v19, %v3098_v22  ;;  %v3612_v19 = vld [vmem:[#allocation2 + $0x3c] sm:$0x1] }
 0x1de   : > { %v3563_v7 = vrot.slane %v4331_v46, 5  ;;  %v3571_v50 = vrot.slane %v2045_v54, %v3098_v22  ;;  %v1128_v48 = vshrl.u32 %v1108_v5, 16  ;;  %v3574_v34 = vrot.slane %v2071_v55, %v3098_v22  ;;  %v1113_v46 = vld [vmem:[#allocation2 + $0x14] sm:$0x1] }
 0x1df   : > { %4332 = vst [vmem:[#allocation7_spill] sm:$0xff] %v3568_v24  ;;  %v3577_v27 = vrot.slane %v2079_v11, %v3098_v22  ;;  %v1499_v2 = vshrl.u32 %v1398_v18, 16  ;;  %v1502_v44 = vshll.u32 %v1398_v18, 16  ;;  %v3579_v23 = vrot.slane %v1780_v43, 4  ;;  %v1121_v54 = vld [vmem:[#allocation2 + $0x34] sm:$0x1] }
 0x1e0   : > { %v3581_v3 = vrot.slane %v1449_v6, 4  ;;  %v2053_v59 = vcombine.low %v3568_v24, %v3571_v50  ;;  %v1131_v60 = vshll.u32 %v1108_v5, 16  ;;  %v4333_v0 = vsel %vm3299_vm13, %v3210_v14, %v3212_v15 }
 0x1e1   : > { %1512 = vrot.lane.b32.xlu1 %v4333_v0, %s3024_s16  ;;  %2477 = vrot.lane.b32.xlu0 %v3487_v13, %s3023_s15  ;;  %v2087_v39 = vcombine.low %v3574_v34, %v3577_v27  ;;  %v1142_v40 = vshrl.u32 %v1110_v20, 16  ;;  %v1145_v63 = vshll.u32 %v1110_v20, 16  ;;  %v3603_v15 = vrot.slane %v1452_v30, 5 }
 0x1e2   : > { %v1130_v13 = vrot.slane %v1128_v48, 4  ;;  %v1133_v53 = vrot.slane %v1131_v60, 5  ;;  %v3605_v1 = vrot.slane %v1499_v2, 4  ;;  %v3607_v4 = vrot.slane %v1502_v44, 5  ;;  %v3636_v44 = vld [vmem:[#allocation2 + $0x1c] sm:$0x1] }
 0x1e3   : > { %v1144_v61 = vrot.slane %v1142_v40, 4  ;;  %v1147_v28 = vrot.slane %v1145_v63, 5  ;;  %v3610_v41 = vrot.slane %v2053_v59, %v3102_v31  ;;  %v1137_v55 = vshll.u32 %v1109_v16, 16  ;;  %v1117_v59 = vld [vmem:[#allocation2 + $0x24] sm:$0x1] }
 0x1e4   : > { %v1151_v5 = vshll.u32 %v1111_v45, 16  ;;  %v1156_v6 = vshrl.u32 %v1112_v57, 16  ;;  %v4335_v52 = vsel %vm3299_vm13, %v3269_v36, %v3246_v10  ;;  %v3631_v18 = vrot.slane %v2087_v39, %v3102_v31  ;;  %v1116_v10 = vld [vmem:[#allocation2 + $0x20] sm:$0xf]  ;;  %v1118_v45 = vld [vmem:[#allocation2 + $0x28] sm:$0xf] }
 0x1e5   : > { %4334 = vst [vmem:[#allocation8_spill] sm:$0xff] %v3610_v41  ;;  %1520 = vrot.lane.b32.xlu1 %v4335_v52, %s3024_s16  ;;  %2244 = vrot.lane.b32.xlu0 %v3470_v38, %s3024_s16  ;;  %v1159_v30 = vshll.u32 %v1112_v57, 16  ;;  %v1134_v36 = vor.u32 %v1133_v53, %v1130_v13  ;;  %v1170_v20 = vshrl.u32 %v1114_v58, 16  ;;  %v1173_v38 = vshll.u32 %v1114_v58, 16  ;;  %v1119_v58 = vld [vmem:[#allocation2 + $0x2c] sm:$0x1] }
 0x1e6   : > { %4336 = vst [vmem:[#allocation9_spill] sm:$0xff] %v3631_v18  ;;  %v1158_v11 = vrot.slane %v1156_v6, 4  ;;  %v1148_v16 = vor.u32 %v1147_v28, %v1144_v61  ;;  %v4337_v0 = vmov 0   ;;  %v3642_v57 = vrot.slane %v1137_v55, 5  ;;  %v1122_v2 = vld [vmem:[#allocation2 + $0x38] sm:$0xf] }
 0x1e7   : > { %v1161_v60 = vrot.slane %v1159_v30, 5  ;;  %v3640_v39 = vcombine.high %v3610_v41, %v4337_v0  ;;  %v3644_v40 = vrot.slane %v1151_v5, 5  ;;  %v1165_v63 = vshll.u32 %v1113_v46, 16  ;;  %v1120_v5 = vld [vmem:[#allocation2 + $0x30] sm:$0xf] }
 0x1e8   : > { %v4338_v13 = vsel %vm3299_vm13, %v3303_v35, %v3274_v47  ;;  %v3656_v53 = vcombine.high %v3631_v18, %v4337_v0  ;;  %v1172_v61 = vrot.slane %v1170_v20, 4  ;;  %v1175_v28 = vrot.slane %v1173_v38, 5 }
 0x1e9   : > { %1801 = vrot.lane.b32.xlu1 %v4338_v13, %s3023_s15  ;;  %2252 = vrot.lane.b32.xlu0 %v3495_v12, %s3024_s16  ;;  %v1184_v55 = vshrl.u32 %v1116_v10, 16  ;;  %v1135_v6 = vrot.slane %v1134_v36, 4  ;;  %v1162_v52 = vor.u32 %v1161_v60, %v1158_v11  ;;  %v1187_v46 = vshll.u32 %v1116_v10, 16  ;;  %v1123_v11 = vld [vmem:[#allocation2 + $0x3c] sm:$0x1] }
 0x1ea   : > { %v1193_v30 = vshll.u32 %v1117_v59, 16  ;;  %v1149_v33 = vrot.slane %v1148_v16, 4  ;;  %v1198_v35 = vshrl.u32 %v1118_v45, 16  ;;  %v1201_v13 = vshll.u32 %v1118_v45, 16 }
 0x1eb   : > { %v1186_v47 = vrot.slane %v1184_v55, 4  ;;  %v1167_v12 = vrot.slane %v1165_v63, 5  ;;  %v1179_v14 = vshll.u32 %v3636_v44, 16  ;;  %v1189_v43 = vrot.slane %v1187_v46, 5 }
 0x1ec   : > { %v1207_v48 = vshll.u32 %v1119_v58, 16  ;;  %v4339_v36 = vsel %vm3299_vm13, %v3381_v62, %v3375_v17  ;;  %v4340_v10 = vsel %vm3299_vm13, %v3414_v32, %v3401_v25  ;;  %v1176_v20 = vor.u32 %v1175_v28, %v1172_v61  ;;  %v1679_v58 = vld [vmem:[#allocation2 + $0x18] sm:$0xf] }
 0x1ed   : > { %1809 = vrot.lane.b32.xlu1 %v4339_v36, %s3023_s15  ;;  %1514 = vrot.lane.b32.xlu0 %v4340_v10, %s3024_s16  ;;  %v1200_v38 = vrot.slane %v1198_v35, 4  ;;  %v1203_v44 = vrot.slane %v1201_v13, 5  ;;  %v1212_v59 = vshrl.u32 %v1120_v5, 16  ;;  %v1163_v16 = vrot.slane %v1162_v52, 4 }
 0x1ee   : > { %v1190_v60 = vor.u32 %v1189_v43, %v1186_v47  ;;  %v1195_v45 = vrot.slane %v1193_v30, 5  ;;  %v1215_v63 = vshll.u32 %v1120_v5, 16  ;;  %v1209_v17 = vrot.slane %v1207_v48, 5 }
 0x1ef   : > { %v1204_v55 = vor.u32 %v1203_v44, %v1200_v38  ;;  %v1214_v62 = vrot.slane %v1212_v59, 4  ;;  %v1226_v46 = vshrl.u32 %v1122_v2, 16  ;;  %v1221_v41 = vshll.u32 %v1121_v54, 16 }
 0x1f0   : > { %v1191_v36 = vrot.slane %v1190_v60, 4  ;;  %v1217_v18 = vrot.slane %v1215_v63, 5  ;;  %v1229_v24 = vshll.u32 %v1122_v2, 16  ;;  %v4341_v25 = vsel %vm3299_vm13, %v3428_v49, %v3420_v21  ;;  %v607_v60 = vld [vmem:[#allocation2 + $0x30] sm:$0xf] }
 0x1f1   : > { %1516 = vrot.lane.b32.xlu1 %v4341_v25, %s3024_s16  ;;  %v4342_v32 = vsel %vm3299_vm13, %v3432_v26, %v3422_v8  ;;  %v1205_v43 = vrot.slane %v1204_v55, 4  ;;  %v1228_v48 = vrot.slane %v1226_v46, 4  ;;  %v1235_v61 = vshll.u32 %v1123_v11, 16  ;;  %v605_v25 = vld [vmem:[#allocation2 + $0x20] sm:$0xf] }
 0x1f2   : > { %1522 = vrot.lane.b32.xlu0 %v4342_v32, %s3024_s16  ;;  %v1732_v28 = vshrl.u32 %v1679_v58, 16  ;;  %v1140_v54 = vsel %vm3299_vm13, %v1135_v6, %v3642_v57  ;;  %v1196_v2 = vsel %vm3299_vm13, %v1191_v36, %v1195_v45  ;;  %v1218_v21 = vor.u32 %v1217_v18, %v1214_v62  ;;  %v4343_v57 = vld [vmem:[#allocation4_spill] sm:$0xff]  ;;  %v603_v36 = vld [vmem:[#allocation2 + $0x10] sm:$0xf] }
 0x1f3   : > { %v1231_v49 = vrot.slane %v1229_v24, 5  ;;  %v1154_v5 = vsel %vm3299_vm13, %v1149_v33, %v3644_v40  ;;  %v1177_v52 = vrot.slane %v1176_v20, 4  ;;  %v1210_v8 = vsel %vm3299_vm13, %v1205_v43, %v1209_v17  ;;  %v4345_v24 = vld [vmem:[#allocation6_spill] sm:$0xff]  ;;  %v4346_v33 = vld [vmem:[#allocation5_spill] sm:$0xff] }
 0x1f4   : > { %v1735_v26 = vshll.u32 %v1679_v58, 16  ;;  %v1219_v30 = vrot.slane %v1218_v21, 4  ;;  %v1223_v47 = vrot.slane %v1221_v41, 5  ;;  %v1247_v13 = vcombine.low %v1140_v54, %v1196_v2  ;;  %v1687_v20 = vld [vmem:[#allocation2 + $0x38] sm:$0xf] }
 0x1f5   : > { %v1232_v35 = vor.u32 %v1231_v49, %v1228_v48  ;;  %v4344_v18 = vsel %vm3299_vm13, %v3440_v51, %v4343_v57  ;;  %v4347_v40 = vsel %vm3299_vm13, %v4345_v24, %v4346_v33  ;;  %v1168_v6 = vsel %vm3299_vm13, %v1163_v16, %v1167_v12  ;;  %v606_v16 = vld [vmem:[#allocation2 + $0x28] sm:$0xf]  ;;  %v601_v49 = vld [vmem:[#allocation2] sm:$0xf] }
 0x1f6   : > { %1524 = vrot.lane.b32.xlu1 %v4344_v18, %s3024_s16  ;;  %1803 = vrot.lane.b32.xlu0 %v4347_v40, %s3023_s15  ;;  %v1181_v41 = vrot.slane %v1179_v14, 5  ;;  %v1237_v10 = vrot.slane %v1235_v61, 5  ;;  %v1734_v11 = vrot.slane %v1732_v28, 4  ;;  %v1224_v38 = vsel %vm3299_vm13, %v1219_v30, %v1223_v47  ;;  %v602_v48 = vld [vmem:[#allocation2 + $0x8] sm:$0xf] }
 0x1f7   : > { %v1233_v44 = vrot.slane %v1232_v35, 4  ;;  %v1281_v51 = vcombine.low %v1154_v5, %v1210_v8  ;;  %v1737_v59 = vrot.slane %v1735_v26, 5  ;;  %v2113_v45 = vpack.i.b16 %v3656_v53, %v3640_v39  ;;  %v608_v61 = vld [vmem:[#allocation2 + $0x38] sm:$0xf] }
 0x1f8   : > { %v4348_v63 = vor.u32 %v3607_v4, %v3605_v1  ;;  %v1182_v14 = vsel %vm3299_vm13, %v1177_v52, %v1181_v41  ;;  %v1255_v12 = vcombine.low %v1168_v6, %v1224_v38  ;;  %v1254_v17 = vrot.slane %v1247_v13, %v3098_v22 }
 0x1f9   : > { %v1238_v55 = vsel %vm3299_vm13, %v1233_v44, %v1237_v10  ;;  %v1788_v62 = vshrl.u32 %v1687_v20, 16  ;;  %v1791_v46 = vshll.u32 %v1687_v20, 16  ;;  %v4349_v1 = vsel %vm3299_vm13, %v3559_v56, %v3446_v9  ;;  %v1680_v9 = vld [vmem:[#allocation2 + $0x1c] sm:$0x1] }
 0x1fa   : > { %v1506_v58 = vrot.slane %v4348_v63, 4  ;;  %1805 = vrot.lane.b32.xlu1 %v4349_v1, %s3023_s15  ;;  %v4350_v4 = vsel %vm3299_vm13, %v3565_v29, %v3472_v42  ;;  %v1262_v32 = vrot.slane %v1255_v12, %v3098_v22  ;;  %v1289_v43 = vcombine.low %v1182_v14, %v1238_v55  ;;  %v604_v29 = vld [vmem:[#allocation2 + $0x18] sm:$0xf] }
 0x1fb   : > { %1811 = vrot.lane.b32.xlu0 %v4350_v4, %s3023_s15  ;;  %v617_v28 = vcombine.low %v603_v36, %v607_v60  ;;  %v4351_v54 = vshll.u32 %v3612_v19, 16  ;;  %v1288_v21 = vrot.slane %v1281_v51, %v3098_v22  ;;  %v1738_v56 = vor.u32 %v1737_v59, %v1734_v11 }
 0x1fc   : > { %v643_v5 = vcombine.low %v602_v48, %v606_v16  ;;  %v1264_v52 = vcombine.high %v1254_v17, %v1262_v32  ;;  %v1296_v8 = vrot.slane %v1289_v43, %v3098_v22  ;;  %v1263_v42 = vcombine.low %v1254_v17, %v1262_v32 }
 0x1fd   : > { %v1510_v2 = vrot.slane %v4351_v54, 5  ;;  %v609_v26 = vcombine.low %v601_v49, %v605_v25  ;;  %v1790_v47 = vrot.slane %v1788_v62, 4  ;;  %v1793_v35 = vrot.slane %v1791_v46, 5 }
 0x1fe   : > { %v651_v13 = vcombine.low %v604_v29, %v608_v61  ;;  %v4352_v19 = vsel %vm3299_vm13, %v3579_v23, %v3563_v7  ;;  %v4353_v57 = vsel %vm3299_vm13, %v3581_v3, %v3603_v15  ;;  %v2904_v18 = vcombine.low %v2113_v45, %v2113_v45  ;;  %v1688_v3 = vld [vmem:[#allocation2 + $0x3c] sm:$0x1] }
 0x1ff   : > { %v1511_v30 = vsel %vm3299_vm13, %v1506_v58, %v1510_v2  ;;  %1813 = vrot.lane.b32.xlu1 %v4352_v19, %s3023_s15  ;;  %1518 = vrot.lane.b32.xlu0 %v4353_v57, %s3024_s16  ;;  %v1298_v24 = vcombine.high %v1288_v21, %v1296_v8  ;;  %v1741_v33 = vshll.u32 %v1680_v9, 16  ;;  %v624_v40 = vrot.slane %v617_v28, %v3098_v22 }
 0x200   : > { %v3752_v6 = vrot.slane %v1263_v42, %v3102_v31  ;;  %v1297_v41 = vcombine.low %v1288_v21, %v1296_v8  ;;  %v650_v10 = vrot.slane %v643_v5, %v3098_v22  ;;  %v658_v7 = vrot.slane %v651_v13, %v3098_v22 }
 0x201   : > { %v1278_v23 = vrot.slane %v1264_v52, %v3102_v31  ;;  %v1312_v11 = vrot.slane %v1298_v24, %v3102_v31  ;;  %v1739_v20 = vrot.slane %v1738_v56, 4  ;;  %v616_v15 = vrot.slane %v609_v26, %v3098_v22 }
 0x202   : > { %v3760_v38 = vrot.slane %v1297_v41, %v3102_v31  ;;  %v1794_v44 = vor.u32 %v1793_v35, %v1790_v47  ;;  %v660_v51 = vcombine.high %v650_v10, %v658_v7  ;;  %v659_v59 = vcombine.low %v650_v10, %v658_v7  ;;  %v4354_v41 = vld [vmem:[#allocation7_spill] sm:$0xff] }
 0x203   : > { %2135 = vrot.lane.b32.xlu1 %v2904_v18, %s3025_s17  ;;  %1526 = vrot.lane.b32.xlu0 %v1511_v30, %s3024_s16  ;;  %v1329_v60 = vpack.i.b16 %v1312_v11, %v1278_v23  ;;  %v626_v45 = vcombine.high %v616_v15, %v624_v40  ;;  %v625_v63 = vcombine.low %v616_v15, %v624_v40  ;;  %v1743_v58 = vrot.slane %v1741_v33, 5 }
 0x204   : > { %v1318_v14 = vshrl.u32 %v3752_v6, 16  ;;  %v1319_v12 = vshrl.u32 %v3760_v38, 16  ;;  %v1797_v16 = vshll.u32 %v1688_v3, 16  ;;  %v1313_v17 = vcombine.high %v3760_v38, %v4337_v0 }
 0x205   : > { %v2877_v55 = vcombine.low %v1329_v60, %v1329_v60  ;;  %v674_v62 = vrot.slane %v660_v51, %v3102_v31  ;;  %v3770_v46 = vrot.slane %v659_v59, %v3102_v31  ;;  %v1744_v36 = vsel %vm3299_vm13, %v1739_v20, %v1743_v58  ;;  %v4355_v59 = vld [vmem:[#allocation8_spill] sm:$0xff]  ;;  %v4356_v60 = vld [vmem:[#allocation9_spill] sm:$0xff] }
 0x206   : > { %v1320_v25 = vpack.i.b16 %v1319_v12, %v1318_v14  ;;  %v1795_v1 = vrot.slane %v1794_v44, 4  ;;  %v1279_v4 = vcombine.high %v3752_v6, %v4337_v0  ;;  %v640_v32 = vrot.slane %v626_v45, %v3102_v31 }
 0x207   : > { %1353 = vrot.lane.b32.xlu1 %v2877_v55, %s3026_s18  ;;  %1807 = vrot.lane.b32.xlu0 %v1744_v36, %s3023_s15  ;;  %v3780_v43 = vrot.slane %v625_v63, %v3102_v31  ;;  %v1799_v48 = vrot.slane %v1797_v16, 5  ;;  %v1331_v61 = vshrl.u32 %v1312_v11, 16  ;;  %v681_v21 = vshrl.u32 %v3770_v46, 16 }
 0x208   : > { %v2874_v28 = vcombine.low %v1320_v25, %v1320_v25  ;;  %v1323_v54 = vpack.i.b16 %v1313_v17, %v1279_v4  ;;  %v691_v2 = vpack.i.b16 %v674_v62, %v640_v32  ;;  %v1330_v56 = vshrl.u32 %v1278_v23, 16 }
 0x209   : > { %v1800_v9 = vsel %vm3299_vm13, %v1795_v1, %v1799_v48  ;;  %v680_v49 = vshrl.u32 %v3780_v43, 16  ;;  %v1314_v52 = vcombine.high %v1312_v11, %v4337_v0  ;;  %v675_v26 = vcombine.high %v3770_v46, %v4337_v0 }
 0x20a   : > { %v1332_v5 = vpack.i.b16 %v1331_v61, %v1330_v56  ;;  %v2875_v8 = vcombine.low %v1323_v54, %v1323_v54  ;;  %v2856_v42 = vcombine.low %v691_v2, %v691_v2  ;;  %v1280_v37 = vcombine.high %v1278_v23, %v4337_v0 }
 0x20b   : > { %1341 = vrot.lane.b32.xlu1 %v2874_v28, %s3027_s19  ;;  %1815 = vrot.lane.b32.xlu0 %v1800_v9, %s3023_s15  ;;  %v682_v29 = vpack.i.b16 %v681_v21, %v680_v49  ;;  %v641_v30 = vcombine.high %v3780_v43, %v4337_v0  ;;  %v1325_v35 = vshrl.u32 %v1313_v17, 16  ;;  %v693_v13 = vshrl.u32 %v674_v62, 16 }
 0x20c   : > { %v1335_v47 = vpack.i.b16 %v1314_v52, %v1280_v37  ;;  %v2878_v19 = vcombine.low %v1332_v5, %v1332_v5  ;;  %v2088_v24 = vcombine.high %v3574_v34, %v3577_v27  ;;  %v1324_v33 = vshrl.u32 %v1279_v4, 16 }
 0x20d   : > { %v2853_v57 = vcombine.low %v682_v29, %v682_v29  ;;  %v685_v18 = vpack.i.b16 %v675_v26, %v641_v30  ;;  %v692_v40 = vshrl.u32 %v640_v32, 16  ;;  %v2054_v10 = vcombine.high %v4354_v41, %v3571_v50 }
 0x20e   : > { %v1317_v7 = vpack.i.b16 %v3760_v38, %v3752_v6  ;;  %v679_v23 = vpack.i.b16 %v3770_v46, %v3780_v43  ;;  %v1326_v11 = vpack.i.b16 %v1325_v35, %v1324_v33  ;;  %v1337_v3 = vshrl.u32 %v1314_v52, 16 }
 0x20f   : > { %1345 = vrot.lane.b32.xlu1 %v2875_v8, %s3025_s17  ;;  %715 = vrot.lane.b32.xlu0 %v2856_v42, %s3026_s18  ;;  %v694_v20 = vpack.i.b16 %v693_v13, %v692_v40  ;;  %v2879_v27 = vcombine.low %v1335_v47, %v1335_v47  ;;  %v2854_v15 = vcombine.low %v685_v18, %v685_v18  ;;  %v1336_v51 = vshrl.u32 %v1280_v37, 16 }
 0x210   : > { %v2102_v44 = vrot.slane %v2088_v24, %v3102_v31  ;;  %v2107_v45 = vpack.i.b16 %v4356_v60, %v4355_v59  ;;  %v642_v50 = vcombine.high %v640_v32, %v4337_v0  ;;  %v2068_v63 = vrot.slane %v2054_v10, %v3102_v31 }
 0x211   : > { %v676_v58 = vcombine.high %v674_v62, %v4337_v0  ;;  %v2876_v14 = vcombine.low %v1326_v11, %v1326_v11  ;;  %v2857_v12 = vcombine.low %v694_v20, %v694_v20  ;;  %v1338_v16 = vpack.i.b16 %v1337_v3, %v1336_v51 }
 0x212   : > { %v3806_v34 = vpop.permute.xlu1 %947  ;;  %v687_v55 = vshrl.u32 %v675_v26, 16  ;;  %v2119_v36 = vpack.i.b16 %v2102_v44, %v2068_v63  ;;  %v698_v1 = vshrl.u32 %v642_v50, 16  ;;  %v686_v32 = vshrl.u32 %v641_v30, 16 }
 0x213   : > { %1357 = vrot.lane.b32.xlu1 %v2878_v19, %s3028_s20  ;;  %703 = vrot.lane.b32.xlu0 %v2853_v57, %s3027_s19  ;;  %v3816_v25 = vpack.i.b16 %v676_v58, %v642_v50  ;;  %v699_v4 = vshrl.u32 %v676_v58, 16  ;;  %v2880_v62 = vcombine.low %v1338_v16, %v1338_v16  ;;  %v2109_v2 = vshrl.u32 %v4356_v60, 16 }
 0x214   : > { %v2906_v28 = vcombine.low %v2119_v36, %v2119_v36  ;;  %v688_v54 = vpack.i.b16 %v687_v55, %v686_v32  ;;  %v2108_v21 = vshrl.u32 %v4355_v59, 16  ;;  %v2121_v52 = vshrl.u32 %v2102_v44, 16 }
 0x215   : > { %v3820_v48 = vpack.i.b16 %v699_v4, %v698_v1  ;;  %v2120_v8 = vshrl.u32 %v2068_v63, 16  ;;  %v2104_v30 = vcombine.high %v2102_v44, %v4337_v0  ;;  %v2070_v47 = vcombine.high %v2068_v63, %v4337_v0 }
 0x216   : > { %v956_v17 = vpop.permute.xlu1 %955  ;;  %v2855_v49 = vcombine.low %v688_v54, %v688_v54  ;;  %v2110_v5 = vpack.i.b16 %v2109_v2, %v2108_v21  ;;  %v2115_v18 = vshrl.u32 %v3656_v53, 16  ;;  %v2114_v24 = vshrl.u32 %v3640_v39, 16 }
 0x217   : > { %1361 = vrot.lane.b32.xlu1 %v2879_v27, %s3029_s23  ;;  %707 = vrot.lane.b32.xlu0 %v2854_v15, %s3025_s17  ;;  %v2122_v37 = vpack.i.b16 %v2121_v52, %v2120_v8  ;;  %v2125_v57 = vpack.i.b16 %v2104_v30, %v2070_v47  ;;  %v2127_v20 = vshrl.u32 %v2104_v30, 16  ;;  %v971_v3 = vcombine.low %v3806_v34, %v956_v17 }
 0x218   : > { %v2903_v26 = vcombine.low %v2110_v5, %v2110_v5  ;;  %v2116_v11 = vpack.i.b16 %v2115_v18, %v2114_v24  ;;  %v2126_v27 = vshrl.u32 %v2070_v47, 16  ;;  %vm3033_vm6 = vmmov 0  }
 0x219   : > { %v2907_v19 = vcombine.low %v2122_v37, %v2122_v37  ;;  %v2908_v10 = vcombine.low %v2125_v57, %v2125_v57  ;;  %v978_v63 = vrot.slane %v971_v3, %v3098_v22  ;;  %vm2665_vm7 = vcmask 1043456  }
 0x21a   : > { %v3822_v61 = vpop.permute.xlu1 %770  ;;  %v950_v9 = vpop.permute.xlu0 %949  ;;  %v2905_v53 = vcombine.low %v2116_v11, %v2116_v11  ;;  %v2128_v50 = vpack.i.b16 %v2127_v20, %v2126_v27 }
 0x21b   : > { %1349 = vrot.lane.b32.xlu1 %v2876_v14, %s3030_s24  ;;  %719 = vrot.lane.b32.xlu0 %v2857_v12, %s3028_s20 }
 0x21c   : > { %v2909_v34 = vcombine.low %v2128_v50, %v2128_v50 }
 0x21e   : > { %v779_v56 = vpop.permute.xlu1 %778 }
 0x21f   : > { %1365 = vrot.lane.b32.xlu1 %v2880_v62, %s3031_s25  ;;  %2143 = vrot.lane.b32.xlu0 %v2906_v28, %s3026_s18  ;;  %v794_v17 = vcombine.low %v3822_v61, %v779_v56 }
 0x222   : > { %v958_v42 = vpop.permute.xlu0 %957  ;;  %v952_v29 = vpop.permute.xlu1 %951 }
 0x223   : > { %711 = vrot.lane.b32.xlu0 %v2855_v49, %s3030_s24  ;;  %v1005_v39 = vcombine.low %v950_v9, %v958_v42  ;;  %v801_v9 = vrot.slane %v794_v17, %v3098_v22 }
 0x225   : > { %v1012_v36 = vrot.slane %v1005_v39, %v3098_v22 }
 0x226   : > { %v773_v35 = vpop.permute.xlu0 %772  ;;  %v960_v13 = vpop.permute.xlu1 %959 }
 0x227   : > { %2131 = vrot.lane.b32.xlu0 %v2903_v26, %s3027_s19  ;;  %v979_v33 = vcombine.low %v952_v29, %v960_v13 }
 0x229   : > { %v986_v15 = vrot.slane %v979_v33, %v3098_v22 }
 0x22a   : > { %v781_v40 = vpop.permute.xlu0 %780  ;;  %v775_v41 = vpop.permute.xlu1 %774 }
 0x22b   : > { %2147 = vrot.lane.b32.xlu0 %v2907_v19, %s3028_s20  ;;  %v987_v58 = vcombine.low %v978_v63, %v986_v15  ;;  %v988_v1 = vcombine.high %v978_v63, %v986_v15  ;;  %v828_v61 = vcombine.low %v773_v35, %v781_v40 }
 0x22d   : > { %v3847_v32 = vrot.slane %v987_v58, %v3102_v31  ;;  %v1002_v56 = vrot.slane %v988_v1, %v3102_v31  ;;  %v835_v35 = vrot.slane %v828_v61, %v3098_v22 }
 0x22e   : > { %v783_v51 = vpop.permute.xlu1 %782 }
 0x22f   : > { %2151 = vrot.lane.b32.xlu0 %v2908_v10, %s3029_s23  ;;  %v954_v44 = vpop.permute.xlu0 %953  ;;  %v802_v14 = vcombine.low %v775_v41, %v783_v51  ;;  %v1042_v29 = vshrl.u32 %v3847_v32, 16  ;;  %v3881_v3 = vcombine.high %v3847_v32, %v4337_v0  ;;  %v1054_v39 = vshrl.u32 %v1002_v56, 16 }
 0x230   : > { %v3906_v61 = vcombine.high %v1002_v56, %v4337_v0 }
 0x231   : > { %v809_v62 = vrot.slane %v802_v14, %v3098_v22 }
 0x232   : > { %v3840_v16 = vpop.permute.xlu1 %2463 }
 0x233   : > { %2139 = vrot.lane.b32.xlu0 %v2905_v53, %s3030_s24  ;;  %v962_v12 = vpop.permute.xlu0 %961  ;;  %v811_v52 = vcombine.high %v801_v9, %v809_v62  ;;  %v810_v26 = vcombine.low %v801_v9, %v809_v62 }
 0x234   : > { %v1013_v55 = vcombine.low %v954_v44, %v962_v12 }
 0x235   : > { %v825_v33 = vrot.slane %v811_v52, %v3102_v31  ;;  %v3876_v10 = vrot.slane %v810_v26, %v3102_v31 }
 0x236   : > { %v1020_v4 = vrot.slane %v1013_v55, %v3098_v22  ;;  %v3850_v54 = vpop.permute.xlu1 %2471 }
 0x237   : > { %2155 = vrot.lane.b32.xlu0 %v2909_v34, %s3031_s25  ;;  %v777_v28 = vpop.permute.xlu0 %776  ;;  %v827_v58 = vcombine.high %v825_v33, %v4337_v0  ;;  %v865_v12 = vshrl.u32 %v3876_v10, 16 }
 0x238   : > { %v1021_v2 = vcombine.low %v1012_v36, %v1020_v4  ;;  %v1022_v21 = vcombine.high %v1012_v36, %v1020_v4 }
 0x239   : > { %v883_v52 = vshrl.u32 %v827_v58, 16 }
 0x23a   : > { %v3855_v49 = vrot.slane %v1021_v2, %v3102_v31  ;;  %v1036_v5 = vrot.slane %v1022_v21, %v3102_v31  ;;  %v3858_v42 = vpop.permute.xlu1 %2238 }
 0x23b   : > { %v785_v8 = vpop.permute.xlu0 %784 }
 0x23c   : > { %v836_v37 = vcombine.low %v777_v28, %v785_v8  ;;  %v1053_v30 = vpack.i.b16 %v1036_v5, %v1002_v56  ;;  %v1043_v47 = vshrl.u32 %v3855_v49, 16  ;;  %v1041_v13 = vpack.i.b16 %v3855_v49, %v3847_v32 }
 0x23d   : > { %v3868_v24 = vcombine.high %v3855_v49, %v4337_v0  ;;  %v1055_v27 = vshrl.u32 %v1036_v5, 16  ;;  %v3894_v17 = vcombine.high %v1036_v5, %v4337_v0 }
 0x23e   : > { %v843_v19 = vrot.slane %v836_v37, %v3098_v22  ;;  %v2870_v57 = vcombine.low %v1053_v30, %v1053_v30  ;;  %v1044_v18 = vpack.i.b16 %v1043_v47, %v1042_v29  ;;  %v3873_v41 = vpop.permute.xlu1 %2246  ;;  %v3914_v29 = vcombine.high %v3876_v10, %v4337_v0 }
 0x23f   : > { %v3871_v40 = vpop.permute.xlu0 %2465  ;;  %v1047_v53 = vpack.i.b16 %v3868_v24, %v3881_v3  ;;  %v1056_v55 = vpack.i.b16 %v1055_v27, %v1054_v39  ;;  %v1059_v26 = vpack.i.b16 %v3894_v17, %v3906_v61 }
 0x240   : > { %v844_v11 = vcombine.low %v835_v35, %v843_v19  ;;  %v845_v20 = vcombine.high %v835_v35, %v843_v19  ;;  %1077 = vrot.lane.b32.xlu0 %v2870_v57, %s3026_s18  ;;  %v2867_v51 = vcombine.low %v1044_v18, %v1044_v18  ;;  %v877_v18 = vshrl.u32 %v825_v33, 16 }
 0x241   : > { %v2868_v4 = vcombine.low %v1047_v53, %v1047_v53  ;;  %v2871_v30 = vcombine.low %v1056_v55, %v1056_v55 }
 0x242   : > { %v3884_v15 = vrot.slane %v844_v11, %v3102_v31  ;;  %v859_v44 = vrot.slane %v845_v20, %v3102_v31  ;;  %v2468_v63 = vpop.permute.xlu1 %2467  ;;  %v2872_v20 = vcombine.low %v1059_v26, %v1059_v26  ;;  %v1049_v26 = vshrl.u32 %v3868_v24, 16 }
 0x243   : > { %v2474_v50 = vpop.permute.xlu0 %2473 }
 0x244   : > { %1065 = vrot.lane.b32.xlu0 %v2867_v51, %s3027_s19  ;;  %v876_v14 = vpack.i.b16 %v859_v44, %v825_v33  ;;  %v866_v34 = vshrl.u32 %v3884_v15, 16  ;;  %v861_v36 = vcombine.high %v859_v44, %v4337_v0  ;;  %v864_v1 = vpack.i.b16 %v3884_v15, %v3876_v10 }
 0x245   : > { %v3901_v2 = vcombine.high %v3884_v15, %v4337_v0  ;;  %v878_v35 = vshrl.u32 %v859_v44, 16  ;;  %v2521_v44 = vcombine.low %v3871_v40, %v2474_v50  ;;  %v2262_v50 = vcombine.low %v3858_v42, %v3873_v41 }
 0x246   : > { %v2863_v62 = vcombine.low %v876_v14, %v876_v14  ;;  %v867_v28 = vpack.i.b16 %v866_v34, %v865_v12  ;;  %v2476_v9 = vpop.permute.xlu1 %2475  ;;  %v3908_v5 = vpack.i.b16 %v861_v36, %v827_v58  ;;  %v884_v8 = vshrl.u32 %v861_v36, 16 }
 0x247   : > { %v3903_v21 = vpop.permute.xlu0 %2240  ;;  %v870_v47 = vpack.i.b16 %v3901_v2, %v3914_v29  ;;  %v2495_v11 = vcombine.low %v2468_v63, %v2476_v9  ;;  %v879_v51 = vpack.i.b16 %v878_v35, %v877_v18  ;;  %v2487_v58 = vcombine.low %v3840_v16, %v3850_v54 }
 0x248   : > { %1069 = vrot.lane.b32.xlu0 %v2868_v4, %s3025_s17  ;;  %900 = vrot.lane.b32.xlu1 %v2863_v62, %s3026_s18  ;;  %v3918_v37 = vpack.i.b16 %v884_v8, %v883_v52  ;;  %v2860_v56 = vcombine.low %v867_v28, %v867_v28  ;;  %v2528_v36 = vrot.slane %v2521_v44, %v3098_v22 }
 0x249   : > { %v2861_v27 = vcombine.low %v870_v47, %v870_v47  ;;  %v2502_v14 = vrot.slane %v2495_v11, %v3098_v22  ;;  %v2864_v12 = vcombine.low %v879_v51, %v879_v51  ;;  %v2494_v63 = vrot.slane %v2487_v58, %v3098_v22 }
 0x24a   : > { %v2243_v57 = vpop.permute.xlu1 %2242  ;;  %v2269_v24 = vrot.slane %v2262_v50, %v3098_v22 }
 0x24b   : > { %v2249_v19 = vpop.permute.xlu0 %2248  ;;  %v2504_v16 = vcombine.high %v2494_v63, %v2502_v14  ;;  %v2503_v62 = vcombine.low %v2494_v63, %v2502_v14 }
 0x24c   : > { %1081 = vrot.lane.b32.xlu0 %v2871_v30, %s3028_s20  ;;  %888 = vrot.lane.b32.xlu1 %v2860_v56, %s3027_s19  ;;  %v2296_v8 = vcombine.low %v3903_v21, %v2249_v19  ;;  %v1048_v21 = vshrl.u32 %v3881_v3, 16 }
 0x24d   : > { %v3943_v30 = vrot.slane %v2504_v16, %v3102_v31 }
 0x24e   : > { %v2251_v39 = vpop.permute.xlu1 %2250  ;;  %v1050_v11 = vpack.i.b16 %v1049_v26, %v1048_v21  ;;  %v2303_v51 = vrot.slane %v2296_v8, %v3098_v22 }
 0x24f   : > { %v2470_v53 = vpop.permute.xlu0 %2469  ;;  %v2270_v54 = vcombine.low %v2243_v57, %v2251_v39  ;;  %v3953_v57 = vrot.slane %v2503_v62, %v3102_v31 }
 0x250   : > { %1085 = vrot.lane.b32.xlu0 %v2872_v20, %s3029_s23  ;;  %892 = vrot.lane.b32.xlu1 %v2861_v27, %s3025_s17  ;;  %v1061_v20 = vshrl.u32 %v3894_v17, 16  ;;  %v872_v17 = vshrl.u32 %v3901_v2, 16  ;;  %v871_v2 = vshrl.u32 %v3914_v29, 16 }
 0x251   : > { %v2277_v56 = vrot.slane %v2270_v54, %v3098_v22 }
 0x252   : > { %v873_v26 = vpack.i.b16 %v872_v17, %v871_v2 }
 0x253   : > { %v2478_v34 = vpop.permute.xlu0 %2477  ;;  %v3930_v33 = vpop.permute.xlu1 %1512  ;;  %v2278_v44 = vcombine.low %v2269_v24, %v2277_v56 }
 0x254   : > { %v2529_v55 = vcombine.low %v2470_v53, %v2478_v34  ;;  %904 = vrot.lane.b32.xlu1 %v2864_v12, %s3028_s20  ;;  %v2279_v53 = vcombine.high %v2269_v24, %v2277_v56  ;;  %v1060_v12 = vshrl.u32 %v3906_v61, 16 }
 0x255   : > { %v3987_v62 = vrot.slane %v2278_v44, %v3102_v31 }
 0x256   : > { %v2536_v4 = vrot.slane %v2529_v55, %v3098_v22  ;;  %v2869_v55 = vcombine.low %v1050_v11, %v1050_v11  ;;  %v3974_v16 = vrot.slane %v2279_v53, %v3102_v31  ;;  %v4012_v11 = vcombine.high %v3943_v30, %v4337_v0 }
 0x257   : > { %v2245_v28 = vpop.permute.xlu0 %2244  ;;  %v3936_v40 = vpop.permute.xlu1 %1520 }
 0x258   : > { %v2537_v9 = vcombine.low %v2528_v36, %v2536_v4  ;;  %v2538_v52 = vcombine.high %v2528_v36, %v2536_v4  ;;  %v1062_v36 = vpack.i.b16 %v1061_v20, %v1060_v12  ;;  %v2558_v20 = vshrl.u32 %v3953_v57, 16 }
 0x25a   : > { %v3947_v47 = vrot.slane %v2537_v9, %v3102_v31  ;;  %v3950_v35 = vrot.slane %v2538_v52, %v3102_v31  ;;  %v3995_v52 = vcombine.high %v3953_v57, %v4337_v0  ;;  %v2873_v8 = vcombine.low %v1062_v36, %v1062_v36 }
 0x25b   : > { %v2253_v42 = vpop.permute.xlu0 %2252  ;;  %v3955_v41 = vpop.permute.xlu1 %1801  ;;  %v1536_v36 = vcombine.low %v3930_v33, %v3936_v40 }
 0x25c   : > { %v2304_v19 = vcombine.low %v2245_v28, %v2253_v42  ;;  %v2569_v18 = vpack.i.b16 %v3950_v35, %v3943_v30  ;;  %v2557_v27 = vpack.i.b16 %v3947_v47, %v3953_v57  ;;  %v3984_v61 = vcombine.high %v3947_v47, %v4337_v0 }
 0x25d   : > { %v4003_v21 = vcombine.high %v3950_v35, %v4337_v0  ;;  %v2559_v24 = vshrl.u32 %v3947_v47, 16  ;;  %v2571_v53 = vshrl.u32 %v3950_v35, 16  ;;  %v4029_v35 = vcombine.high %v3987_v62, %v4337_v0 }
 0x25e   : > { %v2311_v39 = vrot.slane %v2304_v19, %v3098_v22  ;;  %v2936_v58 = vcombine.low %v2569_v18, %v2569_v18  ;;  %v2563_v29 = vpack.i.b16 %v3984_v61, %v3995_v52  ;;  %v1543_v33 = vrot.slane %v1536_v36, %v3098_v22 }
 0x25f   : > { %v3966_v3 = vpop.permute.xlu0 %1514  ;;  %v3968_v14 = vpop.permute.xlu1 %1809  ;;  %v2560_v44 = vpack.i.b16 %v2559_v24, %v2558_v20  ;;  %v2333_v24 = vshrl.u32 %v3987_v62, 16 }
 0x260   : > { %v2312_v34 = vcombine.low %v2303_v51, %v2311_v39  ;;  %v2313_v63 = vcombine.high %v2303_v51, %v2311_v39  ;;  %2593 = vrot.lane.b32.xlu0 %v2936_v58, %s3026_s18  ;;  %v2862_v51 = vcombine.low %v873_v26, %v873_v26  ;;  %v2934_v39 = vcombine.low %v2563_v29, %v2563_v29 }
 0x261   : > { %v2575_v58 = vpack.i.b16 %v4003_v21, %v4012_v11 }
 0x262   : > { %v3977_v54 = vrot.slane %v2312_v34, %v3102_v31  ;;  %v3980_v4 = vrot.slane %v2313_v63, %v3102_v31 }
 0x263   : > { %v1517_v50 = vpop.permute.xlu1 %1516 }
 0x264   : > { %v1523_v28 = vpop.permute.xlu0 %1522  ;;  %1073 = vrot.lane.b32.xlu0 %v2869_v55, %s3030_s24  ;;  %v2344_v9 = vpack.i.b16 %v3980_v4, %v3974_v16  ;;  %v4020_v12 = vcombine.high %v3977_v54, %v4337_v0  ;;  %v2570_v55 = vshrl.u32 %v3943_v30, 16  ;;  %v2334_v26 = vshrl.u32 %v3977_v54, 16 }
 0x265   : > { %v1570_v40 = vcombine.low %v3966_v3, %v1523_v28  ;;  %v4051_v3 = vcombine.high %v3980_v4, %v4337_v0 }
 0x266   : > { %v2921_v42 = vcombine.low %v2344_v9, %v2344_v9  ;;  %v2572_v2 = vpack.i.b16 %v2571_v53, %v2570_v55  ;;  %v2938_v9 = vcombine.low %v2575_v58, %v2575_v58  ;;  %v2346_v53 = vshrl.u32 %v3980_v4, 16 }
 0x267   : > { %v2345_v55 = vshrl.u32 %v3974_v16, 16  ;;  %v1577_v36 = vrot.slane %v1570_v40, %v3098_v22  ;;  %v2565_v40 = vshrl.u32 %v3984_v61, 16 }
 0x268   : > { %v4006_v19 = vpop.permute.xlu0 %1803  ;;  %v1525_v18 = vpop.permute.xlu1 %1524  ;;  %1089 = vrot.lane.b32.xlu0 %v2873_v8, %s3031_s25  ;;  %2368 = vrot.lane.b32.xlu1 %v2921_v42, %s3026_s18  ;;  %v2933_v8 = vcombine.low %v2560_v44, %v2560_v44 }
 0x269   : > { %v1544_v34 = vcombine.low %v1517_v50, %v1525_v18  ;;  %v2338_v50 = vpack.i.b16 %v4020_v12, %v4029_v35  ;;  %v2937_v18 = vcombine.low %v2572_v2, %v2572_v2 }
 0x26b   : > { %v1551_v30 = vrot.slane %v1544_v34, %v3098_v22  ;;  %v2919_v20 = vcombine.low %v2338_v50, %v2338_v50 }
 0x26c   : > { %v1806_v17 = vpop.permute.xlu1 %1805  ;;  %2585 = vrot.lane.b32.xlu0 %v2934_v39, %s3025_s17  ;;  %896 = vrot.lane.b32.xlu1 %v2862_v51, %s3030_s24  ;;  %v2335_v51 = vpack.i.b16 %v2334_v26, %v2333_v24  ;;  %v4061_v24 = vcombine.high %v3974_v16, %v4337_v0 }
 0x26d   : > { %v4022_v63 = vpop.permute.xlu0 %1811  ;;  %v1552_v39 = vcombine.low %v1543_v33, %v1551_v30  ;;  %v1553_v28 = vcombine.high %v1543_v33, %v1551_v30  ;;  %v1825_v30 = vcombine.low %v3955_v41, %v3968_v14 }
 0x26e   : > { %v1859_v33 = vcombine.low %v4006_v19, %v4022_v63  ;;  %v2576_v19 = vshrl.u32 %v4012_v11, 16  ;;  %v2577_v63 = vshrl.u32 %v4003_v21, 16 }
 0x26f   : > { %v4055_v50 = vrot.slane %v1552_v39, %v3102_v31  ;;  %v1567_v16 = vrot.slane %v1553_v28, %v3102_v31  ;;  %v4088_v28 = vrot.slane %v1825_v30, %v3098_v22 }
 0x270   : > { %2601 = vrot.lane.b32.xlu0 %v2938_v9, %s3029_s23  ;;  %2581 = vrot.lane.b32.xlu1 %v2933_v8, %s3027_s19  ;;  %v2918_v9 = vcombine.low %v2335_v51, %v2335_v51  ;;  %v2347_v8 = vpack.i.b16 %v2346_v53, %v2345_v55  ;;  %v2350_v51 = vpack.i.b16 %v4051_v3, %v4061_v24  ;;  %v2564_v53 = vshrl.u32 %v3995_v52, 16 }
 0x271   : > { %v1519_v42 = vpop.permute.xlu0 %1518  ;;  %v1814_v29 = vpop.permute.xlu1 %1813  ;;  %v1607_v14 = vshrl.u32 %v4055_v50, 16 }
 0x272   : > { %v2566_v41 = vpack.i.b16 %v2565_v40, %v2564_v53 }
 0x274   : > { %2597 = vrot.lane.b32.xlu1 %v2937_v18, %s3028_s20  ;;  %2360 = vrot.lane.b32.xlu0 %v2919_v20, %s3025_s17  ;;  %v1833_v18 = vcombine.low %v1806_v17, %v1814_v29  ;;  %v2922_v29 = vcombine.low %v2347_v8, %v2347_v8 }
 0x275   : > { %v1527_v58 = vpop.permute.xlu0 %1526  ;;  %v4043_v44 = vpop.permute.xlu1 %2135 }
 0x276   : > { %v1578_v34 = vcombine.low %v1519_v42, %v1527_v58  ;;  %v4083_v52 = vrot.slane %v1833_v18, %v3098_v22 }
 0x278   : > { %v1585_v2 = vrot.slane %v1578_v34, %v3098_v22  ;;  %2356 = vrot.lane.b32.xlu1 %v2918_v9, %s3027_s19  ;;  %v2923_v9 = vcombine.low %v2350_v51, %v2350_v51  ;;  %v1841_v30 = vcombine.low %v4088_v28, %v4083_v52  ;;  %v2340_v51 = vshrl.u32 %v4020_v12, 16 }
 0x279   : > { %v1808_v26 = vpop.permute.xlu0 %1807  ;;  %v4057_v42 = vpop.permute.xlu1 %1353 }
 0x27a   : > { %v1586_v4 = vcombine.low %v1577_v36, %v1585_v2  ;;  %v1587_v20 = vcombine.high %v1577_v36, %v1585_v2  ;;  %v1866_v2 = vrot.slane %v1859_v33, %v3098_v22 }
 0x27c   : > { %v4074_v61 = vrot.slane %v1586_v4, %v3102_v31  ;;  %v1601_v17 = vrot.slane %v1587_v20, %v3102_v31  ;;  %2372 = vrot.lane.b32.xlu1 %v2922_v29, %s3028_s20  ;;  %v2578_v20 = vpack.i.b16 %v2577_v63, %v2576_v19 }
 0x27d   : > { %v1816_v39 = vpop.permute.xlu0 %1815  ;;  %v4077_v58 = vpop.permute.xlu1 %1341 }
 0x27e   : > { %v1867_v34 = vcombine.low %v1808_v26, %v1816_v39  ;;  %v1618_v55 = vpack.i.b16 %v1601_v17, %v1567_v16  ;;  %v1608_v36 = vshrl.u32 %v4074_v61, 16  ;;  %v4096_v26 = vcombine.high %v4074_v61, %v4337_v0 }
 0x27f   : > { %v1620_v53 = vshrl.u32 %v1601_v17, 16  ;;  %v2935_v39 = vcombine.low %v2566_v41, %v2566_v41  ;;  %v2939_v41 = vcombine.low %v2578_v20, %v2578_v20 }
 0x280   : > { %v1874_v21 = vrot.slane %v1867_v34, %v3098_v22  ;;  %v2884_v8 = vcombine.low %v1618_v55, %v1618_v55  ;;  %v1609_v40 = vpack.i.b16 %v1608_v36, %v1607_v14  ;;  %2376 = vrot.lane.b32.xlu1 %v2923_v9, %s3029_s23  ;;  %v1568_v22 = vcombine.high %v4055_v50, %v4337_v0 }
 0x281   : > { %v4098_v18 = vpop.permute.xlu0 %715  ;;  %v1346_v4 = vpop.permute.xlu1 %1345  ;;  %v2339_v55 = vshrl.u32 %v4029_v35, 16  ;;  %v1619_v36 = vshrl.u32 %v1567_v16, 16  ;;  %v4113_v9 = vrot.slane %v1841_v30, %v3102_v31  ;;  %v1603_v35 = vcombine.high %v1601_v17, %v4337_v0 }
 0x282   : > { %v1875_v33 = vcombine.low %v1866_v2, %v1874_v21  ;;  %1642 = vrot.lane.b32.xlu0 %v2884_v8, %s3026_s18  ;;  %v2881_v14 = vcombine.low %v1609_v40, %v1609_v40  ;;  %v1612_v19 = vpack.i.b16 %v4096_v26, %v1568_v22  ;;  %v1876_v11 = vcombine.high %v1866_v2, %v1874_v21 }
 0x283   : > { %v2341_v8 = vpack.i.b16 %v2340_v51, %v2339_v55  ;;  %v1621_v40 = vpack.i.b16 %v1620_v53, %v1619_v36  ;;  %v1613_v6 = vshrl.u32 %v1568_v22, 16 }
 0x284   : > { %v4108_v29 = vrot.slane %v1875_v33, %v3102_v31  ;;  %2589 = vrot.lane.b32.xlu1 %v2935_v39, %s3030_s24  ;;  %v2352_v33 = vshrl.u32 %v4051_v3, 16  ;;  %v2882_v56 = vcombine.low %v1612_v19, %v1612_v19  ;;  %v1569_v39 = vcombine.high %v1567_v16, %v4337_v0 }
 0x285   : > { %v704_v63 = vpop.permute.xlu0 %703  ;;  %v1358_v34 = vpop.permute.xlu1 %1357  ;;  %v1842_v3 = vcombine.high %v4088_v28, %v4083_v52  ;;  %v2920_v2 = vcombine.low %v2341_v8, %v2341_v8  ;;  %v1369_v16 = vsel %vm729_vm14, %v1317_v7, %v4077_v58  ;;  %v2885_v52 = vcombine.low %v1621_v40, %v1621_v40 }
 0x286   : > { %v732_v12 = vsel %vm729_vm14, %v679_v23, %v704_v63  ;;  %1630 = vrot.lane.b32.xlu0 %v2881_v14, %s3027_s19  ;;  %v1895_v30 = vpack.i.b16 %v4108_v29, %v4113_v9  ;;  %v2351_v23 = vshrl.u32 %v4061_v24, 16  ;;  %v3032_v14 = vmov 0.0  }
 0x287   : > { %2954 = vmatprep.subr.bf16.mxu0 %v3032_v14  ;;  %v1624_v20 = vpack.i.b16 %v1603_v35, %v1569_v39  ;;  %v1890_v24 = vrot.slane %v1876_v11, %v3102_v31  ;;  %v1614_v28 = vshrl.u32 %v4096_v26, 16  ;;  %v1371_v51 = vsel %vm733_vm15, %v1369_v16, %v1346_v4  ;;  %2964 = vmatprep.mubr.msk.bf16.mxu0 %vm3033_vm6, %v3032_v14 }
 0x288   : > { %2605 = vrot.lane.b32.xlu1 %v2939_v41, %s3031_s25  ;;  %v2353_v21 = vpack.i.b16 %v2352_v33, %v2351_v23  ;;  %v1856_v19 = vrot.slane %v1842_v3, %v3102_v31  ;;  %v1626_v26 = vshrl.u32 %v1603_v35, 16  ;;  %v1897_v31 = vshrl.u32 %v4108_v29, 16 }
 0x289   : > { %v708_v46 = vpop.permute.xlu0 %707  ;;  %v1362_v43 = vpop.permute.xlu1 %1361  ;;  %v2886_v58 = vcombine.low %v1624_v20, %v1624_v20  ;;  %v1615_v63 = vpack.i.b16 %v1614_v28, %v1613_v6  ;;  %v1625_v8 = vshrl.u32 %v1569_v39, 16  ;;  %v1857_v39 = vcombine.high %v4113_v9, %v4337_v0 }
 0x28a   : > { %v735_v17 = vsel %vm733_vm15, %v732_v12, %v708_v46  ;;  %1634 = vrot.lane.b32.xlu0 %v2882_v56, %s3025_s17  ;;  %v2924_v7 = vcombine.low %v2353_v21, %v2353_v21  ;;  %v1907_v55 = vpack.i.b16 %v1890_v24, %v1856_v19  ;;  %v1891_v46 = vcombine.high %v4108_v29, %v4337_v0 }
 0x28b   : > { %v1627_v22 = vpack.i.b16 %v1626_v26, %v1625_v8  ;;  %v1909_v16 = vshrl.u32 %v1890_v24, 16 }
 0x28c   : > { %2364 = vrot.lane.b32.xlu1 %v2920_v2, %s3030_s24  ;;  %v2891_v33 = vcombine.low %v1907_v55, %v1907_v55  ;;  %v1901_v20 = vpack.i.b16 %v1891_v46, %v1857_v39  ;;  %v1903_v26 = vshrl.u32 %v1891_v46, 16 }
 0x28d   : > { %v720_v53 = vpop.permute.xlu0 %719  ;;  %v1350_v56 = vpop.permute.xlu1 %1349  ;;  %v2887_v2 = vcombine.low %v1627_v22, %v1627_v22  ;;  %v2865_v22 = vcombine.low %v3908_v5, %v3908_v5 }
 0x28e   : > { %v1373_v11 = vsel %vm736_vm0, %v1371_v51, %v1350_v56  ;;  %1646 = vrot.lane.b32.xlu0 %v2885_v52, %s3028_s20  ;;  %v2858_v51 = vcombine.low %v3816_v25, %v3816_v25  ;;  %v2889_v56 = vcombine.low %v1901_v20, %v1901_v20 }
 0x28f   : > { %v1375_v38 = vsel %vm739_vm1, %v1373_v11, %v4057_v42  ;;  %v1896_v42 = vshrl.u32 %v4113_v9, 16 }
 0x290   : > { %v1377_v4 = vsel %vm742_vm2, %v1375_v38, %v1358_v34  ;;  %2380 = vrot.lane.b32.xlu1 %v2924_v7, %s3031_s25  ;;  %v2883_v34 = vcombine.low %v1615_v63, %v1615_v63  ;;  %v2859_v38 = vcombine.low %v3820_v48, %v3820_v48 }
 0x291   : > { %v2144_v36 = vpop.permute.xlu0 %2143  ;;  %v1379_v12 = vsel %vm745_vm3, %v1377_v4, %v1362_v43  ;;  %v1366_v41 = vpop.permute.xlu1 %1365  ;;  %v1898_v35 = vpack.i.b16 %v1897_v31, %v1896_v42 }
 0x292   : > { %v1381_v40 = vsel %vm748_vm4, %v1379_v12, %v1366_v41  ;;  %1650 = vrot.lane.b32.xlu0 %v2886_v58, %s3029_s23 }
 0x293   : > { %1383 = vst.msk [vmem:[#allocation3 + $0xc] sm:$0xf] %vm752_vm5, %v1381_v40  ;;  %v2888_v21 = vcombine.low %v1898_v35, %v1898_v35 }
 0x294   : > { %1931 = vrot.lane.b32.xlu1 %v2891_v33, %s3026_s18 }
 0x295   : > { %v712_v43 = vpop.permute.xlu0 %711 }
 0x296   : > { %v738_v23 = vsel %vm736_vm0, %v735_v17, %v712_v43  ;;  %1638 = vrot.lane.b32.xlu0 %v2883_v34, %s3030_s24  ;;  %v1908_v17 = vshrl.u32 %v1856_v19, 16 }
 0x297   : > { %v741_v3 = vsel %vm739_vm1, %v738_v23, %v4098_v18  ;;  %v1892_v18 = vcombine.high %v1890_v24, %v4337_v0  ;;  %v1902_v24 = vshrl.u32 %v1857_v39, 16 }
 0x298   : > { %v4165_v52 = vsel %vm742_vm2, %v741_v3, %v720_v53  ;;  %1919 = vrot.lane.b32.xlu1 %v2888_v21, %s3027_s19  ;;  %v1910_v11 = vpack.i.b16 %v1909_v16, %v1908_v17  ;;  %v1858_v53 = vcombine.high %v1856_v19, %v4337_v0 }
 0x299   : > { %v2132_v28 = vpop.permute.xlu0 %2131  ;;  %v1904_v55 = vpack.i.b16 %v1903_v26, %v1902_v24  ;;  %v1915_v0 = vshrl.u32 %v1892_v18, 16 }
 0x29a   : > { %1654 = vrot.lane.b32.xlu0 %v2887_v2, %s3031_s25  ;;  %v2892_v7 = vcombine.low %v1910_v11, %v1910_v11  ;;  %v1913_v58 = vpack.i.b16 %v1892_v18, %v1858_v53  ;;  %v2159_v25 = vsel %vm729_vm14, %v2107_v45, %v2132_v28  ;;  %v1914_v12 = vshrl.u32 %v1858_v53, 16 }
 0x29b   : > { %v2161_v48 = vsel %vm733_vm15, %v2159_v25, %v4043_v44  ;;  %v2890_v45 = vcombine.low %v1904_v55, %v1904_v55 }
 0x29c   : > { %1923 = vrot.lane.b32.xlu1 %v2889_v56, %s3025_s17  ;;  %v2893_v63 = vcombine.low %v1913_v58, %v1913_v58  ;;  %v1916_v41 = vpack.i.b16 %v1915_v0, %v1914_v12 }
 0x29d   : > { %v2148_v6 = vpop.permute.xlu0 %2147 }
 0x29e   : > { %723 = vrot.lane.b32.xlu0 %v2858_v51, %s3029_s23  ;;  %v2894_v44 = vcombine.low %v1916_v41, %v1916_v41  ;;  %v4357_v41 = vpack.i.b16 %v3977_v54, %v3987_v62 }
 0x2a0   : > { %1935 = vrot.lane.b32.xlu1 %v2892_v7, %s3028_s20 }
 0x2a1   : > { %v2152_v4 = vpop.permute.xlu0 %2151 }
 0x2a2   : > { %727 = vrot.lane.b32.xlu0 %v2859_v38, %s3031_s25 }
 0x2a4   : > { %1939 = vrot.lane.b32.xlu1 %v2893_v63, %s3029_s23 }
 0x2a5   : > { %v2140_v19 = vpop.permute.xlu0 %2139 }
 0x2a6   : > { %v2163_v31 = vsel %vm736_vm0, %v2161_v48, %v2140_v19 }
 0x2a7   : > { %v2165_v59 = vsel %vm739_vm1, %v2163_v31, %v2144_v36  ;;  %v2866_v36 = vcombine.low %v3918_v37, %v3918_v37 }
 0x2a8   : > { %v2167_v60 = vsel %vm742_vm2, %v2165_v59, %v2148_v6  ;;  %1927 = vrot.lane.b32.xlu1 %v2890_v45, %s3030_s24 }
 0x2a9   : > { %v2156_v8 = vpop.permute.xlu0 %2155  ;;  %v2169_v40 = vsel %vm745_vm3, %v2167_v60, %v2152_v4 }
 0x2aa   : > { %v2171_v42 = vsel %vm748_vm4, %v2169_v40, %v2156_v8 }
 0x2ab   : > { %2173 = vst.msk [vmem:[#allocation3 + $0x18] sm:$0xf] %vm752_vm5, %v2171_v42 }
 0x2ac   : > { %1943 = vrot.lane.b32.xlu1 %v2894_v44, %s3031_s25 }
 0x2b0   : > { %908 = vrot.lane.b32.xlu1 %v2865_v22, %s3029_s23 }
 0x2b2   : > { %v1078_v34 = vpop.permute.xlu0 %1077 }
 0x2b4   : > { %912 = vrot.lane.b32.xlu1 %v2866_v36, %s3031_s25 }
 0x2b6   : > { %v1066_v35 = vpop.permute.xlu0 %1065 }
 0x2b7   : > { %v1093_v21 = vsel %vm729_vm14, %v1041_v13, %v1066_v35  ;;  %v4358_v35 = vpack.i.b16 %v4074_v61, %v4055_v50 }
 0x2ba   : > { %v901_v33 = vpop.permute.xlu1 %900  ;;  %v1070_v5 = vpop.permute.xlu0 %1069 }
 0x2bb   : > { %v1095_v20 = vsel %vm733_vm15, %v1093_v21, %v1070_v5 }
 0x2be   : > { %v889_v46 = vpop.permute.xlu1 %888  ;;  %v1082_v3 = vpop.permute.xlu0 %1081 }
 0x2bf   : > { %v916_v43 = vsel %vm729_vm14, %v864_v1, %v889_v46 }
 0x2c2   : > { %v893_v23 = vpop.permute.xlu1 %892  ;;  %v1086_v37 = vpop.permute.xlu0 %1085 }
 0x2c3   : > { %v918_v39 = vsel %vm733_vm15, %v916_v43, %v893_v23 }
 0x2c6   : > { %v905_v16 = vpop.permute.xlu1 %904 }
 0x2d2   : > { %v2594_v2 = vpop.permute.xlu0 %2593 }
 0x2d6   : > { %v1074_v28 = vpop.permute.xlu0 %1073 }
 0x2d7   : > { %v1097_v10 = vsel %vm736_vm0, %v1095_v20, %v1074_v28 }
 0x2d8   : > { %v1099_v15 = vsel %vm739_vm1, %v1097_v10, %v1078_v34 }
 0x2d9   : > { %v1101_v1 = vsel %vm742_vm2, %v1099_v15, %v1082_v3 }
 0x2da   : > { %v1103_v17 = vsel %vm745_vm3, %v1101_v1, %v1086_v37  ;;  %v1090_v51 = vpop.permute.xlu0 %1089  ;;  %v2369_v56 = vpop.permute.xlu1 %2368 }
 0x2db   : > { %v1105_v11 = vsel %vm748_vm4, %v1103_v17, %v1090_v51 }
 0x2dc   : > { %1107 = vst.msk [vmem:[#allocation3 + $0x8] sm:$0xf] %vm752_vm5, %v1105_v11 }
 0x2de   : > { %v897_v32 = vpop.permute.xlu1 %896  ;;  %v2586_v6 = vpop.permute.xlu0 %2585 }
 0x2df   : > { %v920_v49 = vsel %vm736_vm0, %v918_v39, %v897_v32 }
 0x2e0   : > { %v922_v13 = vsel %vm739_vm1, %v920_v49, %v901_v33 }
 0x2e1   : > { %v4220_v18 = vsel %vm742_vm2, %v922_v13, %v905_v16 }
 0x2e2   : > { %v2582_v53 = vpop.permute.xlu1 %2581  ;;  %v2602_v7 = vpop.permute.xlu0 %2601 }
 0x2e3   : > { %v2609_v63 = vsel %vm729_vm14, %v2557_v27, %v2582_v53 }
 0x2e4   : > { %v2611_v0 = vsel %vm733_vm15, %v2609_v63, %v2586_v6 }
 0x2e6   : > { %v2598_v38 = vpop.permute.xlu1 %2597  ;;  %v2361_v26 = vpop.permute.xlu0 %2360 }
 0x2ea   : > { %v2357_v58 = vpop.permute.xlu1 %2356 }
 0x2eb   : > { %v2384_v47 = vsel %vm729_vm14, %v4357_v41, %v2357_v58 }
 0x2ec   : > { %v2386_v8 = vsel %vm733_vm15, %v2384_v47, %v2361_v26 }
 0x2ee   : > { %v2373_v4 = vpop.permute.xlu1 %2372 }
 0x2f2   : > { %v2377_v24 = vpop.permute.xlu1 %2376 }
 0x2f4   : > { %v1643_v25 = vpop.permute.xlu0 %1642 }
 0x2f6   : > { %v2590_v19 = vpop.permute.xlu1 %2589 }
 0x2f7   : > { %v2613_v48 = vsel %vm736_vm0, %v2611_v0, %v2590_v19 }
 0x2f8   : > { %v1631_v55 = vpop.permute.xlu0 %1630  ;;  %v2615_v31 = vsel %vm739_vm1, %v2613_v48, %v2594_v2 }
 0x2f9   : > { %v2617_v12 = vsel %vm742_vm2, %v2615_v31, %v2598_v38  ;;  %v1658_v46 = vsel %vm729_vm14, %v4358_v35, %v1631_v55 }
 0x2fa   : > { %v2619_v60 = vsel %vm745_vm3, %v2617_v12, %v2602_v7  ;;  %v2606_v45 = vpop.permute.xlu1 %2605 }
 0x2fb   : > { %v2621_v57 = vsel %vm748_vm4, %v2619_v60, %v2606_v45 }
 0x2fc   : > { %v1635_v59 = vpop.permute.xlu0 %1634  ;;  %2623 = vst.msk [vmem:[#allocation3 + $0x20] sm:$0xf] %vm752_vm5, %v2621_v57 }
 0x2fd   : > { %v1660_v5 = vsel %vm733_vm15, %v1658_v46, %v1635_v59 }
 0x2fe   : > { %v2365_v40 = vpop.permute.xlu1 %2364 }
 0x2ff   : > { %v2388_v42 = vsel %vm736_vm0, %v2386_v8, %v2365_v40 }
 0x300   : > { %v1647_v27 = vpop.permute.xlu0 %1646  ;;  %v2390_v44 = vsel %vm739_vm1, %v2388_v42, %v2369_v56 }
 0x301   : > { %v2392_v22 = vsel %vm742_vm2, %v2390_v44, %v2373_v4  ;;  %v3002_v4 = vld [vmem:[#allocation3 + $0x8] sm:$0xff]  }
 0x302   : > { %v2394_v34 = vsel %vm745_vm3, %v2392_v22, %v2377_v24  ;;  %v2381_v54 = vpop.permute.xlu1 %2380  ;;  %v2624_v24 = vld [vmem:[%s4297_s3] sm:$0xf] }
 0x303   : > { %v2396_v62 = vsel %vm748_vm4, %v2394_v34, %v2381_v54  ;;  %v2999_v33 = vld [vmem:[#allocation3 + $0x20] ss:$0 sps:$4 sm:$0xff]  }
 0x304   : > { %v1651_v36 = vpop.permute.xlu0 %1650  ;;  %2398 = vst.msk [vmem:[#allocation3 + $0x1c] sm:$0xf] %vm752_vm5, %v2396_v62  ;;  %v2667_v43 = vsel %vm2665_vm7, %v2999_v33, 0 }
 0x305   : > { %2955 = vmatpush3.bf16.msra.mxu0 %v2667_v43 }
 0x306   : > { %v1932_v39 = vpop.permute.xlu1 %1931  ;;  %2956 = vmatprep.subr.bf16.mxu0 %v3032_v14 }
 0x308   : > { %v1639_v23 = vpop.permute.xlu0 %1638 }
 0x309   : > { %v1662_v3 = vsel %vm736_vm0, %v1660_v5, %v1639_v23 }
 0x30a   : > { %v1664_v37 = vsel %vm739_vm1, %v1662_v3, %v1643_v25  ;;  %v1920_v50 = vpop.permute.xlu1 %1919 }
 0x30b   : > { %v1666_v2 = vsel %vm742_vm2, %v1664_v37, %v1647_v27  ;;  %v3000_v16 = vld [vmem:[#allocation3 + $0x18] sm:$0xff]   ;;  %v1947_v11 = vsel %vm729_vm14, %v1895_v30, %v1920_v50 }
 0x30c   : > { %v1668_v21 = vsel %vm745_vm3, %v1666_v2, %v1651_v36  ;;  %v1655_v20 = vpop.permute.xlu0 %1654  ;;  %2957 = vmatpush3.bf16.msra.mxu0 %v3000_v16 }
 0x30d   : > { %v1670_v61 = vsel %vm748_vm4, %v1668_v21, %v1655_v20  ;;  %2958 = vmatprep.subr.bf16.mxu0 %v3032_v14 }
 0x30e   : > { %1672 = vst.msk [vmem:[#allocation3 + $0x10] sm:$0xf] %vm752_vm5, %v1670_v61  ;;  %v1924_v10 = vpop.permute.xlu1 %1923 }
 0x30f   : > { %v1949_v32 = vsel %vm733_vm15, %v1947_v11, %v1924_v10 }
 0x310   : > { %v724_v28 = vpop.permute.xlu0 %723 }
 0x311   : > { %v747_v15 = vsel %vm745_vm3, %v4165_v52, %v724_v28 }
 0x312   : > { %v1936_v17 = vpop.permute.xlu1 %1935 }
 0x314   : > { %v728_v1 = vpop.permute.xlu0 %727 }
 0x315   : > { %v750_v51 = vsel %vm748_vm4, %v747_v15, %v728_v1 }
 0x316   : > { %753 = vst.msk [vmem:[#allocation3] sm:$0xf] %vm752_vm5, %v750_v51  ;;  %v1940_v56 = vpop.permute.xlu1 %1939 }
 0x31a   : > { %v1928_v49 = vpop.permute.xlu1 %1927 }
 0x31b   : > { %v1951_v13 = vsel %vm736_vm0, %v1949_v32, %v1928_v49 }
 0x31c   : > { %v1953_v6 = vsel %vm739_vm1, %v1951_v13, %v1932_v39 }
 0x31d   : > { %v1955_v52 = vsel %vm742_vm2, %v1953_v6, %v1936_v17 }
 0x31e   : > { %v1957_v53 = vsel %vm745_vm3, %v1955_v52, %v1940_v56  ;;  %v1944_v38 = vpop.permute.xlu1 %1943 }
 0x31f   : > { %v1959_v7 = vsel %vm748_vm4, %v1957_v53, %v1944_v38 }
 0x320   : > { %1961 = vst.msk [vmem:[#allocation3 + $0x14] sm:$0xf] %vm752_vm5, %v1959_v7 }
 0x322   : > { %v909_v58 = vpop.permute.xlu1 %908 }
 0x323   : > { %v926_v29 = vsel %vm745_vm3, %v4220_v18, %v909_v58 }
 0x326   : > { %v913_v9 = vpop.permute.xlu1 %912 }
 0x327   : > { %v928_v30 = vsel %vm748_vm4, %v926_v29, %v913_v9  ;;  %v3001_v26 = vld [vmem:[#allocation3 + $0x10] sm:$0xff]  }
 0x328   : > { %930 = vst.msk [vmem:[#allocation3 + $0x4] sm:$0xf] %vm752_vm5, %v928_v30  ;;  %2959 = vmatpush3.bf16.msra.mxu0 %v3001_v26 }
 0x329   : > { %2960 = vmatprep.subr.bf16.mxu0 %v3032_v14 }
 0x32c   : > { %2961 = vmatpush3.bf16.msra.mxu0 %v3002_v4 }
 0x32d   : > { %2962 = vmatprep.subr.bf16.mxu0 %v3032_v14 }
 0x32f   : > { %v3003_v25 = vld [vmem:[#allocation3] sm:$0xff]  }
 0x330   : > { %2963 = vmatpush3.bf16.msra.mxu0 %v3003_v25 }
 0x333   : > { %2965 = vmatmul.mubr.msk.bf16.vlgmr.msra.gmra.mxu0 %vm2661_vm8, %v2624_v24 }
 0x3f3   : > { %v2703_v18 = vpop.f32.mrf.mxu0 }
 0x3f4   : > { %2710 = vst.msk [vmem:[%s259_s7] sm:$0xff] %vm2709_vm9, %v2703_v18  ;;  %v2716_v63 = vmul.f32 %v2703_v18, %v2703_v18  ;;  %v2711_v55 = vsel %vm2709_vm9, %v2703_v18, 0.0 }
 0x3f5   : > { %2712 = vadd.xlane.f32.xlu0 %v2711_v55  ;;  %v2966_v14 = vpop.f32.mrf.mxu0 }
 0x3f6   : > { %v2717_v0 = vsel %vm2709_vm9, %v2716_v63, 0.0 }
 0x3f7   : > { %2718 = vadd.xlane.f32.xlu1 %v2717_v0  ;;  %v2706_v19 = vpop.f32.mrf.mxu0 }
 0x3f9   : > { %v2967_v48 = vpop.f32.mrf.mxu0 }
 0x47e   : > { %v2713_v31 = vpop.xlane.xlu0 %2712 }
 0x47f   : > { %2715 = vst.msk [vmem:[%s263_s10] sm:$0xff] %vm2714_vm10, %v2713_v31 }
 0x480   : > { %v2719_v12 = vpop.xlane.xlu1 %2718 }
 0x481   : > { %2720 = vst.msk [vmem:[%s267_s12] sm:$0xff] %vm2714_vm10, %v2719_v12 }
 0x482 PF: > { %s17_s21 = sadd.s32 1, %s3010_s21  }
 0x483   : > { %p14_p4 = scmp.ge.s32.totalorder %s17_s21, 4  }
 0x485   :  { %16 = sbr.rel (!%p14_p4) target bundleno = 1 (0x1), region = 90 }

</bundles_post_ra>
